<compile_context>
chip_gen: v7x
topology: tpu7x:2x2x1
jax: 0.10.0
libtpu: 0.0.40
codegen_flags: <defaults>
</compile_context>

<pallas_src>
import math
from functools import partial

import jax
import jax.numpy as jnp
from jax import lax
from jax.experimental import pallas as pl
from jax.experimental.pallas import tpu as pltpu

EPS = 1e-5                       # PyTorch InstanceNorm2d default eps
VMEM_LIMIT = 48 * 1024 * 1024    # leave headroom on v7x's 64 MiB physical VMEM

_VMEM = pl.BlockSpec(memory_space=pltpu.MemorySpace.VMEM)


# ----------------------------------------------------------------------------
# small helpers
# ----------------------------------------------------------------------------
def _round_up(x, m):
    return ((x + m - 1) // m) * m


def _choose_tile(n, target, align):
    """Largest multiple of `align` <= target that divides n, else the full extent."""
    if n <= target:
        return n
    t = (target // align) * align
    while t >= align:
        if n % t == 0:
            return t
        t -= align
    return n


# ----------------------------------------------------------------------------
# Pallas kernels
# ----------------------------------------------------------------------------
def _conv_s1_impl(xf_ref, wt_ref, mask_ref, res_ref, o_ref, acc_ref,
                  *, k, Wp, Ho, Wo, relu, eps):
    """Stride-1 conv as k*k shifted matmuls over a flattened padded input.

    grid = (cout_tiles, cin_tiles); cin axis is the reduction ("arbitrary").
    xf_ref   : (Cin_t, Lpad)   bf16, flattened padded input (row-major spatial)
    wt_ref   : (k*k, Cout_t, Cin_t) bf16
    mask_ref : (1, Ho*Wp) f32  1.0 on valid output columns, 0.0 on wrap-around
    res_ref  : optional (Cout_t, Ho*Wp) bf16 residual (already column-padded)
    o_ref    : (Cout_t, Ho*Wp) bf16 "wide" output (valid cols sliced in glue)
    acc_ref  : (Cout_t, Ho*Wp) f32 accumulator scratch (persists over cin axis)
    """
    j = pl.program_id(1)
    nwide = Ho * Wp

    @pl.when(j == 0)
    def _init():
        acc_ref[...] = jnp.zeros_like(acc_ref)

    # sum of k*k shifted matmuls; tap (di, dj) is a contiguous lane slice at
    # offset di*Wp + dj of the flattened padded input.
    part = None
    for t in range(k * k):
        off = (t // k) * Wp + (t % k)
        contrib = jnp.dot(wt_ref[t], xf_ref[:, off:off + nwide],
                          preferred_element_type=jnp.float32)
        part = contrib if part is None else part + contrib
    acc_ref[...] += part

    @pl.when(j == pl.num_programs(1) - 1)
    def _finalize():
        acc = acc_ref[...]                               # (Cout_t, Ho*Wp) f32
        mask = mask_ref[...]                             # (1, Ho*Wp)
        inv_n = 1.0 / float(Ho * Wo)                     # stats over VALID cols only
        am = acc * mask
        mu = jnp.sum(am, axis=1, keepdims=True) * inv_n
        ex2 = jnp.sum(am * acc, axis=1, keepdims=True) * inv_n   # E[x^2] (masked)
        var = jnp.maximum(ex2 - mu * mu, 0.0)
        y = (acc - mu) * lax.rsqrt(var + eps)            # InstanceNorm (bias cancels)
        if relu:
            y = jnp.maximum(y, 0.0)
        if res_ref is not None:
            y = y + res_ref[...].astype(jnp.float32)     # ResnetBlock skip add
        o_ref[...] = y.astype(o_ref.dtype)


def _conv_s1_kernel(xf_ref, wt_ref, mask_ref, o_ref, acc_ref, **kw):
    _conv_s1_impl(xf_ref, wt_ref, mask_ref, None, o_ref, acc_ref, **kw)


def _conv_s1_res_kernel(xf_ref, wt_ref, mask_ref, res_ref, o_ref, acc_ref, **kw):
    _conv_s1_impl(xf_ref, wt_ref, mask_ref, res_ref, o_ref, acc_ref, **kw)


def _conv_mm_kernel(w_ref, p_ref, o_ref, acc_ref, *, eps):
    """Generic gridded matmul + InstanceNorm + ReLU (used by the stride-2 convs).

    grid = (cout_tiles, k_tiles); K axis is the reduction ("arbitrary").
    w_ref : (Cout_t, K_t) bf16, p_ref : (K_t, P) bf16, o_ref : (Cout_t, P) bf16.
    """
    j = pl.program_id(1)

    @pl.when(j == 0)
    def _init():
        acc_ref[...] = jnp.zeros_like(acc_ref)

    acc_ref[...] += jnp.dot(w_ref[...], p_ref[...],
                            preferred_element_type=jnp.float32)

    @pl.when(j == pl.num_programs(1) - 1)
    def _finalize():
        acc = acc_ref[...]
        mu = jnp.mean(acc, axis=1, keepdims=True)
        var = jnp.maximum(jnp.mean(acc * acc, axis=1, keepdims=True) - mu * mu, 0.0)
        y = (acc - mu) * lax.rsqrt(var + eps)
        o_ref[...] = jnp.maximum(y, 0.0).astype(o_ref.dtype)


def _heads_kernel(feat_ref, wc_ref, w1_ref, b1_ref, w2_ref, b2_ref,
                  wl_ref, bl_ref, wout_ref, nout_ref, *, n_w, eps):
    """All W heads and N heads fused into one kernel.

    feat : (C, P) bf16, wc : (nW+nN, C) bf16 stacked 1x1-conv weights.
    Per-head 1x1 conv == one stacked matmul; then per-row InstanceNorm; then
    the tiny per-head linears (static loop of 2-D dots).
    """
    y = jnp.dot(wc_ref[...], feat_ref[...], preferred_element_type=jnp.float32)  # (nH, P)
    mu = jnp.mean(y, axis=1, keepdims=True)
    var = jnp.maximum(jnp.mean(y * y, axis=1, keepdims=True) - mu * mu, 0.0)
    y = (y - mu) * lax.rsqrt(var + eps)

    # W heads: Linear(n_feat, 32) -> ReLU -> Linear(32, 512)
    w1, b1 = w1_ref[...], b1_ref[...]
    w2, b2 = w2_ref[...], b2_ref[...]
    w_rows = []
    for i in range(n_w):
        hi = jnp.dot(y[i:i + 1, :], w1[i], preferred_element_type=jnp.float32)
        hi = jnp.maximum(hi + b1[i:i + 1, :], 0.0)
        w_rows.append(jnp.dot(hi, w2[i], preferred_element_type=jnp.float32)
                      + b2[i:i + 1, :])
    wout_ref[...] = jnp.concatenate(w_rows, axis=0)

    # N heads (out_feat < 32 branch): Linear(n_feat, out_feat**2), padded to Omax
    wl, bl = wl_ref[...], bl_ref[...]
    n_rows = []
    for i in range(nout_ref.shape[0]):
        n_rows.append(jnp.dot(y[n_w + i:n_w + i + 1, :], wl[i],
                              preferred_element_type=jnp.float32) + bl[i:i + 1, :])
    nout_ref[...] = jnp.concatenate(n_rows, axis=0)


# ----------------------------------------------------------------------------
# Wrappers (padding / layout glue + pallas_call plumbing)
# ----------------------------------------------------------------------------
def conv_s1(x_chw, wt, *, k, pad, pad_mode, relu, residual=None):
    """Stride-1 Conv(+pad) -> InstanceNorm -> ReLU  (or -> IN -> + residual).

    x_chw : (Cin, H, W), wt : (k*k, Cout, Cin) bf16, residual : (Cout, H, W).
    Returns (Cout, H, W) bf16.  No im2col is materialized.
    """
    C, H, W = x_chw.shape
    k2, Cout, Cin = wt.shape
    assert k2 == k * k and Cin == C
    Hp, Wp = H + 2 * pad, W + 2 * pad
    Ho, Wo = Hp - k + 1, Wp - k + 1
    nwide = Ho * Wp

    xp = jnp.pad(x_chw, ((0, 0), (pad, pad), (pad, pad)), mode=pad_mode)
    xf = xp.reshape(C, Hp * Wp).astype(jnp.bfloat16)
    lpad = _round_up(Hp * Wp + k - 1, 128)               # room for the last tap shift
    xf = jnp.pad(xf, ((0, 0), (0, lpad - Hp * Wp)))
    # valid-column mask for the "wide" output layout (wrap-around cols are garbage)
    mask = (jnp.arange(nwide, dtype=jnp.int32) % Wp < Wo).astype(jnp.float32)[None, :]

    cout_t = _choose_tile(Cout, 128, 8)
    cin_t = _choose_tile(Cin, 512, 128)
    grid = (Cout // cout_t, Cin // cin_t)

    in_specs = [
        pl.BlockSpec((cin_t, lpad), lambda i, j: (j, 0)),
        pl.BlockSpec((k2, cout_t, cin_t), lambda i, j: (0, i, j)),
        pl.BlockSpec((1, nwide), lambda i, j: (0, 0)),
    ]
    args = [xf, wt, mask]
    if residual is not None:
        res_wide = jnp.pad(residual, ((0, 0), (0, 0), (0, Wp - Wo))).reshape(Cout, nwide)
        in_specs.append(pl.BlockSpec((cout_t, nwide), lambda i, j: (i, 0)))
        args.append(res_wide)
        kern = partial(_conv_s1_res_kernel, k=k, Wp=Wp, Ho=Ho, Wo=Wo, relu=relu, eps=EPS)
    else:
        kern = partial(_conv_s1_kernel, k=k, Wp=Wp, Ho=Ho, Wo=Wo, relu=relu, eps=EPS)

    flops = 2 * Cout * Cin * k2 * nwide
    bytes_acc = xf.size * 2 + wt.size * 2 + Cout * nwide * 2 \
        + (Cout * nwide * 2 if residual is not None else 0)

    out_wide = pl.pallas_call(
        kern,
        out_shape=jax.ShapeDtypeStruct((Cout, nwide), jnp.bfloat16),
        grid=grid,
        in_specs=in_specs,
        out_specs=pl.BlockSpec((cout_t, nwide), lambda i, j: (i, 0)),
        scratch_shapes=[pltpu.VMEM((cout_t, nwide), jnp.float32)],
        compiler_params=pltpu.CompilerParams(
            dimension_semantics=("parallel", "arbitrary"),
            vmem_limit_bytes=VMEM_LIMIT),
        cost_estimate=pl.CostEstimate(flops=flops, transcendentals=Cout,
                                      bytes_accessed=bytes_acc),
    )(*args)
    # drop the (k-1) wrap-around columns of every row
    return out_wide.reshape(Cout, Ho, Wp)[:, :, :Wo]


def conv_s2(x_chw, wm, *, k=3, stride=2, pad=1):
    """Stride-2 downsampling Conv(zero pad) -> InstanceNorm -> ReLU.

    x_chw : (Cin, H, W), wm : (Cout, k*k*Cin) bf16.  Returns (Cout, Ho, Wo) bf16.
    """
    C, H, W = x_chw.shape
    Cout, K = wm.shape
    assert K == k * k * C
    Hp, Wp = H + 2 * pad, W + 2 * pad
    Ho = (Hp - k) // stride + 1
    Wo = (Wp - k) // stride + 1
    P = Ho * Wo

    # TODO(synk): the two stride-2 convs still build a k*k im2col in HBM; an
    # in-kernel strided gather (space-to-depth) would remove this last blow-up.
    xp = jnp.pad(x_chw, ((0, 0), (pad, pad), (pad, pad)))
    cols = []
    for di in range(k):
        for dj in range(k):
            cols.append(xp[:, di:di + (Ho - 1) * stride + 1:stride,
                           dj:dj + (Wo - 1) * stride + 1:stride])
    patches = jnp.stack(cols, axis=0).reshape(K, P).astype(jnp.bfloat16)

    cout_t = _choose_tile(Cout, 128, 8)
    k_t = _choose_tile(K, 1024, 128)
    grid = (Cout // cout_t, K // k_t)
    flops = 2 * Cout * K * P

    out = pl.pallas_call(
        partial(_conv_mm_kernel, eps=EPS),
        out_shape=jax.ShapeDtypeStruct((Cout, P), jnp.bfloat16),
        grid=grid,
        in_specs=[pl.BlockSpec((cout_t, k_t), lambda i, j: (i, j)),
                  pl.BlockSpec((k_t, P), lambda i, j: (j, 0))],
        out_specs=pl.BlockSpec((cout_t, P), lambda i, j: (i, 0)),
        scratch_shapes=[pltpu.VMEM((cout_t, P), jnp.float32)],
        compiler_params=pltpu.CompilerParams(
            dimension_semantics=("parallel", "arbitrary"),
            vmem_limit_bytes=VMEM_LIMIT),
        cost_estimate=pl.CostEstimate(
            flops=flops, transcendentals=Cout,
            bytes_accessed=wm.size * 2 + patches.size * 2 + Cout * P * 2),
    )(wm, patches)
    return out.reshape(Cout, Ho, Wo)


def run_heads(feat, params):
    """All W heads + N heads in a single fused pallas_call (feat read once)."""
    C, P = feat.shape
    nW = params['w1'].shape[0]
    nN = params['wl'].shape[0]
    omax = params['wl'].shape[2]
    flops = 2 * (nW + nN) * C * P + 2 * nW * (P * 32 + 32 * 512) + 2 * nN * P * omax
    wout, nout = pl.pallas_call(
        partial(_heads_kernel, n_w=nW, eps=EPS),
        out_shape=(jax.ShapeDtypeStruct((nW, 512), jnp.float32),
                   jax.ShapeDtypeStruct((nN, omax), jnp.float32)),
        in_specs=[_VMEM] * 8,
        out_specs=(_VMEM, _VMEM),
        compiler_params=pltpu.CompilerParams(vmem_limit_bytes=VMEM_LIMIT),
        cost_estimate=pl.CostEstimate(flops=flops, transcendentals=nW + nN,
                                      bytes_accessed=feat.size * 2),
    )(feat.astype(jnp.bfloat16), params['wc'], params['w1'], params['b1'],
      params['w2'], params['b2'], params['wl'], params['bl'])
    return wout, nout


# ----------------------------------------------------------------------------
# Full forward
# ----------------------------------------------------------------------------
def resnet_encoder_sty2_forward(x_nchw, params):
    # the module's W/N heads assume batch == 1 (stack/squeeze semantics)
    x = x_nchw[0].astype(jnp.float32)                    # (Cin, H, W) channels-first

    # --- ResnetEncoder ---
    h = conv_s1(x, params['w0t'], k=7, pad=3, pad_mode='reflect', relu=True)
    h = conv_s2(h, params['wd1m'])
    h = conv_s2(h, params['wd2m'])
    for (wt1, wt2) in params['res']:
        skip = h
        t = conv_s1(h, wt1, k=3, pad=1, pad_mode='reflect', relu=True)
        h = conv_s1(t, wt2, k=3, pad=1, pad_mode='reflect', relu=False, residual=skip)

    C, Ho, Wo = h.shape
    feat = h.reshape(C, Ho * Wo)                         # (C, P): no transpose needed

    # --- fused W + N heads ---
    wout, nout = run_heads(feat, params)
    outputs = wout[None]                                 # (1, n_wplus, 512)
    noutputs = [nout[i, :of * of].reshape(1, 1, of, of)
                for i, of in enumerate(params['n_of'])]
    return outputs, noutputs


# ----------------------------------------------------------------------------
# Deterministic parameter construction (PyTorch-layout weights -> kernel layouts)
# ----------------------------------------------------------------------------
def _s1_weight(w_oihw):
    """torch (Cout, Cin, kh, kw) -> (kh*kw, Cout, Cin) bf16 for the shifted-matmul kernel."""
    co, ci, kh, kw = w_oihw.shape
    return jnp.transpose(w_oihw, (2, 3, 0, 1)).reshape(kh * kw, co, ci).astype(jnp.bfloat16)


def _s2_weight(w_oihw):
    """torch (Cout, Cin, kh, kw) -> (Cout, kh*kw*Cin) bf16, (tap, cin) ordering."""
    co, ci, kh, kw = w_oihw.shape
    return jnp.transpose(w_oihw, (0, 2, 3, 1)).reshape(co, kh * kw * ci).astype(jnp.bfloat16)


def init_params(key, input_nc, ngf, n_blocks, n_feat, n_wplus, noise_map):
    keys = iter(jax.random.split(key, 128))

    def w(shape, scale=0.02):
        return (scale * jax.random.normal(next(keys), shape)).astype(jnp.float32)

    C = ngf * 4
    # Conv biases are intentionally omitted: every conv here is immediately
    # followed by InstanceNorm (affine=False), which cancels a per-channel bias.
    p = {
        'w0t': _s1_weight(w((ngf, input_nc, 7, 7))),
        'wd1m': _s2_weight(w((ngf * 2, ngf, 3, 3))),
        'wd2m': _s2_weight(w((C, ngf * 2, 3, 3))),
        'res': [(_s1_weight(w((C, C, 3, 3))), _s1_weight(w((C, C, 3, 3))))
                for _ in range(n_blocks)],
    }

    nN = n_wplus - 1
    # Stacked 1x1-conv weights of all heads: torch (1, C, 1, 1) per head -> rows.
    p['wc'] = jnp.concatenate([w((n_wplus, C)), w((nN, C))], axis=0).astype(jnp.bfloat16)
    # W-head linears, stored transposed per head: torch lin.weight (out, in) -> (in, out).
    p['w1'] = w((n_wplus, n_feat, 32))
    p['b1'] = jnp.zeros((n_wplus, 32), jnp.float32)
    p['w2'] = w((n_wplus, 32, 512))
    p['b2'] = jnp.zeros((n_wplus, 512), jnp.float32)
    # N-head linears, zero-padded to a common lane-dense width.
    ofs = [noise_map[n] for n in range(nN)]
    omax = max(of * of for of in ofs)
    wl = []
    for of in ofs:
        # TODO(synk): NBlock out_feat>=32 branch (Conv3x3 + Upsample + Conv1x1) not built.
        assert of < 32
        wl.append(jnp.pad(w((n_feat, of * of)), ((0, 0), (0, omax - of * of))))
    p['wl'] = jnp.stack(wl)                               # (nN, n_feat, omax)
    p['bl'] = jnp.zeros((nN, omax), jnp.float32)
    p['n_of'] = ofs
    return p


# ----------------------------------------------------------------------------
if __name__ == "__main__":
    # Small, forward-consistent shapes (batch must be 1 per the module's heads).
    input_nc, ngf, n_blocks = 4, 8, 2
    img_size = 16          # -> features have (img_size/4)^2 = 16 spatial positions
    img_size_dec = 16      # -> n_wplus = 2*(log2(16)-1) = 6 W heads, 5 N heads
    n_feat = 2 ** (2 * int(math.log2(img_size) - 2))
    n_wplus = 2 * int(math.log2(img_size_dec) - 1)
    noise_map = [4, 8, 8, 16, 16, 32, 32, 64, 64, 128, 128, 256, 256, 512, 512, 1024, 1024]

    key = jax.random.PRNGKey(0)
    kx, kp = jax.random.split(key)
    x = jax.random.normal(kx, (1, input_nc, img_size, img_size), dtype=jnp.float32)  # NCHW
    params = init_params(kp, input_nc, ngf, n_blocks, n_feat, n_wplus, noise_map)

    outputs, noutputs = resnet_encoder_sty2_forward(x, params)
    outputs = jax.block_until_ready(outputs)
    noutputs = [jax.block_until_ready(z) for z in noutputs]

    assert outputs.shape == (1, n_wplus, 512)
    assert len(noutputs) == n_wplus - 1
    for n, z in enumerate(noutputs):
        assert z.shape == (1, 1, noise_map[n], noise_map[n])
    assert bool(jnp.all(jnp.isfinite(outputs)))
    for z in noutputs:
        assert bool(jnp.all(jnp.isfinite(z)))

    print("KERNEL_OK")
</pallas_src>

<mosaic_0001>
module attributes {stable_mosaic.version = 11 : i64} {
  func.func @_conv_s1_kernel(%arg0: i32, %arg1: i32, %arg2: memref<4x512xbf16, #tpu.memory_space<vmem>>, %arg3: memref<49x8x4xbf16, #tpu.memory_space<vmem>>, %arg4: memref<1x352xf32, #tpu.memory_space<vmem>>, %arg5: memref<8x352xbf16, #tpu.memory_space<vmem>>, %arg6: memref<8x352xf32, #tpu.memory_space<vmem>>) attributes {dimension_semantics = [#tpu.dimension_semantics<parallel>, #tpu.dimension_semantics<arbitrary>], iteration_bounds = array<i64: 1, 1>, scalar_prefetch = 0 : i64, scratch_operands = 1 : i64, tpu.core_type = #tpu.core_type<tc>, window_params = [{transform_indices = @transform_0, window_bounds = array<i64: 4, 512>}, {transform_indices = @transform_1, window_bounds = array<i64: 49, 8, 4>}, {pipeline_mode = #tpu.pipeline_mode<synchronous>, transform_indices = @transform_2, window_bounds = array<i64: 1, 352>}, {transform_indices = @transform_3, window_bounds = array<i64: 8, 352>}]} {
    %c0_i32 = arith.constant 0 : i32
    %0 = arith.cmpi eq, %arg1, %c0_i32 : i32
    %1 = arith.extui %0 : i1 to i32
    %c0_i32_0 = arith.constant 0 : i32
    %2 = arith.cmpi ne, %1, %c0_i32_0 : i32
    scf.if %2 {
      %cst_221 = arith.constant 0.000000e+00 : f32
      %253 = vector.broadcast %cst_221 : f32 to vector<8x352xf32>
      %c0_222 = arith.constant 0 : index
      %c0_223 = arith.constant 0 : index
      %254 = vector.load %arg6[%c0_222, %c0_223] : memref<8x352xf32, #tpu.memory_space<vmem>>, vector<8x352xf32>
      tpu.vector_store %arg6[%c0_222, %c0_223], %253 {strides = array<i32>} : memref<8x352xf32, #tpu.memory_space<vmem>>, vector<8x352xf32>,
    } else {
    }
    %c0 = arith.constant 0 : index
    %c0_1 = arith.constant 0 : index
    %c0_2 = arith.constant 0 : index
    %3 = vector.load %arg3[%c0, %c0_1, %c0_2] : memref<49x8x4xbf16, #tpu.memory_space<vmem>>, vector<1x8x4xbf16>
    %4 = vector.shape_cast %3 : vector<1x8x4xbf16> to vector<8x4xbf16>
    %c0_3 = arith.constant 0 : index
    %c0_4 = arith.constant 0 : index
    %5 = vector.load %arg2[%c0_3, %c0_4] : memref<4x512xbf16, #tpu.memory_space<vmem>>, vector<4x352xbf16>
    %cst = arith.constant dense<0.000000e+00> : vector<8x352xf32>
    %6 = tpu.matmul %4, %5, %cst {dimension_numbers = #tpu.dot_dimension_numbers<[1], [0], [0], [1], [0, 0, 1, 1], [], []>} : vector<8x4xbf16>, vector<4x352xbf16>, vector<8x352xf32> -> vector<8x352xf32>
    %c1 = arith.constant 1 : index
    %c0_5 = arith.constant 0 : index
    %c0_6 = arith.constant 0 : index
    %7 = vector.load %arg3[%c1, %c0_5, %c0_6] : memref<49x8x4xbf16, #tpu.memory_space<vmem>>, vector<1x8x4xbf16>
    %8 = vector.shape_cast %7 : vector<1x8x4xbf16> to vector<8x4xbf16>
    %c0_7 = arith.constant 0 : index
    %c1_8 = arith.constant 1 : index
    %9 = vector.load %arg2[%c0_7, %c1_8] : memref<4x512xbf16, #tpu.memory_space<vmem>>, vector<4x352xbf16>
    %cst_9 = arith.constant dense<0.000000e+00> : vector<8x352xf32>
    %10 = tpu.matmul %8, %9, %cst_9 {dimension_numbers = #tpu.dot_dimension_numbers<[1], [0], [0], [1], [0, 0, 1, 1], [], []>} : vector<8x4xbf16>, vector<4x352xbf16>, vector<8x352xf32> -> vector<8x352xf32>
    %11 = arith.addf %6, %10 : vector<8x352xf32>
    %c2 = arith.constant 2 : index
    %c0_10 = arith.constant 0 : index
    %c0_11 = arith.constant 0 : index
    %12 = vector.load %arg3[%c2, %c0_10, %c0_11] : memref<49x8x4xbf16, #tpu.memory_space<vmem>>, vector<1x8x4xbf16>
    %13 = vector.shape_cast %12 : vector<1x8x4xbf16> to vector<8x4xbf16>
    %c0_12 = arith.constant 0 : index
    %c2_13 = arith.constant 2 : index
    %14 = vector.load %arg2[%c0_12, %c2_13] : memref<4x512xbf16, #tpu.memory_space<vmem>>, vector<4x352xbf16>
    %cst_14 = arith.constant dense<0.000000e+00> : vector<8x352xf32>
    %15 = tpu.matmul %13, %14, %cst_14 {dimension_numbers = #tpu.dot_dimension_numbers<[1], [0], [0], [1], [0, 0, 1, 1], [], []>} : vector<8x4xbf16>, vector<4x352xbf16>, vector<8x352xf32> -> vector<8x352xf32>
    %16 = arith.addf %11, %15 : vector<8x352xf32>
    %c3 = arith.constant 3 : index
    %c0_15 = arith.constant 0 : index
    %c0_16 = arith.constant 0 : index
    %17 = vector.load %arg3[%c3, %c0_15, %c0_16] : memref<49x8x4xbf16, #tpu.memory_space<vmem>>, vector<1x8x4xbf16>
    %18 = vector.shape_cast %17 : vector<1x8x4xbf16> to vector<8x4xbf16>
    %c0_17 = arith.constant 0 : index
    %c3_18 = arith.constant 3 : index
    %19 = vector.load %arg2[%c0_17, %c3_18] : memref<4x512xbf16, #tpu.memory_space<vmem>>, vector<4x352xbf16>
    %cst_19 = arith.constant dense<0.000000e+00> : vector<8x352xf32>
    %20 = tpu.matmul %18, %19, %cst_19 {dimension_numbers = #tpu.dot_dimension_numbers<[1], [0], [0], [1], [0, 0, 1, 1], [], []>} : vector<8x4xbf16>, vector<4x352xbf16>, vector<8x352xf32> -> vector<8x352xf32>
    %21 = arith.addf %16, %20 : vector<8x352xf32>
    %c4 = arith.constant 4 : index
    %c0_20 = arith.constant 0 : index
    %c0_21 = arith.constant 0 : index
    %22 = vector.load %arg3[%c4, %c0_20, %c0_21] : memref<49x8x4xbf16, #tpu.memory_space<vmem>>, vector<1x8x4xbf16>
    %23 = vector.shape_cast %22 : vector<1x8x4xbf16> to vector<8x4xbf16>
    %c0_22 = arith.constant 0 : index
    %c4_23 = arith.constant 4 : index
    %24 = vector.load %arg2[%c0_22, %c4_23] : memref<4x512xbf16, #tpu.memory_space<vmem>>, vector<4x352xbf16>
    %cst_24 = arith.constant dense<0.000000e+00> : vector<8x352xf32>
    %25 = tpu.matmul %23, %24, %cst_24 {dimension_numbers = #tpu.dot_dimension_numbers<[1], [0], [0], [1], [0, 0, 1, 1], [], []>} : vector<8x4xbf16>, vector<4x352xbf16>, vector<8x352xf32> -> vector<8x352xf32>
    %26 = arith.addf %21, %25 : vector<8x352xf32>
    %c5 = arith.constant 5 : index
    %c0_25 = arith.constant 0 : index
    %c0_26 = arith.constant 0 : index
    %27 = vector.load %arg3[%c5, %c0_25, %c0_26] : memref<49x8x4xbf16, #tpu.memory_space<vmem>>, vector<1x8x4xbf16>
    %28 = vector.shape_cast %27 : vector<1x8x4xbf16> to vector<8x4xbf16>
    %c0_27 = arith.constant 0 : index
    %c5_28 = arith.constant 5 : index
    %29 = vector.load %arg2[%c0_27, %c5_28] : memref<4x512xbf16, #tpu.memory_space<vmem>>, vector<4x352xbf16>
    %cst_29 = arith.constant dense<0.000000e+00> : vector<8x352xf32>
    %30 = tpu.matmul %28, %29, %cst_29 {dimension_numbers = #tpu.dot_dimension_numbers<[1], [0], [0], [1], [0, 0, 1, 1], [], []>} : vector<8x4xbf16>, vector<4x352xbf16>, vector<8x352xf32> -> vector<8x352xf32>
    %31 = arith.addf %26, %30 : vector<8x352xf32>
    %c6 = arith.constant 6 : index
    %c0_30 = arith.constant 0 : index
    %c0_31 = arith.constant 0 : index
    %32 = vector.load %arg3[%c6, %c0_30, %c0_31] : memref<49x8x4xbf16, #tpu.memory_space<vmem>>, vector<1x8x4xbf16>
    %33 = vector.shape_cast %32 : vector<1x8x4xbf16> to vector<8x4xbf16>
    %c0_32 = arith.constant 0 : index
    %c6_33 = arith.constant 6 : index
    %34 = vector.load %arg2[%c0_32, %c6_33] : memref<4x512xbf16, #tpu.memory_space<vmem>>, vector<4x352xbf16>
    %cst_34 = arith.constant dense<0.000000e+00> : vector<8x352xf32>
    %35 = tpu.matmul %33, %34, %cst_34 {dimension_numbers = #tpu.dot_dimension_numbers<[1], [0], [0], [1], [0, 0, 1, 1], [], []>} : vector<8x4xbf16>, vector<4x352xbf16>, vector<8x352xf32> -> vector<8x352xf32>
    %36 = arith.addf %31, %35 : vector<8x352xf32>
    %c7 = arith.constant 7 : index
    %c0_35 = arith.constant 0 : index
    %c0_36 = arith.constant 0 : index
    %37 = vector.load %arg3[%c7, %c0_35, %c0_36] : memref<49x8x4xbf16, #tpu.memory_space<vmem>>, vector<1x8x4xbf16>
    %38 = vector.shape_cast %37 : vector<1x8x4xbf16> to vector<8x4xbf16>
    %c0_37 = arith.constant 0 : index
    %c22 = arith.constant 22 : index
    %39 = vector.load %arg2[%c0_37, %c22] : memref<4x512xbf16, #tpu.memory_space<vmem>>, vector<4x352xbf16>
    %cst_38 = arith.constant dense<0.000000e+00> : vector<8x352xf32>
    %40 = tpu.matmul %38, %39, %cst_38 {dimension_numbers = #tpu.dot_dimension_numbers<[1], [0], [0], [1], [0, 0, 1, 1], [], []>} : vector<8x4xbf16>, vector<4x352xbf16>, vector<8x352xf32> -> vector<8x352xf32>
    %41 = arith.addf %36, %40 : vector<8x352xf32>
    %c8 = arith.constant 8 : index
    %c0_39 = arith.constant 0 : index
    %c0_40 = arith.constant 0 : index
    %42 = vector.load %arg3[%c8, %c0_39, %c0_40] : memref<49x8x4xbf16, #tpu.memory_space<vmem>>, vector<1x8x4xbf16>
    %43 = vector.shape_cast %42 : vector<1x8x4xbf16> to vector<8x4xbf16>
    %c0_41 = arith.constant 0 : index
    %c23 = arith.constant 23 : index
    %44 = vector.load %arg2[%c0_41, %c23] : memref<4x512xbf16, #tpu.memory_space<vmem>>, vector<4x352xbf16>
    %cst_42 = arith.constant dense<0.000000e+00> : vector<8x352xf32>
    %45 = tpu.matmul %43, %44, %cst_42 {dimension_numbers = #tpu.dot_dimension_numbers<[1], [0], [0], [1], [0, 0, 1, 1], [], []>} : vector<8x4xbf16>, vector<4x352xbf16>, vector<8x352xf32> -> vector<8x352xf32>
    %46 = arith.addf %41, %45 : vector<8x352xf32>
    %c9 = arith.constant 9 : index
    %c0_43 = arith.constant 0 : index
    %c0_44 = arith.constant 0 : index
    %47 = vector.load %arg3[%c9, %c0_43, %c0_44] : memref<49x8x4xbf16, #tpu.memory_space<vmem>>, vector<1x8x4xbf16>
    %48 = vector.shape_cast %47 : vector<1x8x4xbf16> to vector<8x4xbf16>
    %c0_45 = arith.constant 0 : index
    %c24 = arith.constant 24 : index
    %49 = vector.load %arg2[%c0_45, %c24] : memref<4x512xbf16, #tpu.memory_space<vmem>>, vector<4x352xbf16>
    %cst_46 = arith.constant dense<0.000000e+00> : vector<8x352xf32>
    %50 = tpu.matmul %48, %49, %cst_46 {dimension_numbers = #tpu.dot_dimension_numbers<[1], [0], [0], [1], [0, 0, 1, 1], [], []>} : vector<8x4xbf16>, vector<4x352xbf16>, vector<8x352xf32> -> vector<8x352xf32>
    %51 = arith.addf %46, %50 : vector<8x352xf32>
    %c10 = arith.constant 10 : index
    %c0_47 = arith.constant 0 : index
    %c0_48 = arith.constant 0 : index
    %52 = vector.load %arg3[%c10, %c0_47, %c0_48] : memref<49x8x4xbf16, #tpu.memory_space<vmem>>, vector<1x8x4xbf16>
    %53 = vector.shape_cast %52 : vector<1x8x4xbf16> to vector<8x4xbf16>
    %c0_49 = arith.constant 0 : index
    %c25 = arith.constant 25 : index
    %54 = vector.load %arg2[%c0_49, %c25] : memref<4x512xbf16, #tpu.memory_space<vmem>>, vector<4x352xbf16>
    %cst_50 = arith.constant dense<0.000000e+00> : vector<8x352xf32>
    %55 = tpu.matmul %53, %54, %cst_50 {dimension_numbers = #tpu.dot_dimension_numbers<[1], [0], [0], [1], [0, 0, 1, 1], [], []>} : vector<8x4xbf16>, vector<4x352xbf16>, vector<8x352xf32> -> vector<8x352xf32>
    %56 = arith.addf %51, %55 : vector<8x352xf32>
    %c11 = arith.constant 11 : index
    %c0_51 = arith.constant 0 : index
    %c0_52 = arith.constant 0 : index
    %57 = vector.load %arg3[%c11, %c0_51, %c0_52] : memref<49x8x4xbf16, #tpu.memory_space<vmem>>, vector<1x8x4xbf16>
    %58 = vector.shape_cast %57 : vector<1x8x4xbf16> to vector<8x4xbf16>
    %c0_53 = arith.constant 0 : index
    %c26 = arith.constant 26 : index
    %59 = vector.load %arg2[%c0_53, %c26] : memref<4x512xbf16, #tpu.memory_space<vmem>>, vector<4x352xbf16>
    %cst_54 = arith.constant dense<0.000000e+00> : vector<8x352xf32>
    %60 = tpu.matmul %58, %59, %cst_54 {dimension_numbers = #tpu.dot_dimension_numbers<[1], [0], [0], [1], [0, 0, 1, 1], [], []>} : vector<8x4xbf16>, vector<4x352xbf16>, vector<8x352xf32> -> vector<8x352xf32>
    %61 = arith.addf %56, %60 : vector<8x352xf32>
    %c12 = arith.constant 12 : index
    %c0_55 = arith.constant 0 : index
    %c0_56 = arith.constant 0 : index
    %62 = vector.load %arg3[%c12, %c0_55, %c0_56] : memref<49x8x4xbf16, #tpu.memory_space<vmem>>, vector<1x8x4xbf16>
    %63 = vector.shape_cast %62 : vector<1x8x4xbf16> to vector<8x4xbf16>
    %c0_57 = arith.constant 0 : index
    %c27 = arith.constant 27 : index
    %64 = vector.load %arg2[%c0_57, %c27] : memref<4x512xbf16, #tpu.memory_space<vmem>>, vector<4x352xbf16>
    %cst_58 = arith.constant dense<0.000000e+00> : vector<8x352xf32>
    %65 = tpu.matmul %63, %64, %cst_58 {dimension_numbers = #tpu.dot_dimension_numbers<[1], [0], [0], [1], [0, 0, 1, 1], [], []>} : vector<8x4xbf16>, vector<4x352xbf16>, vector<8x352xf32> -> vector<8x352xf32>
    %66 = arith.addf %61, %65 : vector<8x352xf32>
    %c13 = arith.constant 13 : index
    %c0_59 = arith.constant 0 : index
    %c0_60 = arith.constant 0 : index
    %67 = vector.load %arg3[%c13, %c0_59, %c0_60] : memref<49x8x4xbf16, #tpu.memory_space<vmem>>, vector<1x8x4xbf16>
    %68 = vector.shape_cast %67 : vector<1x8x4xbf16> to vector<8x4xbf16>
    %c0_61 = arith.constant 0 : index
    %c28 = arith.constant 28 : index
    %69 = vector.load %arg2[%c0_61, %c28] : memref<4x512xbf16, #tpu.memory_space<vmem>>, vector<4x352xbf16>
    %cst_62 = arith.constant dense<0.000000e+00> : vector<8x352xf32>
    %70 = tpu.matmul %68, %69, %cst_62 {dimension_numbers = #tpu.dot_dimension_numbers<[1], [0], [0], [1], [0, 0, 1, 1], [], []>} : vector<8x4xbf16>, vector<4x352xbf16>, vector<8x352xf32> -> vector<8x352xf32>
    %71 = arith.addf %66, %70 : vector<8x352xf32>
    %c14 = arith.constant 14 : index
    %c0_63 = arith.constant 0 : index
    %c0_64 = arith.constant 0 : index
    %72 = vector.load %arg3[%c14, %c0_63, %c0_64] : memref<49x8x4xbf16, #tpu.memory_space<vmem>>, vector<1x8x4xbf16>
    %73 = vector.shape_cast %72 : vector<1x8x4xbf16> to vector<8x4xbf16>
    %c0_65 = arith.constant 0 : index
    %c44 = arith.constant 44 : index
    %74 = vector.load %arg2[%c0_65, %c44] : memref<4x512xbf16, #tpu.memory_space<vmem>>, vector<4x352xbf16>
    %cst_66 = arith.constant dense<0.000000e+00> : vector<8x352xf32>
    %75 = tpu.matmul %73, %74, %cst_66 {dimension_numbers = #tpu.dot_dimension_numbers<[1], [0], [0], [1], [0, 0, 1, 1], [], []>} : vector<8x4xbf16>, vector<4x352xbf16>, vector<8x352xf32> -> vector<8x352xf32>
    %76 = arith.addf %71, %75 : vector<8x352xf32>
    %c15 = arith.constant 15 : index
    %c0_67 = arith.constant 0 : index
    %c0_68 = arith.constant 0 : index
    %77 = vector.load %arg3[%c15, %c0_67, %c0_68] : memref<49x8x4xbf16, #tpu.memory_space<vmem>>, vector<1x8x4xbf16>
    %78 = vector.shape_cast %77 : vector<1x8x4xbf16> to vector<8x4xbf16>
    %c0_69 = arith.constant 0 : index
    %c45 = arith.constant 45 : index
    %79 = vector.load %arg2[%c0_69, %c45] : memref<4x512xbf16, #tpu.memory_space<vmem>>, vector<4x352xbf16>
    %cst_70 = arith.constant dense<0.000000e+00> : vector<8x352xf32>
    %80 = tpu.matmul %78, %79, %cst_70 {dimension_numbers = #tpu.dot_dimension_numbers<[1], [0], [0], [1], [0, 0, 1, 1], [], []>} : vector<8x4xbf16>, vector<4x352xbf16>, vector<8x352xf32> -> vector<8x352xf32>
    %81 = arith.addf %76, %80 : vector<8x352xf32>
    %c16 = arith.constant 16 : index
    %c0_71 = arith.constant 0 : index
    %c0_72 = arith.constant 0 : index
    %82 = vector.load %arg3[%c16, %c0_71, %c0_72] : memref<49x8x4xbf16, #tpu.memory_space<vmem>>, vector<1x8x4xbf16>
    %83 = vector.shape_cast %82 : vector<1x8x4xbf16> to vector<8x4xbf16>
    %c0_73 = arith.constant 0 : index
    %c46 = arith.constant 46 : index
    %84 = vector.load %arg2[%c0_73, %c46] : memref<4x512xbf16, #tpu.memory_space<vmem>>, vector<4x352xbf16>
    %cst_74 = arith.constant dense<0.000000e+00> : vector<8x352xf32>
    %85 = tpu.matmul %83, %84, %cst_74 {dimension_numbers = #tpu.dot_dimension_numbers<[1], [0], [0], [1], [0, 0, 1, 1], [], []>} : vector<8x4xbf16>, vector<4x352xbf16>, vector<8x352xf32> -> vector<8x352xf32>
    %86 = arith.addf %81, %85 : vector<8x352xf32>
    %c17 = arith.constant 17 : index
    %c0_75 = arith.constant 0 : index
    %c0_76 = arith.constant 0 : index
    %87 = vector.load %arg3[%c17, %c0_75, %c0_76] : memref<49x8x4xbf16, #tpu.memory_space<vmem>>, vector<1x8x4xbf16>
    %88 = vector.shape_cast %87 : vector<1x8x4xbf16> to vector<8x4xbf16>
    %c0_77 = arith.constant 0 : index
    %c47 = arith.constant 47 : index
    %89 = vector.load %arg2[%c0_77, %c47] : memref<4x512xbf16, #tpu.memory_space<vmem>>, vector<4x352xbf16>
    %cst_78 = arith.constant dense<0.000000e+00> : vector<8x352xf32>
    %90 = tpu.matmul %88, %89, %cst_78 {dimension_numbers = #tpu.dot_dimension_numbers<[1], [0], [0], [1], [0, 0, 1, 1], [], []>} : vector<8x4xbf16>, vector<4x352xbf16>, vector<8x352xf32> -> vector<8x352xf32>
    %91 = arith.addf %86, %90 : vector<8x352xf32>
    %c18 = arith.constant 18 : index
    %c0_79 = arith.constant 0 : index
    %c0_80 = arith.constant 0 : index
    %92 = vector.load %arg3[%c18, %c0_79, %c0_80] : memref<49x8x4xbf16, #tpu.memory_space<vmem>>, vector<1x8x4xbf16>
    %93 = vector.shape_cast %92 : vector<1x8x4xbf16> to vector<8x4xbf16>
    %c0_81 = arith.constant 0 : index
    %c48 = arith.constant 48 : index
    %94 = vector.load %arg2[%c0_81, %c48] : memref<4x512xbf16, #tpu.memory_space<vmem>>, vector<4x352xbf16>
    %cst_82 = arith.constant dense<0.000000e+00> : vector<8x352xf32>
    %95 = tpu.matmul %93, %94, %cst_82 {dimension_numbers = #tpu.dot_dimension_numbers<[1], [0], [0], [1], [0, 0, 1, 1], [], []>} : vector<8x4xbf16>, vector<4x352xbf16>, vector<8x352xf32> -> vector<8x352xf32>
    %96 = arith.addf %91, %95 : vector<8x352xf32>
    %c19 = arith.constant 19 : index
    %c0_83 = arith.constant 0 : index
    %c0_84 = arith.constant 0 : index
    %97 = vector.load %arg3[%c19, %c0_83, %c0_84] : memref<49x8x4xbf16, #tpu.memory_space<vmem>>, vector<1x8x4xbf16>
    %98 = vector.shape_cast %97 : vector<1x8x4xbf16> to vector<8x4xbf16>
    %c0_85 = arith.constant 0 : index
    %c49 = arith.constant 49 : index
    %99 = vector.load %arg2[%c0_85, %c49] : memref<4x512xbf16, #tpu.memory_space<vmem>>, vector<4x352xbf16>
    %cst_86 = arith.constant dense<0.000000e+00> : vector<8x352xf32>
    %100 = tpu.matmul %98, %99, %cst_86 {dimension_numbers = #tpu.dot_dimension_numbers<[1], [0], [0], [1], [0, 0, 1, 1], [], []>} : vector<8x4xbf16>, vector<4x352xbf16>, vector<8x352xf32> -> vector<8x352xf32>
    %101 = arith.addf %96, %100 : vector<8x352xf32>
    %c20 = arith.constant 20 : index
    %c0_87 = arith.constant 0 : index
    %c0_88 = arith.constant 0 : index
    %102 = vector.load %arg3[%c20, %c0_87, %c0_88] : memref<49x8x4xbf16, #tpu.memory_space<vmem>>, vector<1x8x4xbf16>
    %103 = vector.shape_cast %102 : vector<1x8x4xbf16> to vector<8x4xbf16>
    %c0_89 = arith.constant 0 : index
    %c50 = arith.constant 50 : index
    %104 = vector.load %arg2[%c0_89, %c50] : memref<4x512xbf16, #tpu.memory_space<vmem>>, vector<4x352xbf16>
    %cst_90 = arith.constant dense<0.000000e+00> : vector<8x352xf32>
    %105 = tpu.matmul %103, %104, %cst_90 {dimension_numbers = #tpu.dot_dimension_numbers<[1], [0], [0], [1], [0, 0, 1, 1], [], []>} : vector<8x4xbf16>, vector<4x352xbf16>, vector<8x352xf32> -> vector<8x352xf32>
    %106 = arith.addf %101, %105 : vector<8x352xf32>
    %c21 = arith.constant 21 : index
    %c0_91 = arith.constant 0 : index
    %c0_92 = arith.constant 0 : index
    %107 = vector.load %arg3[%c21, %c0_91, %c0_92] : memref<49x8x4xbf16, #tpu.memory_space<vmem>>, vector<1x8x4xbf16>
    %108 = vector.shape_cast %107 : vector<1x8x4xbf16> to vector<8x4xbf16>
    %c0_93 = arith.constant 0 : index
    %c66 = arith.constant 66 : index
    %109 = vector.load %arg2[%c0_93, %c66] : memref<4x512xbf16, #tpu.memory_space<vmem>>, vector<4x352xbf16>
    %cst_94 = arith.constant dense<0.000000e+00> : vector<8x352xf32>
    %110 = tpu.matmul %108, %109, %cst_94 {dimension_numbers = #tpu.dot_dimension_numbers<[1], [0], [0], [1], [0, 0, 1, 1], [], []>} : vector<8x4xbf16>, vector<4x352xbf16>, vector<8x352xf32> -> vector<8x352xf32>
    %111 = arith.addf %106, %110 : vector<8x352xf32>
    %c22_95 = arith.constant 22 : index
    %c0_96 = arith.constant 0 : index
    %c0_97 = arith.constant 0 : index
    %112 = vector.load %arg3[%c22_95, %c0_96, %c0_97] : memref<49x8x4xbf16, #tpu.memory_space<vmem>>, vector<1x8x4xbf16>
    %113 = vector.shape_cast %112 : vector<1x8x4xbf16> to vector<8x4xbf16>
    %c0_98 = arith.constant 0 : index
    %c67 = arith.constant 67 : index
    %114 = vector.load %arg2[%c0_98, %c67] : memref<4x512xbf16, #tpu.memory_space<vmem>>, vector<4x352xbf16>
    %cst_99 = arith.constant dense<0.000000e+00> : vector<8x352xf32>
    %115 = tpu.matmul %113, %114, %cst_99 {dimension_numbers = #tpu.dot_dimension_numbers<[1], [0], [0], [1], [0, 0, 1, 1], [], []>} : vector<8x4xbf16>, vector<4x352xbf16>, vector<8x352xf32> -> vector<8x352xf32>
    %116 = arith.addf %111, %115 : vector<8x352xf32>
    %c23_100 = arith.constant 23 : index
    %c0_101 = arith.constant 0 : index
    %c0_102 = arith.constant 0 : index
    %117 = vector.load %arg3[%c23_100, %c0_101, %c0_102] : memref<49x8x4xbf16, #tpu.memory_space<vmem>>, vector<1x8x4xbf16>
    %118 = vector.shape_cast %117 : vector<1x8x4xbf16> to vector<8x4xbf16>
    %c0_103 = arith.constant 0 : index
    %c68 = arith.constant 68 : index
    %119 = vector.load %arg2[%c0_103, %c68] : memref<4x512xbf16, #tpu.memory_space<vmem>>, vector<4x352xbf16>
    %cst_104 = arith.constant dense<0.000000e+00> : vector<8x352xf32>
    %120 = tpu.matmul %118, %119, %cst_104 {dimension_numbers = #tpu.dot_dimension_numbers<[1], [0], [0], [1], [0, 0, 1, 1], [], []>} : vector<8x4xbf16>, vector<4x352xbf16>, vector<8x352xf32> -> vector<8x352xf32>
    %121 = arith.addf %116, %120 : vector<8x352xf32>
    %c24_105 = arith.constant 24 : index
    %c0_106 = arith.constant 0 : index
    %c0_107 = arith.constant 0 : index
    %122 = vector.load %arg3[%c24_105, %c0_106, %c0_107] : memref<49x8x4xbf16, #tpu.memory_space<vmem>>, vector<1x8x4xbf16>
    %123 = vector.shape_cast %122 : vector<1x8x4xbf16> to vector<8x4xbf16>
    %c0_108 = arith.constant 0 : index
    %c69 = arith.constant 69 : index
    %124 = vector.load %arg2[%c0_108, %c69] : memref<4x512xbf16, #tpu.memory_space<vmem>>, vector<4x352xbf16>
    %cst_109 = arith.constant dense<0.000000e+00> : vector<8x352xf32>
    %125 = tpu.matmul %123, %124, %cst_109 {dimension_numbers = #tpu.dot_dimension_numbers<[1], [0], [0], [1], [0, 0, 1, 1], [], []>} : vector<8x4xbf16>, vector<4x352xbf16>, vector<8x352xf32> -> vector<8x352xf32>
    %126 = arith.addf %121, %125 : vector<8x352xf32>
    %c25_110 = arith.constant 25 : index
    %c0_111 = arith.constant 0 : index
    %c0_112 = arith.constant 0 : index
    %127 = vector.load %arg3[%c25_110, %c0_111, %c0_112] : memref<49x8x4xbf16, #tpu.memory_space<vmem>>, vector<1x8x4xbf16>
    %128 = vector.shape_cast %127 : vector<1x8x4xbf16> to vector<8x4xbf16>
    %c0_113 = arith.constant 0 : index
    %c70 = arith.constant 70 : index
    %129 = vector.load %arg2[%c0_113, %c70] : memref<4x512xbf16, #tpu.memory_space<vmem>>, vector<4x352xbf16>
    %cst_114 = arith.constant dense<0.000000e+00> : vector<8x352xf32>
    %130 = tpu.matmul %128, %129, %cst_114 {dimension_numbers = #tpu.dot_dimension_numbers<[1], [0], [0], [1], [0, 0, 1, 1], [], []>} : vector<8x4xbf16>, vector<4x352xbf16>, vector<8x352xf32> -> vector<8x352xf32>
    %131 = arith.addf %126, %130 : vector<8x352xf32>
    %c26_115 = arith.constant 26 : index
    %c0_116 = arith.constant 0 : index
    %c0_117 = arith.constant 0 : index
    %132 = vector.load %arg3[%c26_115, %c0_116, %c0_117] : memref<49x8x4xbf16, #tpu.memory_space<vmem>>, vector<1x8x4xbf16>
    %133 = vector.shape_cast %132 : vector<1x8x4xbf16> to vector<8x4xbf16>
    %c0_118 = arith.constant 0 : index
    %c71 = arith.constant 71 : index
    %134 = vector.load %arg2[%c0_118, %c71] : memref<4x512xbf16, #tpu.memory_space<vmem>>, vector<4x352xbf16>
    %cst_119 = arith.constant dense<0.000000e+00> : vector<8x352xf32>
    %135 = tpu.matmul %133, %134, %cst_119 {dimension_numbers = #tpu.dot_dimension_numbers<[1], [0], [0], [1], [0, 0, 1, 1], [], []>} : vector<8x4xbf16>, vector<4x352xbf16>, vector<8x352xf32> -> vector<8x352xf32>
    %136 = arith.addf %131, %135 : vector<8x352xf32>
    %c27_120 = arith.constant 27 : index
    %c0_121 = arith.constant 0 : index
    %c0_122 = arith.constant 0 : index
    %137 = vector.load %arg3[%c27_120, %c0_121, %c0_122] : memref<49x8x4xbf16, #tpu.memory_space<vmem>>, vector<1x8x4xbf16>
    %138 = vector.shape_cast %137 : vector<1x8x4xbf16> to vector<8x4xbf16>
    %c0_123 = arith.constant 0 : index
    %c72 = arith.constant 72 : index
    %139 = vector.load %arg2[%c0_123, %c72] : memref<4x512xbf16, #tpu.memory_space<vmem>>, vector<4x352xbf16>
    %cst_124 = arith.constant dense<0.000000e+00> : vector<8x352xf32>
    %140 = tpu.matmul %138, %139, %cst_124 {dimension_numbers = #tpu.dot_dimension_numbers<[1], [0], [0], [1], [0, 0, 1, 1], [], []>} : vector<8x4xbf16>, vector<4x352xbf16>, vector<8x352xf32> -> vector<8x352xf32>
    %141 = arith.addf %136, %140 : vector<8x352xf32>
    %c28_125 = arith.constant 28 : index
    %c0_126 = arith.constant 0 : index
    %c0_127 = arith.constant 0 : index
    %142 = vector.load %arg3[%c28_125, %c0_126, %c0_127] : memref<49x8x4xbf16, #tpu.memory_space<vmem>>, vector<1x8x4xbf16>
    %143 = vector.shape_cast %142 : vector<1x8x4xbf16> to vector<8x4xbf16>
    %c0_128 = arith.constant 0 : index
    %c88 = arith.constant 88 : index
    %144 = vector.load %arg2[%c0_128, %c88] : memref<4x512xbf16, #tpu.memory_space<vmem>>, vector<4x352xbf16>
    %cst_129 = arith.constant dense<0.000000e+00> : vector<8x352xf32>
    %145 = tpu.matmul %143, %144, %cst_129 {dimension_numbers = #tpu.dot_dimension_numbers<[1], [0], [0], [1], [0, 0, 1, 1], [], []>} : vector<8x4xbf16>, vector<4x352xbf16>, vector<8x352xf32> -> vector<8x352xf32>
    %146 = arith.addf %141, %145 : vector<8x352xf32>
    %c29 = arith.constant 29 : index
    %c0_130 = arith.constant 0 : index
    %c0_131 = arith.constant 0 : index
    %147 = vector.load %arg3[%c29, %c0_130, %c0_131] : memref<49x8x4xbf16, #tpu.memory_space<vmem>>, vector<1x8x4xbf16>
    %148 = vector.shape_cast %147 : vector<1x8x4xbf16> to vector<8x4xbf16>
    %c0_132 = arith.constant 0 : index
    %c89 = arith.constant 89 : index
    %149 = vector.load %arg2[%c0_132, %c89] : memref<4x512xbf16, #tpu.memory_space<vmem>>, vector<4x352xbf16>
    %cst_133 = arith.constant dense<0.000000e+00> : vector<8x352xf32>
    %150 = tpu.matmul %148, %149, %cst_133 {dimension_numbers = #tpu.dot_dimension_numbers<[1], [0], [0], [1], [0, 0, 1, 1], [], []>} : vector<8x4xbf16>, vector<4x352xbf16>, vector<8x352xf32> -> vector<8x352xf32>
    %151 = arith.addf %146, %150 : vector<8x352xf32>
    %c30 = arith.constant 30 : index
    %c0_134 = arith.constant 0 : index
    %c0_135 = arith.constant 0 : index
    %152 = vector.load %arg3[%c30, %c0_134, %c0_135] : memref<49x8x4xbf16, #tpu.memory_space<vmem>>, vector<1x8x4xbf16>
    %153 = vector.shape_cast %152 : vector<1x8x4xbf16> to vector<8x4xbf16>
    %c0_136 = arith.constant 0 : index
    %c90 = arith.constant 90 : index
    %154 = vector.load %arg2[%c0_136, %c90] : memref<4x512xbf16, #tpu.memory_space<vmem>>, vector<4x352xbf16>
    %cst_137 = arith.constant dense<0.000000e+00> : vector<8x352xf32>
    %155 = tpu.matmul %153, %154, %cst_137 {dimension_numbers = #tpu.dot_dimension_numbers<[1], [0], [0], [1], [0, 0, 1, 1], [], []>} : vector<8x4xbf16>, vector<4x352xbf16>, vector<8x352xf32> -> vector<8x352xf32>
    %156 = arith.addf %151, %155 : vector<8x352xf32>
    %c31 = arith.constant 31 : index
    %c0_138 = arith.constant 0 : index
    %c0_139 = arith.constant 0 : index
    %157 = vector.load %arg3[%c31, %c0_138, %c0_139] : memref<49x8x4xbf16, #tpu.memory_space<vmem>>, vector<1x8x4xbf16>
    %158 = vector.shape_cast %157 : vector<1x8x4xbf16> to vector<8x4xbf16>
    %c0_140 = arith.constant 0 : index
    %c91 = arith.constant 91 : index
    %159 = vector.load %arg2[%c0_140, %c91] : memref<4x512xbf16, #tpu.memory_space<vmem>>, vector<4x352xbf16>
    %cst_141 = arith.constant dense<0.000000e+00> : vector<8x352xf32>
    %160 = tpu.matmul %158, %159, %cst_141 {dimension_numbers = #tpu.dot_dimension_numbers<[1], [0], [0], [1], [0, 0, 1, 1], [], []>} : vector<8x4xbf16>, vector<4x352xbf16>, vector<8x352xf32> -> vector<8x352xf32>
    %161 = arith.addf %156, %160 : vector<8x352xf32>
    %c32 = arith.constant 32 : index
    %c0_142 = arith.constant 0 : index
    %c0_143 = arith.constant 0 : index
    %162 = vector.load %arg3[%c32, %c0_142, %c0_143] : memref<49x8x4xbf16, #tpu.memory_space<vmem>>, vector<1x8x4xbf16>
    %163 = vector.shape_cast %162 : vector<1x8x4xbf16> to vector<8x4xbf16>
    %c0_144 = arith.constant 0 : index
    %c92 = arith.constant 92 : index
    %164 = vector.load %arg2[%c0_144, %c92] : memref<4x512xbf16, #tpu.memory_space<vmem>>, vector<4x352xbf16>
    %cst_145 = arith.constant dense<0.000000e+00> : vector<8x352xf32>
    %165 = tpu.matmul %163, %164, %cst_145 {dimension_numbers = #tpu.dot_dimension_numbers<[1], [0], [0], [1], [0, 0, 1, 1], [], []>} : vector<8x4xbf16>, vector<4x352xbf16>, vector<8x352xf32> -> vector<8x352xf32>
    %166 = arith.addf %161, %165 : vector<8x352xf32>
    %c33 = arith.constant 33 : index
    %c0_146 = arith.constant 0 : index
    %c0_147 = arith.constant 0 : index
    %167 = vector.load %arg3[%c33, %c0_146, %c0_147] : memref<49x8x4xbf16, #tpu.memory_space<vmem>>, vector<1x8x4xbf16>
    %168 = vector.shape_cast %167 : vector<1x8x4xbf16> to vector<8x4xbf16>
    %c0_148 = arith.constant 0 : index
    %c93 = arith.constant 93 : index
    %169 = vector.load %arg2[%c0_148, %c93] : memref<4x512xbf16, #tpu.memory_space<vmem>>, vector<4x352xbf16>
    %cst_149 = arith.constant dense<0.000000e+00> : vector<8x352xf32>
    %170 = tpu.matmul %168, %169, %cst_149 {dimension_numbers = #tpu.dot_dimension_numbers<[1], [0], [0], [1], [0, 0, 1, 1], [], []>} : vector<8x4xbf16>, vector<4x352xbf16>, vector<8x352xf32> -> vector<8x352xf32>
    %171 = arith.addf %166, %170 : vector<8x352xf32>
    %c34 = arith.constant 34 : index
    %c0_150 = arith.constant 0 : index
    %c0_151 = arith.constant 0 : index
    %172 = vector.load %arg3[%c34, %c0_150, %c0_151] : memref<49x8x4xbf16, #tpu.memory_space<vmem>>, vector<1x8x4xbf16>
    %173 = vector.shape_cast %172 : vector<1x8x4xbf16> to vector<8x4xbf16>
    %c0_152 = arith.constant 0 : index
    %c94 = arith.constant 94 : index
    %174 = vector.load %arg2[%c0_152, %c94] : memref<4x512xbf16, #tpu.memory_space<vmem>>, vector<4x352xbf16>
    %cst_153 = arith.constant dense<0.000000e+00> : vector<8x352xf32>
    %175 = tpu.matmul %173, %174, %cst_153 {dimension_numbers = #tpu.dot_dimension_numbers<[1], [0], [0], [1], [0, 0, 1, 1], [], []>} : vector<8x4xbf16>, vector<4x352xbf16>, vector<8x352xf32> -> vector<8x352xf32>
    %176 = arith.addf %171, %175 : vector<8x352xf32>
    %c35 = arith.constant 35 : index
    %c0_154 = arith.constant 0 : index
    %c0_155 = arith.constant 0 : index
    %177 = vector.load %arg3[%c35, %c0_154, %c0_155] : memref<49x8x4xbf16, #tpu.memory_space<vmem>>, vector<1x8x4xbf16>
    %178 = vector.shape_cast %177 : vector<1x8x4xbf16> to vector<8x4xbf16>
    %c0_156 = arith.constant 0 : index
    %c110 = arith.constant 110 : index
    %179 = vector.load %arg2[%c0_156, %c110] : memref<4x512xbf16, #tpu.memory_space<vmem>>, vector<4x352xbf16>
    %cst_157 = arith.constant dense<0.000000e+00> : vector<8x352xf32>
    %180 = tpu.matmul %178, %179, %cst_157 {dimension_numbers = #tpu.dot_dimension_numbers<[1], [0], [0], [1], [0, 0, 1, 1], [], []>} : vector<8x4xbf16>, vector<4x352xbf16>, vector<8x352xf32> -> vector<8x352xf32>
    %181 = arith.addf %176, %180 : vector<8x352xf32>
    %c36 = arith.constant 36 : index
    %c0_158 = arith.constant 0 : index
    %c0_159 = arith.constant 0 : index
    %182 = vector.load %arg3[%c36, %c0_158, %c0_159] : memref<49x8x4xbf16, #tpu.memory_space<vmem>>, vector<1x8x4xbf16>
    %183 = vector.shape_cast %182 : vector<1x8x4xbf16> to vector<8x4xbf16>
    %c0_160 = arith.constant 0 : index
    %c111 = arith.constant 111 : index
    %184 = vector.load %arg2[%c0_160, %c111] : memref<4x512xbf16, #tpu.memory_space<vmem>>, vector<4x352xbf16>
    %cst_161 = arith.constant dense<0.000000e+00> : vector<8x352xf32>
    %185 = tpu.matmul %183, %184, %cst_161 {dimension_numbers = #tpu.dot_dimension_numbers<[1], [0], [0], [1], [0, 0, 1, 1], [], []>} : vector<8x4xbf16>, vector<4x352xbf16>, vector<8x352xf32> -> vector<8x352xf32>
    %186 = arith.addf %181, %185 : vector<8x352xf32>
    %c37 = arith.constant 37 : index
    %c0_162 = arith.constant 0 : index
    %c0_163 = arith.constant 0 : index
    %187 = vector.load %arg3[%c37, %c0_162, %c0_163] : memref<49x8x4xbf16, #tpu.memory_space<vmem>>, vector<1x8x4xbf16>
    %188 = vector.shape_cast %187 : vector<1x8x4xbf16> to vector<8x4xbf16>
    %c0_164 = arith.constant 0 : index
    %c112 = arith.constant 112 : index
    %189 = vector.load %arg2[%c0_164, %c112] : memref<4x512xbf16, #tpu.memory_space<vmem>>, vector<4x352xbf16>
    %cst_165 = arith.constant dense<0.000000e+00> : vector<8x352xf32>
    %190 = tpu.matmul %188, %189, %cst_165 {dimension_numbers = #tpu.dot_dimension_numbers<[1], [0], [0], [1], [0, 0, 1, 1], [], []>} : vector<8x4xbf16>, vector<4x352xbf16>, vector<8x352xf32> -> vector<8x352xf32>
    %191 = arith.addf %186, %190 : vector<8x352xf32>
    %c38 = arith.constant 38 : index
    %c0_166 = arith.constant 0 : index
    %c0_167 = arith.constant 0 : index
    %192 = vector.load %arg3[%c38, %c0_166, %c0_167] : memref<49x8x4xbf16, #tpu.memory_space<vmem>>, vector<1x8x4xbf16>
    %193 = vector.shape_cast %192 : vector<1x8x4xbf16> to vector<8x4xbf16>
    %c0_168 = arith.constant 0 : index
    %c113 = arith.constant 113 : index
    %194 = vector.load %arg2[%c0_168, %c113] : memref<4x512xbf16, #tpu.memory_space<vmem>>, vector<4x352xbf16>
    %cst_169 = arith.constant dense<0.000000e+00> : vector<8x352xf32>
    %195 = tpu.matmul %193, %194, %cst_169 {dimension_numbers = #tpu.dot_dimension_numbers<[1], [0], [0], [1], [0, 0, 1, 1], [], []>} : vector<8x4xbf16>, vector<4x352xbf16>, vector<8x352xf32> -> vector<8x352xf32>
    %196 = arith.addf %191, %195 : vector<8x352xf32>
    %c39 = arith.constant 39 : index
    %c0_170 = arith.constant 0 : index
    %c0_171 = arith.constant 0 : index
    %197 = vector.load %arg3[%c39, %c0_170, %c0_171] : memref<49x8x4xbf16, #tpu.memory_space<vmem>>, vector<1x8x4xbf16>
    %198 = vector.shape_cast %197 : vector<1x8x4xbf16> to vector<8x4xbf16>
    %c0_172 = arith.constant 0 : index
    %c114 = arith.constant 114 : index
    %199 = vector.load %arg2[%c0_172, %c114] : memref<4x512xbf16, #tpu.memory_space<vmem>>, vector<4x352xbf16>
    %cst_173 = arith.constant dense<0.000000e+00> : vector<8x352xf32>
    %200 = tpu.matmul %198, %199, %cst_173 {dimension_numbers = #tpu.dot_dimension_numbers<[1], [0], [0], [1], [0, 0, 1, 1], [], []>} : vector<8x4xbf16>, vector<4x352xbf16>, vector<8x352xf32> -> vector<8x352xf32>
    %201 = arith.addf %196, %200 : vector<8x352xf32>
    %c40 = arith.constant 40 : index
    %c0_174 = arith.constant 0 : index
    %c0_175 = arith.constant 0 : index
    %202 = vector.load %arg3[%c40, %c0_174, %c0_175] : memref<49x8x4xbf16, #tpu.memory_space<vmem>>, vector<1x8x4xbf16>
    %203 = vector.shape_cast %202 : vector<1x8x4xbf16> to vector<8x4xbf16>
    %c0_176 = arith.constant 0 : index
    %c115 = arith.constant 115 : index
    %204 = vector.load %arg2[%c0_176, %c115] : memref<4x512xbf16, #tpu.memory_space<vmem>>, vector<4x352xbf16>
    %cst_177 = arith.constant dense<0.000000e+00> : vector<8x352xf32>
    %205 = tpu.matmul %203, %204, %cst_177 {dimension_numbers = #tpu.dot_dimension_numbers<[1], [0], [0], [1], [0, 0, 1, 1], [], []>} : vector<8x4xbf16>, vector<4x352xbf16>, vector<8x352xf32> -> vector<8x352xf32>
    %206 = arith.addf %201, %205 : vector<8x352xf32>
    %c41 = arith.constant 41 : index
    %c0_178 = arith.constant 0 : index
    %c0_179 = arith.constant 0 : index
    %207 = vector.load %arg3[%c41, %c0_178, %c0_179] : memref<49x8x4xbf16, #tpu.memory_space<vmem>>, vector<1x8x4xbf16>
    %208 = vector.shape_cast %207 : vector<1x8x4xbf16> to vector<8x4xbf16>
    %c0_180 = arith.constant 0 : index
    %c116 = arith.constant 116 : index
    %209 = vector.load %arg2[%c0_180, %c116] : memref<4x512xbf16, #tpu.memory_space<vmem>>, vector<4x352xbf16>
    %cst_181 = arith.constant dense<0.000000e+00> : vector<8x352xf32>
    %210 = tpu.matmul %208, %209, %cst_181 {dimension_numbers = #tpu.dot_dimension_numbers<[1], [0], [0], [1], [0, 0, 1, 1], [], []>} : vector<8x4xbf16>, vector<4x352xbf16>, vector<8x352xf32> -> vector<8x352xf32>
    %211 = arith.addf %206, %210 : vector<8x352xf32>
    %c42 = arith.constant 42 : index
    %c0_182 = arith.constant 0 : index
    %c0_183 = arith.constant 0 : index
    %212 = vector.load %arg3[%c42, %c0_182, %c0_183] : memref<49x8x4xbf16, #tpu.memory_space<vmem>>, vector<1x8x4xbf16>
    %213 = vector.shape_cast %212 : vector<1x8x4xbf16> to vector<8x4xbf16>
    %c0_184 = arith.constant 0 : index
    %c132 = arith.constant 132 : index
    %214 = vector.load %arg2[%c0_184, %c132] : memref<4x512xbf16, #tpu.memory_space<vmem>>, vector<4x352xbf16>
    %cst_185 = arith.constant dense<0.000000e+00> : vector<8x352xf32>
    %215 = tpu.matmul %213, %214, %cst_185 {dimension_numbers = #tpu.dot_dimension_numbers<[1], [0], [0], [1], [0, 0, 1, 1], [], []>} : vector<8x4xbf16>, vector<4x352xbf16>, vector<8x352xf32> -> vector<8x352xf32>
    %216 = arith.addf %211, %215 : vector<8x352xf32>
    %c43 = arith.constant 43 : index
    %c0_186 = arith.constant 0 : index
    %c0_187 = arith.constant 0 : index
    %217 = vector.load %arg3[%c43, %c0_186, %c0_187] : memref<49x8x4xbf16, #tpu.memory_space<vmem>>, vector<1x8x4xbf16>
    %218 = vector.shape_cast %217 : vector<1x8x4xbf16> to vector<8x4xbf16>
    %c0_188 = arith.constant 0 : index
    %c133 = arith.constant 133 : index
    %219 = vector.load %arg2[%c0_188, %c133] : memref<4x512xbf16, #tpu.memory_space<vmem>>, vector<4x352xbf16>
    %cst_189 = arith.constant dense<0.000000e+00> : vector<8x352xf32>
    %220 = tpu.matmul %218, %219, %cst_189 {dimension_numbers = #tpu.dot_dimension_numbers<[1], [0], [0], [1], [0, 0, 1, 1], [], []>} : vector<8x4xbf16>, vector<4x352xbf16>, vector<8x352xf32> -> vector<8x352xf32>
    %221 = arith.addf %216, %220 : vector<8x352xf32>
    %c44_190 = arith.constant 44 : index
    %c0_191 = arith.constant 0 : index
    %c0_192 = arith.constant 0 : index
    %222 = vector.load %arg3[%c44_190, %c0_191, %c0_192] : memref<49x8x4xbf16, #tpu.memory_space<vmem>>, vector<1x8x4xbf16>
    %223 = vector.shape_cast %222 : vector<1x8x4xbf16> to vector<8x4xbf16>
    %c0_193 = arith.constant 0 : index
    %c134 = arith.constant 134 : index
    %224 = vector.load %arg2[%c0_193, %c134] : memref<4x512xbf16, #tpu.memory_space<vmem>>, vector<4x352xbf16>
    %cst_194 = arith.constant dense<0.000000e+00> : vector<8x352xf32>
    %225 = tpu.matmul %223, %224, %cst_194 {dimension_numbers = #tpu.dot_dimension_numbers<[1], [0], [0], [1], [0, 0, 1, 1], [], []>} : vector<8x4xbf16>, vector<4x352xbf16>, vector<8x352xf32> -> vector<8x352xf32>
    %226 = arith.addf %221, %225 : vector<8x352xf32>
    %c45_195 = arith.constant 45 : index
    %c0_196 = arith.constant 0 : index
    %c0_197 = arith.constant 0 : index
    %227 = vector.load %arg3[%c45_195, %c0_196, %c0_197] : memref<49x8x4xbf16, #tpu.memory_space<vmem>>, vector<1x8x4xbf16>
    %228 = vector.shape_cast %227 : vector<1x8x4xbf16> to vector<8x4xbf16>
    %c0_198 = arith.constant 0 : index
    %c135 = arith.constant 135 : index
    %229 = vector.load %arg2[%c0_198, %c135] : memref<4x512xbf16, #tpu.memory_space<vmem>>, vector<4x352xbf16>
    %cst_199 = arith.constant dense<0.000000e+00> : vector<8x352xf32>
    %230 = tpu.matmul %228, %229, %cst_199 {dimension_numbers = #tpu.dot_dimension_numbers<[1], [0], [0], [1], [0, 0, 1, 1], [], []>} : vector<8x4xbf16>, vector<4x352xbf16>, vector<8x352xf32> -> vector<8x352xf32>
    %231 = arith.addf %226, %230 : vector<8x352xf32>
    %c46_200 = arith.constant 46 : index
    %c0_201 = arith.constant 0 : index
    %c0_202 = arith.constant 0 : index
    %232 = vector.load %arg3[%c46_200, %c0_201, %c0_202] : memref<49x8x4xbf16, #tpu.memory_space<vmem>>, vector<1x8x4xbf16>
    %233 = vector.shape_cast %232 : vector<1x8x4xbf16> to vector<8x4xbf16>
    %c0_203 = arith.constant 0 : index
    %c136 = arith.constant 136 : index
    %234 = vector.load %arg2[%c0_203, %c136] : memref<4x512xbf16, #tpu.memory_space<vmem>>, vector<4x352xbf16>
    %cst_204 = arith.constant dense<0.000000e+00> : vector<8x352xf32>
    %235 = tpu.matmul %233, %234, %cst_204 {dimension_numbers = #tpu.dot_dimension_numbers<[1], [0], [0], [1], [0, 0, 1, 1], [], []>} : vector<8x4xbf16>, vector<4x352xbf16>, vector<8x352xf32> -> vector<8x352xf32>
    %236 = arith.addf %231, %235 : vector<8x352xf32>
    %c47_205 = arith.constant 47 : index
    %c0_206 = arith.constant 0 : index
    %c0_207 = arith.constant 0 : index
    %237 = vector.load %arg3[%c47_205, %c0_206, %c0_207] : memref<49x8x4xbf16, #tpu.memory_space<vmem>>, vector<1x8x4xbf16>
    %238 = vector.shape_cast %237 : vector<1x8x4xbf16> to vector<8x4xbf16>
    %c0_208 = arith.constant 0 : index
    %c137 = arith.constant 137 : index
    %239 = vector.load %arg2[%c0_208, %c137] : memref<4x512xbf16, #tpu.memory_space<vmem>>, vector<4x352xbf16>
    %cst_209 = arith.constant dense<0.000000e+00> : vector<8x352xf32>
    %240 = tpu.matmul %238, %239, %cst_209 {dimension_numbers = #tpu.dot_dimension_numbers<[1], [0], [0], [1], [0, 0, 1, 1], [], []>} : vector<8x4xbf16>, vector<4x352xbf16>, vector<8x352xf32> -> vector<8x352xf32>
    %241 = arith.addf %236, %240 : vector<8x352xf32>
    %c48_210 = arith.constant 48 : index
    %c0_211 = arith.constant 0 : index
    %c0_212 = arith.constant 0 : index
    %242 = vector.load %arg3[%c48_210, %c0_211, %c0_212] : memref<49x8x4xbf16, #tpu.memory_space<vmem>>, vector<1x8x4xbf16>
    %243 = vector.shape_cast %242 : vector<1x8x4xbf16> to vector<8x4xbf16>
    %c0_213 = arith.constant 0 : index
    %c138 = arith.constant 138 : index
    %244 = vector.load %arg2[%c0_213, %c138] : memref<4x512xbf16, #tpu.memory_space<vmem>>, vector<4x352xbf16>
    %cst_214 = arith.constant dense<0.000000e+00> : vector<8x352xf32>
    %245 = tpu.matmul %243, %244, %cst_214 {dimension_numbers = #tpu.dot_dimension_numbers<[1], [0], [0], [1], [0, 0, 1, 1], [], []>} : vector<8x4xbf16>, vector<4x352xbf16>, vector<8x352xf32> -> vector<8x352xf32>
    %246 = arith.addf %241, %245 : vector<8x352xf32>
    %c0_215 = arith.constant 0 : index
    %c0_216 = arith.constant 0 : index
    %247 = vector.load %arg6[%c0_215, %c0_216] : memref<8x352xf32, #tpu.memory_space<vmem>>, vector<8x352xf32>
    %248 = arith.addf %247, %246 : vector<8x352xf32>
    %c0_217 = arith.constant 0 : index
    %c0_218 = arith.constant 0 : index
    %249 = vector.load %arg6[%c0_217, %c0_218] : memref<8x352xf32, #tpu.memory_space<vmem>>, vector<8x352xf32>
    tpu.vector_store %arg6[%c0_217, %c0_218], %248 {strides = array<i32>} : memref<8x352xf32, #tpu.memory_space<vmem>>, vector<8x352xf32>,
    %c0_i32_219 = arith.constant 0 : i32
    %250 = arith.cmpi eq, %arg1, %c0_i32_219 : i32
    %251 = arith.extui %250 : i1 to i32
    %c0_i32_220 = arith.constant 0 : i32
    %252 = arith.cmpi ne, %251, %c0_i32_220 : i32
    scf.if %252 {
      %c0_221 = arith.constant 0 : index
      %c0_222 = arith.constant 0 : index
      %253 = vector.load %arg6[%c0_221, %c0_222] : memref<8x352xf32, #tpu.memory_space<vmem>>, vector<8x352xf32>
      %c0_223 = arith.constant 0 : index
      %c0_224 = arith.constant 0 : index
      %254 = vector.load %arg4[%c0_223, %c0_224] : memref<1x352xf32, #tpu.memory_space<vmem>>, vector<1x352xf32>
      %255 = vector.broadcast %254 : vector<1x352xf32> to vector<8x352xf32>
      %256 = arith.mulf %253, %255 : vector<8x352xf32>
      %cst_225 = arith.constant dense<0.000000e+00> : vector<8xf32>
      %257 = vector.multi_reduction <add>, %256, %cst_225 [1] : vector<8x352xf32> to vector<8xf32>
      %258 = vector.shape_cast %257 : vector<8xf32> to vector<8x1xf32>
      %cst_226 = arith.constant 3.906250e-03 : f32
      %259 = vector.broadcast %cst_226 : f32 to vector<8x1xf32>
      %260 = arith.mulf %258, %259 : vector<8x1xf32>
      %261 = arith.mulf %256, %253 : vector<8x352xf32>
      %cst_227 = arith.constant dense<0.000000e+00> : vector<8xf32>
      %262 = vector.multi_reduction <add>, %261, %cst_227 [1] : vector<8x352xf32> to vector<8xf32>
      %263 = vector.shape_cast %262 : vector<8xf32> to vector<8x1xf32>
      %cst_228 = arith.constant 3.906250e-03 : f32
      %264 = vector.broadcast %cst_228 : f32 to vector<8x1xf32>
      %265 = arith.mulf %263, %264 : vector<8x1xf32>
      %266 = arith.mulf %260, %260 : vector<8x1xf32>
      %267 = arith.subf %265, %266 : vector<8x1xf32>
      %cst_229 = arith.constant 0.000000e+00 : f32
      %268 = vector.broadcast %cst_229 : f32 to vector<8x1xf32>
      %269 = arith.maximumf %267, %268 : vector<8x1xf32>
      %270 = vector.broadcast %260 : vector<8x1xf32> to vector<8x352xf32>
      %271 = arith.subf %253, %270 : vector<8x352xf32>
      %cst_230 = arith.constant 9.99999974E-6 : f32
      %272 = vector.broadcast %cst_230 : f32 to vector<8x1xf32>
      %273 = arith.addf %269, %272 : vector<8x1xf32>
      %274 = math.rsqrt %273 : vector<8x1xf32>
      %275 = vector.broadcast %274 : vector<8x1xf32> to vector<8x352xf32>
      %276 = arith.mulf %271, %275 : vector<8x352xf32>
      %cst_231 = arith.constant 0.000000e+00 : f32
      %277 = vector.broadcast %cst_231 : f32 to vector<8x352xf32>
      %278 = arith.maximumf %276, %277 : vector<8x352xf32>
      %279 = arith.truncf %278 : vector<8x352xf32> to vector<8x352xbf16>
      %c0_232 = arith.constant 0 : index
      %c0_233 = arith.constant 0 : index
      %280 = vector.load %arg5[%c0_232, %c0_233] : memref<8x352xbf16, #tpu.memory_space<vmem>>, vector<8x352xbf16>
      tpu.vector_store %arg5[%c0_232, %c0_233], %279 {strides = array<i32>} : memref<8x352xbf16, #tpu.memory_space<vmem>>, vector<8x352xbf16>,
    } else {
    }
    return
  }
  func.func @transform_0(%arg0: i32, %arg1: i32) -> (i32, i32) {
    %c0_i32 = arith.constant 0 : i32
    %c0_i32_0 = arith.constant 0 : i32
    return %arg1, %c0_i32 : i32, i32
  }
  func.func @transform_1(%arg0: i32, %arg1: i32) -> (i32, i32, i32) {
    %c0_i32 = arith.constant 0 : i32
    %c0_i32_0 = arith.constant 0 : i32
    return %c0_i32, %arg0, %arg1 : i32, i32, i32
  }
  func.func @transform_2(%arg0: i32, %arg1: i32) -> (i32, i32) {
    %c0_i32 = arith.constant 0 : i32
    %c0_i32_0 = arith.constant 0 : i32
    %c0_i32_1 = arith.constant 0 : i32
    return %c0_i32, %c0_i32_0 : i32, i32
  }
  func.func @transform_3(%arg0: i32, %arg1: i32) -> (i32, i32) {
    %c0_i32 = arith.constant 0 : i32
    %c0_i32_0 = arith.constant 0 : i32
    return %arg0, %c0_i32 : i32, i32
  }
}

</mosaic_0001>

<bundles_post_ra>
// kernel: tpu_custom_call.1
= control target key start
LH: loop header
LB: loop body
LE: loop exit
PB: predicated region body
PF: predicated region fallthrough
CT: control target
= control target key end

     0   :  { %v33_v1 = vlaneseq  ;;  %v7010_v2 = vmov 1983009808   ;;  %s8443_s0 = inlined_call_operand.vmem [shape: bf16[4,512], index: 0, kind: input, shape index: {}]   ;;  %s8444_s1 = inlined_call_operand.vmem [shape: bf16[49,8,4], index: 1, kind: input, shape index: {}]   ;;  %s8445_s2 = inlined_call_operand.vmem [shape: f32[1,352], index: 2, kind: input, shape index: {}]   ;;  %s8446_s3 = inlined_call_operand.hbm [shape: bf16[8,352], index: 3, kind: output, shape index: {}]  }
   0x1   :  { %v25_v0 = vld [vmem:[%s8443_s0] sm:$0x3f]  ;;  %v31_v3 = vunpack.c.l.s4 %v7010_v2 }
   0x2   :  { %v7083_v4 = vshrl.u32 %v33_v1, 7  ;;  %v29_v6 = vcombine.high %v25_v0, %v25_v0  ;;  %v244_v8 = vld [vmem:[%s8443_s0] sm:$0x3f] }
   0x3   :  { %v32_v5 = vunpack.c.0.s8 %v31_v3 }
   0x5   :  { %v7086_v7 = vsub.s32 %v32_v5, %v7083_v4 }
   0x7   :  { %v7092_v9 = vrot.slane %v25_v0, %v7086_v7  ;;  %v7095_v10 = vrot.slane %v29_v6, %v7086_v7 }
   0x8   :  { %8 = vsyncpa [#allocation4], 0  ;;  %s7011_s16 = smov 127   ;;  %v253_v12 = vrot.slane %v244_v8, %v7086_v7  ;;  %v246_v13 = vcombine.high %v244_v8, %v244_v8  ;;  %v369_v14 = vld [vmem:[%s8443_s0] sm:$0x3f]  ;;  %v7012_v15 = vmov 0.0  }
   0x9   :  { %45 = vrot.lane.b32.xlu0 %v7092_v9, %s7011_s16  ;;  %49 = vrot.lane.b32.xlu1 %v7095_v10, %s7011_s16  ;;  %v7101_v11 = vcombine.high %v7092_v9, %v7092_v9  ;;  %s7013_s19 = smov 126   ;;  %v378_v18 = vrot.slane %v369_v14, %v7086_v7  ;;  %v371_v20 = vcombine.high %v369_v14, %v369_v14  ;;  %v494_v21 = vld [vmem:[%s8443_s0] sm:$0x3f]  ;;  %vm7014_vm0 = vmmov 0   ;;  %s7016_s22 = smov 125  }
   0xa   :  { %6618 = vmatprep.subr.bf16.mxu1 %v7012_v15  ;;  %v261_v16 = vcombine.high %v253_v12, %v253_v12  ;;  %v260_v17 = vrot.slane %v246_v13, %v7086_v7  ;;  %6620 = vmatprep.mubr.msk.bf16.mxu1 %vm7014_vm0, %v7012_v15  ;;  %v7015_v22 = vmov 0   ;;  %v503_v24 = vrot.slane %v494_v21, %v7086_v7  ;;  %v619_v26 = vld [vmem:[%s8443_s0] sm:$0x3f]  ;;  %s7017_s25 = smov 124   ;;  %s7018_s28 = smov 123  }
   0xb   :  { %v386_v19 = vcombine.high %v378_v18, %v378_v18  ;;  %100 = vmatprep.mubr.bf16.mxu0 %v7015_v22  ;;  %v385_v23 = vrot.slane %v371_v20, %v7086_v7  ;;  %v496_v25 = vcombine.high %v494_v21, %v494_v21  ;;  %v628_v29 = vrot.slane %v619_v26, %v7086_v7  ;;  %v744_v32 = vld [vmem:[%s8443_s0] sm:$0x3f]  ;;  %s7019_s4 = smov 122   ;;  %s7020_s7 = smov 106  }
   0xc   :  { %v511_v27 = vcombine.high %v503_v24, %v503_v24  ;;  %v621_v31 = vcombine.high %v619_v26, %v619_v26  ;;  %v753_v34 = vrot.slane %v744_v32, %v7086_v7  ;;  %v746_v35 = vcombine.high %v744_v32, %v744_v32  ;;  %v869_v36 = vld [vmem:[%s8443_s0] sm:$0x3f]  ;;  %s7021_s10 = smov 105   ;;  %s7022_s13 = smov 104  }
   0xd   :  { %47 = vrot.lane.b32.xlu0 %v7101_v11, %s7011_s16  ;;  %262 = vrot.lane.b32.xlu1 %v253_v12, %s7013_s19  ;;  %v510_v28 = vrot.slane %v496_v25, %v7086_v7  ;;  %v636_v30 = vcombine.high %v628_v29, %v628_v29  ;;  %v878_v39 = vrot.slane %v869_v36, %v7086_v7  ;;  %v994_v42 = vld [vmem:[%s8443_s0] sm:$0x3f]  ;;  %s7023_s16 = smov 103   ;;  %s7026_s26 = smov 100   ;;  %vm58_vm1 = vcmask 1041408  }
   0xe   :  { %v635_v33 = vrot.slane %v621_v31, %v7086_v7  ;;  %v761_v37 = vcombine.high %v753_v34, %v753_v34  ;;  %v760_v38 = vrot.slane %v746_v35, %v7086_v7  ;;  %v871_v41 = vcombine.high %v869_v36, %v869_v36  ;;  %v1119_v46 = vld [vmem:[%s8443_s0] sm:$0x3f]  ;;  %s7027_s27 = smov 84   ;;  %s7028_s29 = smov 83  }
   0xf   :  { %v886_v40 = vcombine.high %v878_v39, %v878_v39  ;;  %v1003_v44 = vrot.slane %v994_v42, %v7086_v7  ;;  %v996_v45 = vcombine.high %v994_v42, %v994_v42  ;;  %v1128_v49 = vrot.slane %v1119_v46, %v7086_v7  ;;  %v1244_v52 = vld [vmem:[%s8443_s0] sm:$0x3f]  ;;  %s7029_s30 = smov 82   ;;  %s7030_s5 = smov 81   ;;  %v6328_v42 = vld [vmem:[%s8444_s1 + $0x8] sm:$0xf] }
  0x10   :  { %v885_v43 = vrot.slane %v871_v41, %v7086_v7  ;;  %v1121_v51 = vcombine.high %v1119_v46, %v1119_v46  ;;  %v1253_v54 = vrot.slane %v1244_v52, %v7086_v7  ;;  %v1246_v55 = vcombine.high %v1244_v52, %v1244_v52  ;;  %v1369_v56 = vld [vmem:[%s8443_s0] sm:$0x3f]  ;;  %s7031_s6 = smov 80   ;;  %s7032_s9 = smov 79  }
  0x11   :  { %264 = vrot.lane.b32.xlu0 %v261_v16, %s7013_s19  ;;  %266 = vrot.lane.b32.xlu1 %v260_v17, %s7013_s19  ;;  %v1011_v47 = vcombine.high %v1003_v44, %v1003_v44  ;;  %v1010_v48 = vrot.slane %v996_v45, %v7086_v7  ;;  %v1136_v50 = vcombine.high %v1128_v49, %v1128_v49  ;;  %v1494_v62 = vld [vmem:[%s8443_s0] sm:$0x3f]  ;;  %s7024_s19 = smov 102   ;;  %vm54_vm2 = vcmask 31744   ;;  %s7033_s12 = smov 78  }
  0x12   :  { %v1135_v53 = vrot.slane %v1121_v51, %v7086_v7  ;;  %v1261_v57 = vcombine.high %v1253_v54, %v1253_v54  ;;  %v1260_v58 = vrot.slane %v1246_v55, %v7086_v7  ;;  %v1378_v59 = vrot.slane %v1369_v56, %v7086_v7  ;;  %v1619_v2 = vld [vmem:[%s8443_s0] sm:$0x3f]  ;;  %s7034_s15 = smov 62   ;;  %v6332_v51 = vld [vmem:[%s8444_s1 + $0xc] sm:$0xf]  ;;  %s7035_s18 = smov 61  }
  0x13   :  { %v1371_v61 = vcombine.high %v1369_v56, %v1369_v56  ;;  %v1503_v0 = vrot.slane %v1494_v62, %v7086_v7  ;;  %v1496_v1 = vcombine.high %v1494_v62, %v1494_v62  ;;  %v1628_v6 = vrot.slane %v1619_v2, %v7086_v7  ;;  %v1744_v13 = vld [vmem:[%s8443_s0] sm:$0xff]  ;;  %s7036_s21 = smov 60   ;;  %s7037_s24 = smov 59  }
  0x14   :  { %v1386_v60 = vcombine.high %v1378_v59, %v1378_v59  ;;  %v1621_v12 = vcombine.high %v1619_v2, %v1619_v2  ;;  %v7178_v16 = vrot.slane %v1744_v13, %v7086_v7  ;;  %v1746_v17 = vcombine.high %v1744_v13, %v1744_v13  ;;  %v6321_v25 = vld [vmem:[%s8444_s1 + $0x4] sm:$0xf]  ;;  %s7047_s8 = smov 34   ;;  %s7048_s11 = smov 18  }
  0x15   :  { %387 = vrot.lane.b32.xlu0 %v378_v18, %s7016_s22  ;;  %389 = vrot.lane.b32.xlu1 %v386_v19, %s7016_s22  ;;  %v1385_v63 = vrot.slane %v1371_v61, %v7086_v7  ;;  %v1511_v3 = vcombine.high %v1503_v0, %v1503_v0  ;;  %v1510_v5 = vrot.slane %v1496_v1, %v7086_v7  ;;  %vm51_vm3 = vcmask 1039360   ;;  %s7049_s14 = smov 17   ;;  %s7050_s17 = smov 16  }
  0x16   :  { %v1636_v8 = vcombine.high %v1628_v6, %v1628_v6  ;;  %v1635_v14 = vrot.slane %v1621_v12, %v7086_v7  ;;  %v7183_v18 = vcombine.high %v7178_v16, %v7178_v16  ;;  %v7186_v19 = vrot.slane %v1746_v17, %v7086_v7  ;;  %s7051_s20 = smov 15   ;;  %s7052_s23 = smov 14  }
  0x17   :  { %v159_v26 = vsel %vm58_vm1, %v7095_v10, 0  ;;  %v153_v10 = vsel %vm58_vm1, %v7092_v9, 0  ;;  %vm268_vm4 = vcmask 1031168   ;;  %vm393_vm5 = vcmask 1022976  }
  0x18   :  { %v7192_v20 = vcombine.high %v7186_v19, %v7186_v19  ;;  %vm518_vm6 = vcmask 1014784   ;;  %vm643_vm7 = vcmask 1006592   ;;  %vm768_vm8 = vcmask 998400  }
  0x19   :  { %391 = vrot.lane.b32.xlu0 %v385_v23, %s7016_s22  ;;  %512 = vrot.lane.b32.xlu1 %v503_v24, %s7017_s25  ;;  %s7025_s22 = smov 101   ;;  %vm893_vm9 = vcmask 867328   ;;  %vm1018_vm10 = vcmask 859136   ;;  %vm1143_vm11 = vcmask 850944   ;;  %vm1268_vm12 = vcmask 842752  }
  0x1a   :  { %vm1393_vm13 = vcmask 834560   ;;  %vm1518_vm14 = vcmask 826368   ;;  %vm1643_vm15 = vcmask 818176  }
  0x1d   :  { %514 = vrot.lane.b32.xlu0 %v511_v27, %s7017_s25  ;;  %516 = vrot.lane.b32.xlu1 %v510_v28, %s7017_s25 }
  0x21   :  { %637 = vrot.lane.b32.xlu0 %v628_v29, %s7018_s28  ;;  %639 = vrot.lane.b32.xlu1 %v636_v30, %s7018_s28 }
  0x25   :  { %641 = vrot.lane.b32.xlu0 %v635_v33, %s7018_s28  ;;  %762 = vrot.lane.b32.xlu1 %v753_v34, %s7019_s4 }
  0x29   :  { %764 = vrot.lane.b32.xlu0 %v761_v37, %s7019_s4  ;;  %766 = vrot.lane.b32.xlu1 %v760_v38, %s7019_s4 }
  0x2d   :  { %887 = vrot.lane.b32.xlu0 %v878_v39, %s7020_s7  ;;  %889 = vrot.lane.b32.xlu1 %v886_v40, %s7020_s7 }
  0x31   :  { %891 = vrot.lane.b32.xlu0 %v885_v43, %s7020_s7  ;;  %1012 = vrot.lane.b32.xlu1 %v1003_v44, %s7021_s10  ;;  %s7054_s7 = smov 12  }
  0x35   :  { %1014 = vrot.lane.b32.xlu0 %v1011_v47, %s7021_s10  ;;  %1016 = vrot.lane.b32.xlu1 %v1010_v48, %s7021_s10 }
  0x39   :  { %1137 = vrot.lane.b32.xlu0 %v1128_v49, %s7022_s13  ;;  %1139 = vrot.lane.b32.xlu1 %v1136_v50, %s7022_s13 }
  0x3d   :  { %1141 = vrot.lane.b32.xlu0 %v1135_v53, %s7022_s13  ;;  %1262 = vrot.lane.b32.xlu1 %v1253_v54, %s7023_s16 }
  0x41   :  { %1264 = vrot.lane.b32.xlu0 %v1261_v57, %s7023_s16  ;;  %1266 = vrot.lane.b32.xlu1 %v1260_v58, %s7023_s16 }
  0x45   :  { %1387 = vrot.lane.b32.xlu0 %v1378_v59, %s7024_s19  ;;  %1389 = vrot.lane.b32.xlu1 %v1386_v60, %s7024_s19  ;;  %v6336_v60 = vld [vmem:[%s8444_s1 + $0x10] sm:$0xf] }
  0x49   :  { %1391 = vrot.lane.b32.xlu0 %v1385_v63, %s7024_s19  ;;  %1512 = vrot.lane.b32.xlu1 %v1503_v0, %s7025_s22 }
  0x4d   :  { %1514 = vrot.lane.b32.xlu0 %v1511_v3, %s7025_s22  ;;  %1516 = vrot.lane.b32.xlu1 %v1510_v5, %s7025_s22 }
  0x51   :  { %1637 = vrot.lane.b32.xlu0 %v1628_v6, %s7026_s26  ;;  %1639 = vrot.lane.b32.xlu1 %v1636_v8, %s7026_s26  ;;  %v6340_v6 = vld [vmem:[%s8444_s1 + $0x14] sm:$0xf] }
  0x55   :  { %1641 = vrot.lane.b32.xlu0 %v1635_v14, %s7026_s26  ;;  %1763 = vrot.lane.b32.xlu1 %v7178_v16, %s7027_s27 }
  0x59   :  { %1765 = vrot.lane.b32.xlu0 %v7183_v18, %s7027_s27  ;;  %1767 = vrot.lane.b32.xlu1 %v7186_v19, %s7027_s27 }
  0x5d   :  { %1769 = vrot.lane.b32.xlu0 %v7192_v20, %s7027_s27  ;;  %1892 = vrot.lane.b32.xlu1 %v7178_v16, %s7028_s29  ;;  %s7053_s27 = smov 13  }
  0x61   :  { %1894 = vrot.lane.b32.xlu0 %v7183_v18, %s7028_s29  ;;  %1896 = vrot.lane.b32.xlu1 %v7186_v19, %s7028_s29 }
  0x65   :  { %1898 = vrot.lane.b32.xlu0 %v7192_v20, %s7028_s29  ;;  %2021 = vrot.lane.b32.xlu1 %v7178_v16, %s7029_s30  ;;  %s7038_s29 = smov 58  }
  0x69   :  { %2023 = vrot.lane.b32.xlu0 %v7183_v18, %s7029_s30  ;;  %2025 = vrot.lane.b32.xlu1 %v7186_v19, %s7029_s30 }
  0x6d   :  { %2027 = vrot.lane.b32.xlu0 %v7192_v20, %s7029_s30  ;;  %2150 = vrot.lane.b32.xlu1 %v7178_v16, %s7030_s5 }
  0x71   :  { %2152 = vrot.lane.b32.xlu0 %v7183_v18, %s7030_s5  ;;  %2154 = vrot.lane.b32.xlu1 %v7186_v19, %s7030_s5 }
  0x75   :  { %2156 = vrot.lane.b32.xlu0 %v7192_v20, %s7030_s5  ;;  %2279 = vrot.lane.b32.xlu1 %v7178_v16, %s7031_s6  ;;  %s7046_s5 = smov 35  }
  0x79   :  { %2281 = vrot.lane.b32.xlu0 %v7183_v18, %s7031_s6  ;;  %2283 = vrot.lane.b32.xlu1 %v7186_v19, %s7031_s6 }
  0x7b   :  { %v46_v21 = vpop.permute.xlu0 %45  ;;  %v50_v23 = vpop.permute.xlu1 %49 }
  0x7c   :  { %v66_v24 = vsel %vm58_vm1, %v50_v23, 0 }
  0x7d   :  { %6619 = vmatpush3.bf16.msra.mxu1 %v66_v24  ;;  %2285 = vrot.lane.b32.xlu0 %v7192_v20, %s7031_s6  ;;  %s7039_s6 = smov 57  }
  0x7e   :  { %6624 = vmatprep.subr.bf16.mxu1 %v7012_v15  ;;  %2408 = vrot.lane.b32.xlu1 %v7178_v16, %s7032_s9 }
  0x7f   :  { %v48_v27 = vpop.permute.xlu0 %47  ;;  %v263_v28 = vpop.permute.xlu1 %262 }
  0x80   :  { %6621 = vmatmul.mubr.msk.bf16.vlgmr.msra.gmra.mrb[0].mxu1 %vm54_vm2, %v6321_v25  ;;  %v53_v29 = vsel %vm51_vm3, %v48_v27, %v50_v23  ;;  %v52_v30 = vsel %vm51_vm3, %v46_v21, %v48_v27  ;;  %vm1771_vm3 = vcmask 687104  }
  0x81   :  { %6322 = vmatprep.subr.msk.bf16.mxu0 %vm58_vm1, %v53_v29  ;;  %v60_v31 = vsel %vm58_vm1, %v52_v30, 0  ;;  %6625 = vmatpush3.bf16.msra.mxu1 %v159_v26 }
  0x82   :  { %69 = vmatpush1.bf16.msra.mxu0 %v60_v31  ;;  %6626 = vmatprep.mubr.msk.bf16.mxu1 %vm7014_vm0, %v7012_v15 }
  0x83   :  { %6325 = vmatprep.subr.msk.bf16.mxu0 %vm58_vm1, %v7101_v11  ;;  %v265_v32 = vpop.permute.xlu0 %264  ;;  %v267_v33 = vpop.permute.xlu1 %266  ;;  %6630 = vmatprep.subr.bf16.mxu1 %v7012_v15  ;;  %v24_v11 = vld [vmem:[%s8444_s1] sm:$0xf] }
  0x84   :  { %v270_v34 = vsel %vm268_vm4, %v265_v32, %v267_v33  ;;  %2410 = vrot.lane.b32.xlu0 %v7183_v18, %s7032_s9  ;;  %2412 = vrot.lane.b32.xlu1 %v7186_v19, %s7032_s9  ;;  %v281_v9 = vsel %vm58_vm1, %v267_v33, 0  ;;  %v269_v37 = vsel %vm268_vm4, %v263_v28, %v265_v32  ;;  %v6348_v33 = vld [vmem:[%s8444_s1 + $0x1c] sm:$0xf]  ;;  %vm1900_vm4 = vcmask 678912  }
  0x85   :  { %6323 = vmatmul.mubr.msk.bf16.vlgmr.msra.gmra.mrb[0].mxu0 %vm54_vm2, %v6321_v25  ;;  %v275_v41 = vsel %vm58_vm1, %v269_v37, 0  ;;  %v6344_v25 = vld [vmem:[%s8444_s1 + $0x18] sm:$0xf] }
  0x86   :  { %162 = vmatpush1.bf16.msra.mxu0 %v153_v10  ;;  %193 = vmatprep.mubr.bf16.mxu0 %v7015_v22 }
  0x87   :  { %6329 = vmatprep.subr.msk.bf16.mxu0 %vm58_vm1, %v270_v34  ;;  %v388_v35 = vpop.permute.xlu0 %387  ;;  %v390_v36 = vpop.permute.xlu1 %389 }
  0x88   :  { %6627 = vmatmul.mubr.msk.bf16.vlgmr.msra.gmra.mrb[4].mxu1 %vm54_vm2, %v24_v11  ;;  %2414 = vrot.lane.b32.xlu0 %v7192_v20, %s7032_s9  ;;  %v394_v46 = vsel %vm393_vm5, %v388_v35, %v390_v36  ;;  %s7040_s9 = smov 56  }
  0x89   :  { %6631 = vmatpush3.bf16.msra.mxu1 %v281_v9  ;;  %6632 = vmatprep.mubr.msk.bf16.mxu1 %vm7014_vm0, %v7012_v15  ;;  %v400_v50 = vsel %vm58_vm1, %v394_v46, 0 }
  0x8a   :  { %6636 = vmatprep.subr.bf16.mxu1 %v7012_v15  ;;  %2537 = vrot.lane.b32.xlu1 %v7178_v16, %s7033_s12 }
  0x8b   :  { %v392_v38 = vpop.permute.xlu0 %391  ;;  %v513_v39 = vpop.permute.xlu1 %512 }
  0x8c   :  { %v395_v40 = vsel %vm393_vm5, %v390_v36, %v392_v38  ;;  %2539 = vrot.lane.b32.xlu0 %v7183_v18, %s7033_s12  ;;  %v406_v43 = vsel %vm58_vm1, %v392_v38, 0  ;;  %vm2029_vm5 = vcmask 670720  }
  0x8d   :  { %6326 = vmatmul.mubr.msk.bf16.vlgmr.msra.gmra.mrb[4].mxu0 %vm54_vm2, %v24_v11 }
  0x8e   :  { %284 = vmatpush1.bf16.msra.mxu0 %v275_v41  ;;  %315 = vmatprep.mubr.bf16.mxu0 %v7015_v22 }
  0x8f   :  { %6333 = vmatprep.subr.msk.bf16.mxu0 %vm58_vm1, %v395_v40  ;;  %v515_v44 = vpop.permute.xlu0 %514  ;;  %v517_v45 = vpop.permute.xlu1 %516  ;;  %2541 = vrot.lane.b32.xlu1 %v7186_v19, %s7033_s12  ;;  %v6352_v40 = vld [vmem:[%s8444_s1 + $0x20] sm:$0xf] }
  0x90   :  { %6633 = vmatmul.mubr.msk.bf16.vlgmr.msra.gmra.mrb[8].mxu1 %vm54_vm2, %v6328_v42  ;;  %2543 = vrot.lane.b32.xlu0 %v7192_v20, %s7033_s12  ;;  %v520_v49 = vsel %vm518_vm6, %v515_v44, %v517_v45  ;;  %v531_v52 = vsel %vm58_vm1, %v517_v45, 0  ;;  %v519_v55 = vsel %vm518_vm6, %v513_v39, %v515_v44  ;;  %s7041_s12 = smov 40  }
  0x91   :  { %6637 = vmatpush3.bf16.msra.mxu1 %v406_v43  ;;  %6638 = vmatprep.mubr.msk.bf16.mxu1 %vm7014_vm0, %v7012_v15  ;;  %v525_v59 = vsel %vm58_vm1, %v519_v55, 0 }
  0x92   :  { %6642 = vmatprep.subr.bf16.mxu1 %v7012_v15 }
  0x93   :  { %v638_v47 = vpop.permute.xlu0 %637  ;;  %v640_v48 = vpop.permute.xlu1 %639  ;;  %2666 = vrot.lane.b32.xlu1 %v7178_v16, %s7034_s15 }
  0x94   :  { %2668 = vrot.lane.b32.xlu0 %v7183_v18, %s7034_s15  ;;  %v644_v0 = vsel %vm643_vm7, %v638_v47, %v640_v48 }
  0x95   :  { %6330 = vmatmul.mubr.msk.bf16.vlgmr.msra.gmra.mrb[8].mxu0 %vm54_vm2, %v6328_v42  ;;  %v650_v5 = vsel %vm58_vm1, %v644_v0, 0 }
  0x96   :  { %409 = vmatpush1.bf16.msra.mxu0 %v400_v50  ;;  %440 = vmatprep.mubr.bf16.mxu0 %v7015_v22 }
  0x97   :  { %6337 = vmatprep.subr.msk.bf16.mxu0 %vm58_vm1, %v520_v49  ;;  %v642_v53 = vpop.permute.xlu0 %641  ;;  %v763_v54 = vpop.permute.xlu1 %762  ;;  %2670 = vrot.lane.b32.xlu1 %v7186_v19, %s7034_s15  ;;  %v6356_v49 = vld [vmem:[%s8444_s1 + $0x24] sm:$0xf] }
  0x98   :  { %6639 = vmatmul.mubr.msk.bf16.vlgmr.msra.gmra.mrb[12].mxu1 %vm54_vm2, %v6332_v51  ;;  %2672 = vrot.lane.b32.xlu0 %v7192_v20, %s7034_s15  ;;  %v645_v58 = vsel %vm643_vm7, %v640_v48, %v642_v53  ;;  %v656_v61 = vsel %vm58_vm1, %v642_v53, 0  ;;  %s7042_s15 = smov 39  }
  0x99   :  { %6643 = vmatpush3.bf16.msra.mxu1 %v531_v52  ;;  %6644 = vmatprep.mubr.msk.bf16.mxu1 %vm7014_vm0, %v7012_v15 }
  0x9a   :  { %6648 = vmatprep.subr.bf16.mxu1 %v7012_v15 }
  0x9b   :  { %v765_v56 = vpop.permute.xlu0 %764  ;;  %v767_v57 = vpop.permute.xlu1 %766  ;;  %2795 = vrot.lane.b32.xlu1 %v7178_v16, %s7035_s18 }
  0x9c   :  { %2797 = vrot.lane.b32.xlu0 %v7183_v18, %s7035_s18  ;;  %v770_v3 = vsel %vm768_vm8, %v765_v56, %v767_v57  ;;  %v781_v8 = vsel %vm58_vm1, %v767_v57, 0  ;;  %v769_v14 = vsel %vm768_vm8, %v763_v54, %v765_v56 }
  0x9d   :  { %6334 = vmatmul.mubr.msk.bf16.vlgmr.msra.gmra.mrb[12].mxu0 %vm54_vm2, %v6332_v51  ;;  %v775_v24 = vsel %vm58_vm1, %v769_v14, 0 }
  0x9e   :  { %534 = vmatpush1.bf16.msra.mxu0 %v525_v59  ;;  %565 = vmatprep.mubr.bf16.mxu0 %v7015_v22 }
  0x9f   :  { %6341 = vmatprep.subr.msk.bf16.mxu0 %vm58_vm1, %v645_v58  ;;  %v888_v62 = vpop.permute.xlu0 %887  ;;  %v890_v63 = vpop.permute.xlu1 %889  ;;  %2799 = vrot.lane.b32.xlu1 %v7186_v19, %s7035_s18  ;;  %v6360_v58 = vld [vmem:[%s8444_s1 + $0x28] sm:$0xf] }
  0xa0   :  { %6645 = vmatmul.mubr.msk.bf16.vlgmr.msra.gmra.mrb[16].mxu1 %vm54_vm2, %v6336_v60  ;;  %2801 = vrot.lane.b32.xlu0 %v7192_v20, %s7035_s18  ;;  %v894_v29 = vsel %vm893_vm9, %v888_v62, %v890_v63  ;;  %s7043_s18 = smov 38  }
  0xa1   :  { %6649 = vmatpush3.bf16.msra.mxu1 %v656_v61  ;;  %6650 = vmatprep.mubr.msk.bf16.mxu1 %vm7014_vm0, %v7012_v15  ;;  %v900_v32 = vsel %vm58_vm1, %v894_v29, 0 }
  0xa2   :  { %6654 = vmatprep.subr.bf16.mxu1 %v7012_v15 }
  0xa3   :  { %v892_v1 = vpop.permute.xlu0 %891  ;;  %v7299_v2 = vpop.permute.xlu1 %1012  ;;  %2924 = vrot.lane.b32.xlu1 %v7178_v16, %s7036_s21 }
  0xa4   :  { %2926 = vrot.lane.b32.xlu0 %v7183_v18, %s7036_s21  ;;  %v895_v23 = vsel %vm893_vm9, %v890_v63, %v892_v1  ;;  %v906_v26 = vsel %vm58_vm1, %v892_v1, 0  ;;  %vm2158_vm9 = vcmask 662528  }
  0xa5   :  { %6338 = vmatmul.mubr.msk.bf16.vlgmr.msra.gmra.mrb[16].mxu0 %vm54_vm2, %v6336_v60 }
  0xa6   :  { %659 = vmatpush1.bf16.msra.mxu0 %v650_v5  ;;  %690 = vmatprep.mubr.bf16.mxu0 %v7015_v22 }
  0xa7   :  { %6345 = vmatprep.subr.msk.bf16.mxu0 %vm58_vm1, %v770_v3  ;;  %v1015_v12 = vpop.permute.xlu0 %1014  ;;  %v1017_v13 = vpop.permute.xlu1 %1016  ;;  %2928 = vrot.lane.b32.xlu1 %v7186_v19, %s7036_s21  ;;  %v6364_v3 = vld [vmem:[%s8444_s1 + $0x2c] sm:$0xf] }
  0xa8   :  { %6651 = vmatmul.mubr.msk.bf16.vlgmr.msra.gmra.mrb[20].mxu1 %vm54_vm2, %v6340_v6  ;;  %2930 = vrot.lane.b32.xlu0 %v7192_v20, %s7036_s21  ;;  %v1020_v10 = vsel %vm1018_vm10, %v1015_v12, %v1017_v13  ;;  %v1031_v34 = vsel %vm58_vm1, %v1017_v13, 0  ;;  %v1019_v35 = vsel %vm1018_vm10, %v7299_v2, %v1015_v12  ;;  %s7044_s21 = smov 37   ;;  %vm2287_vm10 = vcmask 654336  }
  0xa9   :  { %6655 = vmatpush3.bf16.msra.mxu1 %v781_v8  ;;  %6656 = vmatprep.mubr.msk.bf16.mxu1 %vm7014_vm0, %v7012_v15  ;;  %v1025_v39 = vsel %vm58_vm1, %v1019_v35, 0 }
  0xaa   :  { %6660 = vmatprep.subr.bf16.mxu1 %v7012_v15 }
  0xab   :  { %v7319_v17 = vpop.permute.xlu0 %1137  ;;  %v7321_v21 = vpop.permute.xlu1 %1139  ;;  %3053 = vrot.lane.b32.xlu1 %v7178_v16, %s7037_s24 }
  0xac   :  { %3055 = vrot.lane.b32.xlu0 %v7183_v18, %s7037_s24  ;;  %v1144_v44 = vsel %vm1143_vm11, %v7319_v17, %v7321_v21 }
  0xad   :  { %6342 = vmatmul.mubr.msk.bf16.vlgmr.msra.gmra.mrb[20].mxu0 %vm54_vm2, %v6340_v6  ;;  %v1150_v48 = vsel %vm58_vm1, %v1144_v44, 0 }
  0xae   :  { %784 = vmatpush1.bf16.msra.mxu0 %v775_v24  ;;  %815 = vmatprep.mubr.bf16.mxu0 %v7015_v22 }
  0xaf   :  { %6349 = vmatprep.subr.msk.bf16.mxu0 %vm58_vm1, %v895_v23  ;;  %v1142_v27 = vpop.permute.xlu0 %1141  ;;  %v7334_v28 = vpop.permute.xlu1 %1262  ;;  %3057 = vrot.lane.b32.xlu1 %v7186_v19, %s7037_s24  ;;  %v6368_v23 = vld [vmem:[%s8444_s1 + $0x30] sm:$0xf] }
  0xb0   :  { %6657 = vmatmul.mubr.msk.bf16.vlgmr.msra.gmra.mrb[24].mxu1 %vm54_vm2, %v6344_v25  ;;  %3059 = vrot.lane.b32.xlu0 %v7192_v20, %s7037_s24  ;;  %v1145_v38 = vsel %vm1143_vm11, %v7321_v21, %v1142_v27  ;;  %v1156_v41 = vsel %vm58_vm1, %v1142_v27, 0  ;;  %s7045_s24 = smov 36   ;;  %vm2416_vm11 = vcmask 646144  }
  0xb1   :  { %6661 = vmatpush3.bf16.msra.mxu1 %v906_v26  ;;  %6662 = vmatprep.mubr.msk.bf16.mxu1 %vm7014_vm0, %v7012_v15 }
  0xb2   :  { %6666 = vmatprep.subr.bf16.mxu1 %v7012_v15 }
  0xb3   :  { %v7343_v30 = vpop.permute.xlu0 %1264  ;;  %v1267_v31 = vpop.permute.xlu1 %1266  ;;  %3182 = vrot.lane.b32.xlu1 %v7178_v16, %s7038_s29 }
  0xb4   :  { %3184 = vrot.lane.b32.xlu0 %v7183_v18, %s7038_s29  ;;  %v1270_v47 = vsel %vm1268_vm12, %v7343_v30, %v1267_v31  ;;  %v1281_v50 = vsel %vm58_vm1, %v1267_v31, 0  ;;  %v1269_v53 = vsel %vm1268_vm12, %v7334_v28, %v7343_v30  ;;  %vm2545_vm12 = vcmask 637952  }
  0xb5   :  { %6346 = vmatmul.mubr.msk.bf16.vlgmr.msra.gmra.mrb[24].mxu0 %vm54_vm2, %v6344_v25  ;;  %v1275_v57 = vsel %vm58_vm1, %v1269_v53, 0 }
  0xb6   :  { %909 = vmatpush1.bf16.msra.mxu0 %v900_v32  ;;  %940 = vmatprep.mubr.bf16.mxu0 %v7015_v22  ;;  %v6372_v32 = vld [vmem:[%s8444_s1 + $0x34] sm:$0xf] }
  0xb7   :  { %6353 = vmatprep.subr.msk.bf16.mxu0 %vm58_vm1, %v1020_v10  ;;  %v7356_v11 = vpop.permute.xlu0 %1387  ;;  %3186 = vrot.lane.b32.xlu1 %v7186_v19, %s7038_s29  ;;  %v7359_v9 = vpop.permute.xlu1 %1389 }
  0xb8   :  { %6663 = vmatmul.mubr.msk.bf16.vlgmr.msra.gmra.mrb[28].mxu1 %vm54_vm2, %v6348_v33  ;;  %3188 = vrot.lane.b32.xlu0 %v7192_v20, %s7038_s29  ;;  %v1394_v62 = vsel %vm1393_vm13, %v7356_v11, %v7359_v9 }
  0xb9   :  { %6667 = vmatpush3.bf16.msra.mxu1 %v1031_v34  ;;  %6668 = vmatprep.mubr.msk.bf16.mxu1 %vm7014_vm0, %v7012_v15  ;;  %v1400_v2 = vsel %vm58_vm1, %v1394_v62, 0 }
  0xba   :  { %6672 = vmatprep.subr.bf16.mxu1 %v7012_v15 }
  0xbb   :  { %v1392_v36 = vpop.permute.xlu0 %1391  ;;  %3311 = vrot.lane.b32.xlu1 %v7178_v16, %s7039_s6  ;;  %v7369_v37 = vpop.permute.xlu1 %1512 }
  0xbc   :  { %3313 = vrot.lane.b32.xlu0 %v7183_v18, %s7039_s6  ;;  %v1395_v56 = vsel %vm1393_vm13, %v7359_v9, %v1392_v36  ;;  %v1406_v59 = vsel %vm58_vm1, %v1392_v36, 0  ;;  %vm2674_vm13 = vcmask 506880  }
  0xbd   :  { %6350 = vmatmul.mubr.msk.bf16.vlgmr.msra.gmra.mrb[28].mxu0 %vm54_vm2, %v6348_v33 }
  0xbe   :  { %1034 = vmatpush1.bf16.msra.mxu0 %v1025_v39  ;;  %1065 = vmatprep.mubr.bf16.mxu0 %v7015_v22 }
  0xbf   :  { %6357 = vmatprep.subr.msk.bf16.mxu0 %vm58_vm1, %v1145_v38  ;;  %v7382_v42 = vpop.permute.xlu0 %1514  ;;  %3315 = vrot.lane.b32.xlu1 %v7186_v19, %s7039_s6  ;;  %v7385_v43 = vpop.permute.xlu1 %1516  ;;  %v4195_v38 = vld [vmem:[%s8443_s0] sm:$0xff] }
  0xc0   :  { %6669 = vmatmul.mubr.msk.bf16.vlgmr.msra.gmra.mrb[32].mxu1 %vm54_vm2, %v6352_v40  ;;  %3317 = vrot.lane.b32.xlu0 %v7192_v20, %s7039_s6  ;;  %v1520_v1 = vsel %vm1518_vm14, %v7382_v42, %v7385_v43  ;;  %v1531_v5 = vsel %vm58_vm1, %v7385_v43, 0  ;;  %v1519_v12 = vsel %vm1518_vm14, %v7369_v37, %v7382_v42  ;;  %v7565_v42 = vrot.slane %v4195_v38, %v7086_v7 }
  0xc1   :  { %6673 = vmatpush3.bf16.msra.mxu1 %v1156_v41  ;;  %6674 = vmatprep.mubr.msk.bf16.mxu1 %vm7014_vm0, %v7012_v15  ;;  %v1525_v21 = vsel %vm58_vm1, %v1519_v12, 0  ;;  %v4197_v43 = vcombine.high %v4195_v38, %v4195_v38  ;;  %vm2803_vm14 = vcmask 498688  }
  0xc2   :  { %6678 = vmatprep.subr.bf16.mxu1 %v7012_v15  ;;  %v7573_v44 = vcombine.high %v7565_v42, %v7565_v42 }
  0xc3   :  { %3440 = vrot.lane.b32.xlu1 %v7178_v16, %s7040_s9  ;;  %v7396_v45 = vpop.permute.xlu0 %1637  ;;  %v7398_v46 = vpop.permute.xlu1 %1639 }
  0xc4   :  { %3442 = vrot.lane.b32.xlu0 %v7183_v18, %s7040_s9  ;;  %v1644_v27 = vsel %vm1643_vm15, %v7396_v45, %v7398_v46 }
  0xc5   :  { %6354 = vmatmul.mubr.msk.bf16.vlgmr.msra.gmra.mrb[32].mxu0 %vm54_vm2, %v6352_v40  ;;  %v1650_v10 = vsel %vm58_vm1, %v1644_v27, 0 }
  0xc6   :  { %1159 = vmatpush1.bf16.msra.mxu0 %v1150_v48  ;;  %1190 = vmatprep.mubr.bf16.mxu0 %v7015_v22 }
  0xc7   :  { %6361 = vmatprep.subr.msk.bf16.mxu0 %vm58_vm1, %v1270_v47  ;;  %3444 = vrot.lane.b32.xlu1 %v7186_v19, %s7040_s9  ;;  %v7412_v51 = vpop.permute.xlu0 %1641  ;;  %v7414_v52 = vpop.permute.xlu1 %1763 }
  0xc8   :  { %6675 = vmatmul.mubr.msk.bf16.vlgmr.msra.gmra.mrb[36].mxu1 %vm54_vm2, %v6356_v49  ;;  %3446 = vrot.lane.b32.xlu0 %v7192_v20, %s7040_s9  ;;  %v1645_v17 = vsel %vm1643_vm15, %v7398_v46, %v7412_v51  ;;  %v1656_v24 = vsel %vm58_vm1, %v7412_v51, 0  ;;  %vm2932_vm15 = vcmask 490496  }
  0xc9   :  { %6679 = vmatpush3.bf16.msra.mxu1 %v1281_v50  ;;  %6680 = vmatprep.mubr.msk.bf16.mxu1 %vm7014_vm0, %v7012_v15  ;;  %v6380_v50 = vld [vmem:[%s8444_s1 + $0x3c] sm:$0xf] }
  0xca   :  { %6684 = vmatprep.subr.bf16.mxu1 %v7012_v15 }
  0xcb   :  { %3569 = vrot.lane.b32.xlu1 %v7178_v16, %s7041_s12  ;;  %v7425_v54 = vpop.permute.xlu0 %1765  ;;  %v7427_v55 = vpop.permute.xlu1 %1767 }
  0xcc   :  { %3571 = vrot.lane.b32.xlu0 %v7183_v18, %s7041_s12  ;;  %v1773_v31 = vsel %vm1771_vm3, %v7425_v54, %v7427_v55  ;;  %v1772_v9 = vsel %vm1771_vm3, %v7414_v52, %v7425_v54 }
  0xcd   :  { %6358 = vmatmul.mubr.msk.bf16.vlgmr.msra.gmra.mrb[36].mxu0 %vm54_vm2, %v6356_v49  ;;  %v1779_v40 = vsel %vm58_vm1, %v1772_v9, 0 }
  0xce   :  { %1284 = vmatpush1.bf16.msra.mxu0 %v1275_v57  ;;  %1315 = vmatprep.mubr.bf16.mxu0 %v7015_v22 }
  0xcf   :  { %6365 = vmatprep.subr.msk.bf16.mxu0 %vm58_vm1, %v1395_v56  ;;  %3573 = vrot.lane.b32.xlu1 %v7186_v19, %s7041_s12  ;;  %v1770_v60 = vpop.permute.xlu0 %1769  ;;  %v7441_v61 = vpop.permute.xlu1 %1892 }
  0xd0   :  { %6681 = vmatmul.mubr.msk.bf16.vlgmr.msra.gmra.mrb[40].mxu1 %vm54_vm2, %v6360_v58  ;;  %3575 = vrot.lane.b32.xlu0 %v7192_v20, %s7041_s12  ;;  %v1774_v28 = vsel %vm1771_vm3, %v7427_v55, %v1770_v60  ;;  %v6384_v60 = vld [vmem:[%s8444_s1 + $0x40] sm:$0xf]  ;;  %vm3061_vm3 = vcmask 482304  }
  0xd1   :  { %6685 = vmatpush3.bf16.msra.mxu1 %v1406_v59  ;;  %6686 = vmatprep.mubr.msk.bf16.mxu1 %vm7014_vm0, %v7012_v15  ;;  %v1785_v33 = vsel %vm58_vm1, %v1774_v28, 0 }
  0xd2   :  { %6690 = vmatprep.subr.bf16.mxu1 %v7012_v15 }
  0xd3   :  { %3698 = vrot.lane.b32.xlu1 %v7178_v16, %s7042_s15  ;;  %v7452_v63 = vpop.permute.xlu0 %1894  ;;  %v7454_v0 = vpop.permute.xlu1 %1896 }
  0xd4   :  { %3700 = vrot.lane.b32.xlu0 %v7183_v18, %s7042_s15  ;;  %v1902_v39 = vsel %vm1900_vm4, %v7452_v63, %v7454_v0 }
  0xd5   :  { %6362 = vmatmul.mubr.msk.bf16.vlgmr.msra.gmra.mrb[40].mxu0 %vm54_vm2, %v6360_v58 }
  0xd6   :  { %1409 = vmatpush1.bf16.msra.mxu0 %v1400_v2  ;;  %1440 = vmatprep.mubr.bf16.mxu0 %v7015_v22 }
  0xd7   :  { %6369 = vmatprep.subr.msk.bf16.mxu0 %vm58_vm1, %v1520_v1  ;;  %3702 = vrot.lane.b32.xlu1 %v7186_v19, %s7042_s15  ;;  %v1899_v6 = vpop.permute.xlu0 %1898  ;;  %v7470_v8 = vpop.permute.xlu1 %2021 }
  0xd8   :  { %6687 = vmatmul.mubr.msk.bf16.vlgmr.msra.gmra.mrb[44].mxu1 %vm54_vm2, %v6364_v3  ;;  %3704 = vrot.lane.b32.xlu0 %v7192_v20, %s7042_s15  ;;  %v1903_v35 = vsel %vm1900_vm4, %v7454_v0, %v1899_v6  ;;  %v6388_v6 = vld [vmem:[%s8444_s1 + $0x44] sm:$0xf] }
  0xd9   :  { %6691 = vmatpush3.bf16.msra.mxu1 %v1531_v5  ;;  %6692 = vmatprep.mubr.msk.bf16.mxu1 %vm7014_vm0, %v7012_v15  ;;  %v1914_v41 = vsel %vm58_vm1, %v1903_v35, 0 }
  0xda   :  { %6696 = vmatprep.subr.bf16.mxu1 %v7012_v15 }
  0xdb   :  { %3827 = vrot.lane.b32.xlu1 %v7178_v16, %s7043_s18  ;;  %v7481_v13 = vpop.permute.xlu0 %2023  ;;  %v7483_v14 = vpop.permute.xlu1 %2025 }
  0xdc   :  { %3829 = vrot.lane.b32.xlu0 %v7183_v18, %s7043_s18  ;;  %v2031_v47 = vsel %vm2029_vm5, %v7481_v13, %v7483_v14  ;;  %v2030_v54 = vsel %vm2029_vm5, %v7470_v8, %v7481_v13 }
  0xdd   :  { %6366 = vmatmul.mubr.msk.bf16.vlgmr.msra.gmra.mrb[44].mxu0 %vm54_vm2, %v6364_v3  ;;  %v2037_v59 = vsel %vm58_vm1, %v2030_v54, 0 }
  0xde   :  { %1534 = vmatpush1.bf16.msra.mxu0 %v1525_v21  ;;  %1565 = vmatprep.mubr.bf16.mxu0 %v7015_v22 }
  0xdf   :  { %6373 = vmatprep.subr.msk.bf16.mxu0 %vm58_vm1, %v1645_v17  ;;  %3831 = vrot.lane.b32.xlu1 %v7186_v19, %s7043_s18  ;;  %v7499_v25 = vpop.permute.xlu0 %2027  ;;  %v7501_v26 = vpop.permute.xlu1 %2150 }
  0xe0   :  { %6693 = vmatmul.mubr.msk.bf16.vlgmr.msra.gmra.mrb[48].mxu1 %vm54_vm2, %v6368_v23  ;;  %3833 = vrot.lane.b32.xlu0 %v7192_v20, %s7043_s18  ;;  %v2032_v46 = vsel %vm2029_vm5, %v7483_v14, %v7499_v25  ;;  %vm3319_vm5 = vcmask 465920  }
  0xe1   :  { %6697 = vmatpush3.bf16.msra.mxu1 %v1656_v24  ;;  %6698 = vmatprep.mubr.msk.bf16.mxu1 %vm7014_vm0, %v7012_v15  ;;  %v2043_v51 = vsel %vm58_vm1, %v2032_v46, 0 }
  0xe2   :  { %6702 = vmatprep.subr.bf16.mxu1 %v7012_v15 }
  0xe3   :  { %3956 = vrot.lane.b32.xlu1 %v7178_v16, %s7044_s21  ;;  %v7514_v29 = vpop.permute.xlu0 %2152  ;;  %v7516_v30 = vpop.permute.xlu1 %2154 }
  0xe4   :  { %3958 = vrot.lane.b32.xlu0 %v7183_v18, %s7044_s21  ;;  %v2160_v57 = vsel %vm2158_vm9, %v7514_v29, %v7516_v30  ;;  %v2159_v0 = vsel %vm2158_vm9, %v7501_v26, %v7514_v29  ;;  %v6392_v26 = vld [vmem:[%s8444_s1 + $0x48] sm:$0xf] }
  0xe5   :  { %6370 = vmatmul.mubr.msk.bf16.vlgmr.msra.gmra.mrb[48].mxu0 %vm54_vm2, %v6368_v23  ;;  %v2166_v5 = vsel %vm58_vm1, %v2159_v0, 0 }
  0xe6   :  { %1659 = vmatpush1.bf16.msra.mxu0 %v1650_v10  ;;  %1690 = vmatprep.mubr.bf16.mxu0 %v7015_v22 }
  0xe7   :  { %6377 = vmatprep.subr.msk.bf16.mxu0 %vm58_vm1, %v1773_v31  ;;  %3960 = vrot.lane.b32.xlu1 %v7186_v19, %s7044_s21  ;;  %v7531_v34 = vpop.permute.xlu0 %2156  ;;  %v7533_v11 = vpop.permute.xlu1 %2279 }
  0xe8   :  { %6699 = vmatmul.mubr.msk.bf16.vlgmr.msra.gmra.mrb[52].mxu1 %vm54_vm2, %v6372_v32  ;;  %3962 = vrot.lane.b32.xlu0 %v7192_v20, %s7044_s21  ;;  %v2161_v56 = vsel %vm2158_vm9, %v7516_v30, %v7531_v34  ;;  %vm3448_vm9 = vcmask 457728  }
  0xe9   :  { %6703 = vmatpush3.bf16.msra.mxu1 %v1785_v33  ;;  %6704 = vmatprep.mubr.msk.bf16.mxu1 %vm7014_vm0, %v7012_v15 }
  0xea   :  { %6708 = vmatprep.subr.bf16.mxu1 %v7012_v15 }
  0xeb   :  { %4085 = vrot.lane.b32.xlu1 %v7178_v16, %s7045_s24  ;;  %v7546_v36 = vpop.permute.xlu0 %2281  ;;  %v7548_v37 = vpop.permute.xlu1 %2283  ;;  %v6376_v16 = vld [vmem:[%s8444_s1 + $0x38] sm:$0xf] }
  0xec   :  { %4087 = vrot.lane.b32.xlu0 %v7183_v18, %s7045_s24  ;;  %v2289_v3 = vsel %vm2287_vm10, %v7546_v36, %v7548_v37  ;;  %v2288_v17 = vsel %vm2287_vm10, %v7533_v11, %v7546_v36  ;;  %v6396_v11 = vld [vmem:[%s8444_s1 + $0x4c] sm:$0xf] }
  0xed   :  { %6374 = vmatmul.mubr.msk.bf16.vlgmr.msra.gmra.mrb[52].mxu0 %vm54_vm2, %v6372_v32  ;;  %v2295_v25 = vsel %vm58_vm1, %v2288_v17, 0 }
  0xee   :  { %1788 = vmatpush1.bf16.msra.mxu0 %v1779_v40  ;;  %1819 = vmatprep.mubr.bf16.mxu0 %v7015_v22 }
  0xef   :  { %6381 = vmatprep.subr.msk.bf16.mxu0 %vm58_vm1, %v1902_v39  ;;  %4089 = vrot.lane.b32.xlu1 %v7186_v19, %s7045_s24  ;;  %v2286_v18 = vpop.permute.xlu0 %2285  ;;  %v1901_v19 = vsel %vm1900_vm4, %v7441_v61, %v7452_v63  ;;  %v2172_v61 = vsel %vm58_vm1, %v2161_v56, 0  ;;  %vm3190_vm4 = vcmask 474112  }
  0xf0   :  { %6705 = vmatmul.mubr.msk.bf16.vlgmr.msra.gmra.mrb[56].mxu1 %vm54_vm2, %v6376_v16  ;;  %4091 = vrot.lane.b32.xlu0 %v7192_v20, %s7045_s24  ;;  %v7575_v45 = vpop.permute.xlu1 %2408  ;;  %v7584_v20 = vrot.slane %v4197_v43, %v7086_v7  ;;  %v1908_v49 = vsel %vm58_vm1, %v1901_v19, 0  ;;  %v2290_v2 = vsel %vm2287_vm10, %v7548_v37, %v2286_v18  ;;  %v6400_v43 = vld [vmem:[%s8444_s1 + $0x50] sm:$0xf]  ;;  %vm3577_vm10 = vcmask 326656   ;;  %s7056_s24 = smov 120  }
  0xf1   :  { %6709 = vmatpush3.bf16.msra.mxu1 %v1914_v41  ;;  %6710 = vmatprep.mubr.msk.bf16.mxu1 %vm7014_vm0, %v7012_v15  ;;  %v2301_v12 = vsel %vm58_vm1, %v2290_v2, 0 }
  0xf2   :  { %6714 = vmatprep.subr.bf16.mxu1 %v7012_v15  ;;  %v7596_v48 = vcombine.high %v7584_v20, %v7584_v20 }
  0xf3   :  { %4214 = vrot.lane.b32.xlu1 %v7565_v42, %s7046_s5 }
  0xf4   :  { %4216 = vrot.lane.b32.xlu0 %v7573_v44, %s7046_s5 }
  0xf5   :  { %6378 = vmatmul.mubr.msk.bf16.vlgmr.msra.gmra.mrb[56].mxu0 %vm54_vm2, %v6376_v16 }
  0xf6   :  { %1917 = vmatpush1.bf16.msra.mxu0 %v1908_v49  ;;  %1948 = vmatprep.mubr.bf16.mxu0 %v7015_v22  ;;  %v7605_v52 = vpop.permute.xlu0 %2410  ;;  %v7607_v53 = vpop.permute.xlu1 %2412 }
  0xf7   :  { %6385 = vmatprep.subr.msk.bf16.mxu0 %vm58_vm1, %v2031_v47  ;;  %4218 = vrot.lane.b32.xlu1 %v7584_v20, %s7046_s5  ;;  %v2418_v24 = vsel %vm2416_vm11, %v7605_v52, %v7607_v53  ;;  %v2417_v31 = vsel %vm2416_vm11, %v7575_v45, %v7605_v52 }
  0xf8   :  { %6711 = vmatmul.mubr.msk.bf16.vlgmr.msra.gmra.mrb[60].mxu1 %vm54_vm2, %v6380_v50  ;;  %4220 = vrot.lane.b32.xlu0 %v7596_v48, %s7046_s5  ;;  %v2424_v34 = vsel %vm58_vm1, %v2417_v31, 0  ;;  %s7057_s5 = smov 119  }
  0xf9   :  { %6715 = vmatpush3.bf16.msra.mxu1 %v2043_v51  ;;  %6716 = vmatprep.mubr.msk.bf16.mxu1 %vm7014_vm0, %v7012_v15 }
  0xfa   :  { %6720 = vmatprep.subr.bf16.mxu1 %v7012_v15  ;;  %v2415_v55 = vpop.permute.xlu0 %2414 }
  0xfb   :  { %4343 = vrot.lane.b32.xlu1 %v7565_v42, %s7047_s8  ;;  %v2419_v23 = vsel %vm2416_vm11, %v7607_v53, %v2415_v55  ;;  %v6404_v53 = vld [vmem:[%s8444_s1 + $0x54] sm:$0xf]  ;;  %vm3706_vm11 = vcmask 318464  }
  0xfc   :  { %4345 = vrot.lane.b32.xlu0 %v7573_v44, %s7047_s8  ;;  %v7627_v58 = vpop.permute.xlu1 %2537  ;;  %v2430_v28 = vsel %vm58_vm1, %v2419_v23, 0 }
  0xfd   :  { %6382 = vmatmul.mubr.msk.bf16.vlgmr.msra.gmra.mrb[60].mxu0 %vm54_vm2, %v6380_v50 }
  0xfe   :  { %2046 = vmatpush1.bf16.msra.mxu0 %v2037_v59  ;;  %2077 = vmatprep.mubr.bf16.mxu0 %v7015_v22  ;;  %v7636_v62 = vpop.permute.xlu0 %2539 }
  0xff   :  { %6389 = vmatprep.subr.msk.bf16.mxu0 %vm58_vm1, %v2160_v57  ;;  %4347 = vrot.lane.b32.xlu1 %v7584_v20, %s7047_s8  ;;  %v2546_v38 = vsel %vm2545_vm12, %v7627_v58, %v7636_v62 }
 0x100   :  { %6717 = vmatmul.mubr.msk.bf16.vlgmr.msra.gmra.mrb[64].mxu1 %vm54_vm2, %v6384_v60  ;;  %4349 = vrot.lane.b32.xlu0 %v7596_v48, %s7047_s8  ;;  %v2553_v41 = vsel %vm58_vm1, %v2546_v38, 0 }
 0x101   :  { %6721 = vmatpush3.bf16.msra.mxu1 %v2172_v61  ;;  %6722 = vmatprep.mubr.msk.bf16.mxu1 %vm7014_vm0, %v7012_v15  ;;  %v2542_v63 = vpop.permute.xlu1 %2541 }
 0x102   :  { %6726 = vmatprep.subr.bf16.mxu1 %v7012_v15  ;;  %v2544_v1 = vpop.permute.xlu0 %2543  ;;  %v2547_v33 = vsel %vm2545_vm12, %v7636_v62, %v2542_v63 }
 0x103   :  { %4472 = vrot.lane.b32.xlu1 %v7565_v42, %s7048_s11  ;;  %v2548_v32 = vsel %vm2545_vm12, %v2542_v63, %v2544_v1  ;;  %v6408_v63 = vld [vmem:[%s8444_s1 + $0x58] sm:$0xf]  ;;  %vm3835_vm12 = vcmask 310272  }
 0x104   :  { %4474 = vrot.lane.b32.xlu0 %v7573_v44, %s7048_s11  ;;  %v2559_v35 = vsel %vm58_vm1, %v2548_v32, 0 }
 0x105   :  { %6386 = vmatmul.mubr.msk.bf16.vlgmr.msra.gmra.mrb[64].mxu0 %vm54_vm2, %v6384_v60  ;;  %v7660_v8 = vpop.permute.xlu1 %2666 }
 0x106   :  { %2175 = vmatpush1.bf16.msra.mxu0 %v2166_v5  ;;  %2206 = vmatprep.mubr.bf16.mxu0 %v7015_v22  ;;  %v7664_v13 = vpop.permute.xlu0 %2668  ;;  %v5356_v5 = vld [vmem:[%s8443_s0 + $0x2] sm:$0x3f] }
 0x107   :  { %6393 = vmatprep.subr.msk.bf16.mxu0 %vm58_vm1, %v2289_v3  ;;  %4476 = vrot.lane.b32.xlu1 %v7584_v20, %s7048_s11  ;;  %v2675_v47 = vsel %vm2674_vm13, %v7660_v8, %v7664_v13 }
 0x108   :  { %6723 = vmatmul.mubr.msk.bf16.vlgmr.msra.gmra.mrb[68].mxu1 %vm54_vm2, %v6388_v6  ;;  %4478 = vrot.lane.b32.xlu0 %v7596_v48, %s7048_s11  ;;  %v2682_v52 = vsel %vm58_vm1, %v2675_v47, 0  ;;  %v6420_v47 = vld [vmem:[%s8444_s1 + $0x64] sm:$0xf] }
 0x109   :  { %6727 = vmatpush3.bf16.msra.mxu1 %v2301_v12  ;;  %6728 = vmatprep.mubr.msk.bf16.mxu1 %vm7014_vm0, %v7012_v15  ;;  %v2671_v14 = vpop.permute.xlu1 %2670 }
 0x10a   :  { %6732 = vmatprep.subr.bf16.mxu1 %v7012_v15  ;;  %v2673_v21 = vpop.permute.xlu0 %2672  ;;  %v2676_v16 = vsel %vm2674_vm13, %v7664_v13, %v2671_v14 }
 0x10b   :  { %4601 = vrot.lane.b32.xlu1 %v7565_v42, %s7049_s14  ;;  %v2677_v40 = vsel %vm2674_vm13, %v2671_v14, %v2673_v21  ;;  %v5365_v14 = vrot.slane %v5356_v5, %v7086_v7  ;;  %v6412_v21 = vld [vmem:[%s8444_s1 + $0x5c] sm:$0xf]  ;;  %vm3964_vm13 = vcmask 302080  }
 0x10c   :  { %4603 = vrot.lane.b32.xlu0 %v7573_v44, %s7049_s14  ;;  %v2688_v45 = vsel %vm58_vm1, %v2677_v40, 0 }
 0x10d   :  { %6390 = vmatmul.mubr.msk.bf16.vlgmr.msra.gmra.mrb[68].mxu0 %vm54_vm2, %v6388_v6  ;;  %v7688_v27 = vpop.permute.xlu1 %2795 }
 0x10e   :  { %2304 = vmatpush1.bf16.msra.mxu0 %v2295_v25  ;;  %2335 = vmatprep.mubr.bf16.mxu0 %v7015_v22  ;;  %v7692_v29 = vpop.permute.xlu0 %2797  ;;  %v5373_v25 = vcombine.high %v5365_v14, %v5365_v14 }
 0x10f   :  { %6397 = vmatprep.subr.msk.bf16.mxu0 %vm58_vm1, %v2418_v24  ;;  %4605 = vrot.lane.b32.xlu1 %v7584_v20, %s7049_s14  ;;  %v2804_v58 = vsel %vm2803_vm14, %v7688_v27, %v7692_v29 }
 0x110   :  { %6729 = vmatmul.mubr.msk.bf16.vlgmr.msra.gmra.mrb[72].mxu1 %vm54_vm2, %v6392_v26  ;;  %4607 = vrot.lane.b32.xlu0 %v7596_v48, %s7049_s14  ;;  %v2811_v62 = vsel %vm58_vm1, %v2804_v58, 0 }
 0x111   :  { %6733 = vmatpush3.bf16.msra.mxu1 %v2430_v28  ;;  %6734 = vmatprep.mubr.msk.bf16.mxu1 %vm7014_vm0, %v7012_v15  ;;  %v2800_v30 = vpop.permute.xlu1 %2799 }
 0x112   :  { %6738 = vmatprep.subr.bf16.mxu1 %v7012_v15  ;;  %v2802_v10 = vpop.permute.xlu0 %2801  ;;  %v2805_v51 = vsel %vm2803_vm14, %v7692_v29, %v2800_v30 }
 0x113   :  { %4730 = vrot.lane.b32.xlu1 %v7565_v42, %s7050_s17  ;;  %v2806_v50 = vsel %vm2803_vm14, %v2800_v30, %v2802_v10  ;;  %vm4093_vm14 = vcmask 293888  }
 0x114   :  { %4732 = vrot.lane.b32.xlu0 %v7573_v44, %s7050_s17  ;;  %v2817_v55 = vsel %vm58_vm1, %v2806_v50, 0 }
 0x115   :  { %6394 = vmatmul.mubr.msk.bf16.vlgmr.msra.gmra.mrb[72].mxu0 %vm54_vm2, %v6392_v26  ;;  %v7714_v9 = vpop.permute.xlu1 %2924  ;;  %v5480_v26 = vld [vmem:[%s8443_s0 + $0x2] sm:$0x3f] }
 0x116   :  { %2433 = vmatpush1.bf16.msra.mxu0 %v2424_v34  ;;  %2464 = vmatprep.mubr.bf16.mxu0 %v7015_v22  ;;  %v7718_v36 = vpop.permute.xlu0 %2926  ;;  %v5489_v30 = vrot.slane %v5480_v26, %v7086_v7  ;;  %v5482_v10 = vcombine.high %v5480_v26, %v5480_v26 }
 0x117   :  { %6401 = vmatprep.subr.msk.bf16.mxu0 %vm58_vm1, %v2547_v33  ;;  %4734 = vrot.lane.b32.xlu1 %v7584_v20, %s7050_s17  ;;  %v2933_v6 = vsel %vm2932_vm15, %v7714_v9, %v7718_v36  ;;  %v6416_v33 = vld [vmem:[%s8444_s1 + $0x60] sm:$0xf] }
 0x118   :  { %6735 = vmatmul.mubr.msk.bf16.vlgmr.msra.gmra.mrb[76].mxu1 %vm54_vm2, %v6396_v11  ;;  %4736 = vrot.lane.b32.xlu0 %v7596_v48, %s7050_s17  ;;  %v2940_v17 = vsel %vm58_vm1, %v2933_v6, 0 }
 0x119   :  { %6739 = vmatpush3.bf16.msra.mxu1 %v2559_v35  ;;  %6740 = vmatprep.mubr.msk.bf16.mxu1 %vm7014_vm0, %v7012_v15  ;;  %v2929_v37 = vpop.permute.xlu1 %2928 }
 0x11a   :  { %6744 = vmatprep.subr.bf16.mxu1 %v7012_v15  ;;  %v2931_v39 = vpop.permute.xlu0 %2930  ;;  %v2934_v61 = vsel %vm2932_vm15, %v7718_v36, %v2929_v37  ;;  %v5497_v36 = vcombine.high %v5489_v30, %v5489_v30 }
 0x11b   :  { %4859 = vrot.lane.b32.xlu1 %v7565_v42, %s7051_s20  ;;  %v2935_v60 = vsel %vm2932_vm15, %v2929_v37, %v2931_v39  ;;  %v5496_v37 = vrot.slane %v5482_v10, %v7086_v7  ;;  %vm4222_vm15 = vcmask 285696  }
 0x11c   :  { %4861 = vrot.lane.b32.xlu0 %v7573_v44, %s7051_s20  ;;  %v2946_v1 = vsel %vm58_vm1, %v2935_v60, 0 }
 0x11d   :  { %6398 = vmatmul.mubr.msk.bf16.vlgmr.msra.gmra.mrb[76].mxu0 %vm54_vm2, %v6396_v11  ;;  %v7740_v18 = vpop.permute.xlu1 %3053  ;;  %v5604_v11 = vld [vmem:[%s8443_s0 + $0x2] sm:$0x3f] }
 0x11e   :  { %2562 = vmatpush1.bf16.msra.mxu0 %v2553_v41  ;;  %2593 = vmatprep.mubr.bf16.mxu0 %v7015_v22  ;;  %v7744_v19 = vpop.permute.xlu0 %3055  ;;  %v5613_v38 = vrot.slane %v5604_v11, %v7086_v7 }
 0x11f   :  { %6405 = vmatprep.subr.msk.bf16.mxu0 %vm58_vm1, %v2676_v16  ;;  %4863 = vrot.lane.b32.xlu1 %v7584_v20, %s7051_s20 }
 0x120   :  { %6741 = vmatmul.mubr.msk.bf16.vlgmr.msra.gmra.mrb[80].mxu1 %vm54_vm2, %v6400_v43  ;;  %4865 = vrot.lane.b32.xlu0 %v7596_v48, %s7051_s20  ;;  %s7055_s20 = smov 121  }
 0x121   :  { %6745 = vmatpush3.bf16.msra.mxu1 %v2688_v45  ;;  %6746 = vmatprep.mubr.msk.bf16.mxu1 %vm7014_vm0, %v7012_v15  ;;  %v3058_v46 = vpop.permute.xlu1 %3057  ;;  %v5621_v45 = vcombine.high %v5613_v38, %v5613_v38 }
 0x122   :  { %6750 = vmatprep.subr.bf16.mxu1 %v7012_v15  ;;  %v3060_v49 = vpop.permute.xlu0 %3059  ;;  %v3063_v13 = vsel %vm3061_vm3, %v7744_v19, %v3058_v46 }
 0x123   :  { %4988 = vrot.lane.b32.xlu1 %v7565_v42, %s7052_s23  ;;  %v3064_v12 = vsel %vm3061_vm3, %v3058_v46, %v3060_v49 }
 0x124   :  { %4990 = vrot.lane.b32.xlu0 %v7573_v44, %s7052_s23 }
 0x125   :  { %6402 = vmatmul.mubr.msk.bf16.vlgmr.msra.gmra.mrb[80].mxu0 %vm54_vm2, %v6400_v43  ;;  %v7766_v54 = vpop.permute.xlu1 %3182  ;;  %v5606_v43 = vcombine.high %v5604_v11, %v5604_v11 }
 0x126   :  { %2691 = vmatpush1.bf16.msra.mxu0 %v2682_v52  ;;  %2722 = vmatprep.mubr.bf16.mxu0 %v7015_v22  ;;  %v7770_v56 = vpop.permute.xlu0 %3184 }
 0x127   :  { %6409 = vmatprep.subr.msk.bf16.mxu0 %vm58_vm1, %v2805_v51  ;;  %4992 = vrot.lane.b32.xlu1 %v7584_v20, %s7052_s23  ;;  %v3191_v40 = vsel %vm3190_vm4, %v7766_v54, %v7770_v56  ;;  %v5620_v52 = vrot.slane %v5606_v43, %v7086_v7 }
 0x128   :  { %6747 = vmatmul.mubr.msk.bf16.vlgmr.msra.gmra.mrb[84].mxu1 %vm54_vm2, %v6404_v53  ;;  %4994 = vrot.lane.b32.xlu0 %v7596_v48, %s7052_s23  ;;  %v3198_v46 = vsel %vm58_vm1, %v3191_v40, 0 }
 0x129   :  { %6751 = vmatpush3.bf16.msra.mxu1 %v2817_v55  ;;  %6752 = vmatprep.mubr.msk.bf16.mxu1 %vm7014_vm0, %v7012_v15  ;;  %v3187_v57 = vpop.permute.xlu1 %3186 }
 0x12a   :  { %6756 = vmatprep.subr.bf16.mxu1 %v7012_v15  ;;  %v3189_v59 = vpop.permute.xlu0 %3188  ;;  %v3192_v31 = vsel %vm3190_vm4, %v7770_v56, %v3187_v57  ;;  %v5853_v56 = vld [vmem:[%s8443_s0 + $0x2] sm:$0x3f] }
 0x12b   :  { %5117 = vrot.lane.b32.xlu1 %v7565_v42, %s7053_s27  ;;  %v5855_v6 = vcombine.high %v5853_v56, %v5853_v56 }
 0x12c   :  { %5119 = vrot.lane.b32.xlu0 %v7573_v44, %s7053_s27 }
 0x12d   :  { %6406 = vmatmul.mubr.msk.bf16.vlgmr.msra.gmra.mrb[84].mxu0 %vm54_vm2, %v6404_v53  ;;  %v7792_v0 = vpop.permute.xlu1 %3311 }
 0x12e   :  { %2820 = vmatpush1.bf16.msra.mxu0 %v2811_v62  ;;  %2851 = vmatprep.mubr.bf16.mxu0 %v7015_v22  ;;  %v7796_v2 = vpop.permute.xlu0 %3313 }
 0x12f   :  { %6413 = vmatprep.subr.msk.bf16.mxu0 %vm58_vm1, %v2934_v61  ;;  %5121 = vrot.lane.b32.xlu1 %v7584_v20, %s7053_s27 }
 0x130   :  { %6753 = vmatmul.mubr.msk.bf16.vlgmr.msra.gmra.mrb[88].mxu1 %vm54_vm2, %v6408_v63  ;;  %5123 = vrot.lane.b32.xlu0 %v7596_v48, %s7053_s27 }
 0x131   :  { %6757 = vmatpush3.bf16.msra.mxu1 %v2946_v1  ;;  %6758 = vmatprep.mubr.msk.bf16.mxu1 %vm7014_vm0, %v7012_v15  ;;  %v7804_v3 = vpop.permute.xlu1 %3315  ;;  %v6424_v1 = vld [vmem:[%s8444_s1 + $0x68] sm:$0xf] }
 0x132   :  { %6762 = vmatprep.subr.bf16.mxu1 %v7012_v15  ;;  %v3318_v8 = vpop.permute.xlu0 %3317 }
 0x133   :  { %5246 = vrot.lane.b32.xlu1 %v7565_v42, %s7054_s7  ;;  %v3075_v42 = vsel %vm58_vm1, %v3064_v12, 0  ;;  %v3322_v41 = vsel %vm3319_vm5, %v7804_v3, %v3318_v8  ;;  %v5978_v12 = vld [vmem:[%s8443_s0 + $0x2] sm:$0x3f] }
 0x134   :  { %5248 = vrot.lane.b32.xlu0 %v7573_v44, %s7054_s7  ;;  %v5358_v44 = vcombine.high %v5356_v5, %v5356_v5  ;;  %v3333_v50 = vsel %vm58_vm1, %v3322_v41, 0 }
 0x135   :  { %6410 = vmatmul.mubr.msk.bf16.vlgmr.msra.gmra.mrb[88].mxu0 %vm54_vm2, %v6408_v63  ;;  %v7824_v23 = vpop.permute.xlu1 %3440  ;;  %v5862_v63 = vrot.slane %v5853_v56, %v7086_v7 }
 0x136   :  { %2949 = vmatpush1.bf16.msra.mxu0 %v2940_v17  ;;  %2980 = vmatprep.mubr.bf16.mxu0 %v7015_v22  ;;  %v7828_v24 = vpop.permute.xlu0 %3442  ;;  %v5372_v29 = vrot.slane %v5358_v44, %v7086_v7  ;;  %v5869_v44 = vrot.slane %v5855_v6, %v7086_v7 }
 0x137   :  { %6417 = vmatprep.subr.msk.bf16.mxu0 %vm58_vm1, %v3063_v13  ;;  %5250 = vrot.lane.b32.xlu1 %v7584_v20, %s7054_s7  ;;  %v3062_v20 = vsel %vm3061_vm3, %v7740_v18, %v7744_v19  ;;  %v3321_v18 = vsel %vm3319_vm5, %v7796_v2, %v7804_v3  ;;  %v5728_v19 = vld [vmem:[%s8443_s0 + $0x2] sm:$0x3f]  ;;  %v5870_v8 = vcombine.high %v5862_v63, %v5862_v63  ;;  %vm4351_vm3 = vcmask 277504  }
 0x138   :  { %6759 = vmatmul.mubr.msk.bf16.vlgmr.msra.gmra.mrb[92].mxu1 %vm54_vm2, %v6412_v21  ;;  %5252 = vrot.lane.b32.xlu0 %v7596_v48, %s7054_s7  ;;  %v3193_v48 = vsel %vm3190_vm4, %v3187_v57, %v3189_v59  ;;  %v3069_v32 = vsel %vm58_vm1, %v3062_v20, 0  ;;  %v5737_v53 = vrot.slane %v5728_v19, %v7086_v7  ;;  %v5730_v54 = vcombine.high %v5728_v19, %v5728_v19  ;;  %s7058_s7 = smov 118  }
 0x139   :  { %6763 = vmatpush3.bf16.msra.mxu1 %v3075_v42  ;;  %6764 = vmatprep.mubr.msk.bf16.mxu1 %vm7014_vm0, %v7012_v15  ;;  %v7839_v27 = vpop.permute.xlu1 %3444  ;;  %v3204_v9 = vsel %vm58_vm1, %v3193_v48, 0  ;;  %v3320_v57 = vsel %vm3319_vm5, %v7792_v0, %v7796_v2  ;;  %vm4480_vm4 = vcmask 146432   ;;  %vm4609_vm5 = vcmask 138240  }
 0x13a   :  { %6768 = vmatprep.subr.bf16.mxu1 %v7012_v15  ;;  %v3447_v28 = vpop.permute.xlu0 %3446  ;;  %v5745_v60 = vcombine.high %v5737_v53, %v5737_v53  ;;  %v3450_v61 = vsel %vm3448_vm9, %v7828_v24, %v7839_v27  ;;  %v5744_v62 = vrot.slane %v5730_v54, %v7086_v7  ;;  %v3327_v0 = vsel %vm58_vm1, %v3320_v57, 0 }
 0x13b   :  { %5374 = vrot.lane.b32.xlu1 %v5365_v14, %s7017_s25  ;;  %v3451_v59 = vsel %vm3448_vm9, %v7839_v27, %v3447_v28  ;;  %v3449_v14 = vsel %vm3448_vm9, %v7824_v23, %v7828_v24  ;;  %v6428_v23 = vld [vmem:[%s8444_s1 + $0x6c] sm:$0xf]  ;;  %v5980_v27 = vcombine.high %v5978_v12, %v5978_v12  ;;  %vm4738_vm9 = vcmask 130048  }
 0x13c   :  { %5376 = vrot.lane.b32.xlu0 %v5373_v25, %s7017_s25  ;;  %v3462_v3 = vsel %vm58_vm1, %v3451_v59, 0  ;;  %v5987_v25 = vrot.slane %v5978_v12, %v7086_v7  ;;  %v3456_v20 = vsel %vm58_vm1, %v3449_v14, 0 }
 0x13d   :  { %6414 = vmatmul.mubr.msk.bf16.vlgmr.msra.gmra.mrb[92].mxu0 %vm54_vm2, %v6412_v21  ;;  %v7857_v34 = vpop.permute.xlu1 %3569  ;;  %v5994_v11 = vrot.slane %v5980_v27, %v7086_v7 }
 0x13e   :  { %3078 = vmatpush1.bf16.msra.mxu0 %v3069_v32  ;;  %3109 = vmatprep.mubr.bf16.mxu0 %v7015_v22  ;;  %v7864_v35 = vpop.permute.xlu0 %3571  ;;  %v5995_v32 = vcombine.high %v5987_v25, %v5987_v25 }
 0x13f   :  { %6421 = vmatprep.subr.msk.bf16.mxu0 %vm58_vm1, %v3192_v31  ;;  %5378 = vrot.lane.b32.xlu1 %v5372_v29, %s7017_s25  ;;  %v6103_v29 = vld [vmem:[%s8443_s0 + $0x2] sm:$0x3f] }
 0x140   :  { %6765 = vmatmul.mubr.msk.bf16.vlgmr.msra.gmra.mrb[96].mxu1 %vm54_vm2, %v6416_v33  ;;  %5498 = vrot.lane.b32.xlu0 %v5489_v30, %s7018_s28 }
 0x141   :  { %6769 = vmatpush3.bf16.msra.mxu1 %v3204_v9  ;;  %6770 = vmatprep.mubr.msk.bf16.mxu1 %vm7014_vm0, %v7012_v15  ;;  %v7874_v39 = vpop.permute.xlu1 %3573  ;;  %v6112_v9 = vrot.slane %v6103_v29, %v7086_v7 }
 0x142   :  { %6774 = vmatprep.subr.bf16.mxu1 %v7012_v15  ;;  %v7880_v16 = vpop.permute.xlu0 %3575  ;;  %v3579_v24 = vsel %vm3577_vm10, %v7864_v35, %v7874_v39 }
 0x143   :  { %5500 = vrot.lane.b32.xlu1 %v5497_v36, %s7018_s28  ;;  %v3580_v42 = vsel %vm3577_vm10, %v7874_v39, %v7880_v16 }
 0x144   :  { %5502 = vrot.lane.b32.xlu0 %v5496_v37, %s7018_s28  ;;  %v3591_v30 = vsel %vm58_vm1, %v3580_v42, 0 }
 0x145   :  { %6418 = vmatmul.mubr.msk.bf16.vlgmr.msra.gmra.mrb[96].mxu0 %vm54_vm2, %v6416_v33  ;;  %v7897_v49 = vpop.permute.xlu1 %3698 }
 0x146   :  { %3207 = vmatpush1.bf16.msra.mxu0 %v3198_v46  ;;  %3238 = vmatprep.mubr.bf16.mxu0 %v7015_v22  ;;  %v7901_v51 = vpop.permute.xlu0 %3700 }
 0x147   :  { %6425 = vmatprep.subr.msk.bf16.mxu0 %vm58_vm1, %v3321_v18  ;;  %5622 = vrot.lane.b32.xlu1 %v5613_v38, %s7019_s4  ;;  %v3578_v38 = vsel %vm3577_vm10, %v7857_v34, %v7864_v35  ;;  %v6105_v18 = vcombine.high %v6103_v29, %v6103_v29  ;;  %v6120_v34 = vcombine.high %v6112_v9, %v6112_v9  ;;  %vm4867_vm10 = vcmask 121856  }
 0x148   :  { %6771 = vmatmul.mubr.msk.bf16.vlgmr.msra.gmra.mrb[100].mxu1 %vm54_vm2, %v6420_v47  ;;  %5624 = vrot.lane.b32.xlu0 %v5621_v45, %s7019_s4  ;;  %v3585_v35 = vsel %vm58_vm1, %v3578_v38, 0 }
 0x149   :  { %6775 = vmatpush3.bf16.msra.mxu1 %v3333_v50  ;;  %6776 = vmatprep.mubr.msk.bf16.mxu1 %vm7014_vm0, %v7012_v15  ;;  %v7911_v55 = vpop.permute.xlu1 %3702  ;;  %v6119_v56 = vrot.slane %v6105_v18, %v7086_v7 }
 0x14a   :  { %6780 = vmatprep.subr.bf16.mxu1 %v7012_v15  ;;  %v7920_v58 = vpop.permute.xlu0 %3704  ;;  %v3708_v46 = vsel %vm3706_vm11, %v7901_v51, %v7911_v55 }
 0x14b   :  { %5626 = vrot.lane.b32.xlu1 %v5620_v52, %s7019_s4  ;;  %v3709_v43 = vsel %vm3706_vm11, %v7911_v55, %v7920_v58 }
 0x14c   :  { %5746 = vrot.lane.b32.xlu0 %v5737_v53, %s7055_s20  ;;  %v3720_v53 = vsel %vm58_vm1, %v3709_v43, 0 }
 0x14d   :  { %6422 = vmatmul.mubr.msk.bf16.vlgmr.msra.gmra.mrb[100].mxu0 %vm54_vm2, %v6420_v47  ;;  %v7935_v2 = vpop.permute.xlu1 %3827  ;;  %v6432_v47 = vld [vmem:[%s8444_s1 + $0x70] sm:$0xf] }
 0x14e   :  { %3336 = vmatpush1.bf16.msra.mxu0 %v3327_v0  ;;  %3367 = vmatprep.mubr.bf16.mxu0 %v7015_v22  ;;  %v7939_v5 = vpop.permute.xlu0 %3829 }
 0x14f   :  { %6429 = vmatprep.subr.msk.bf16.mxu0 %vm58_vm1, %v3450_v61  ;;  %5748 = vrot.lane.b32.xlu1 %v5745_v60, %s7055_s20  ;;  %v3707_v61 = vsel %vm3706_vm11, %v7897_v49, %v7901_v51  ;;  %v6436_v51 = vld [vmem:[%s8444_s1 + $0x74] sm:$0xf]  ;;  %vm4996_vm11 = vcmask 113664  }
 0x150   :  { %6777 = vmatmul.mubr.msk.bf16.vlgmr.msra.gmra.mrb[104].mxu1 %vm54_vm2, %v6424_v1  ;;  %5750 = vrot.lane.b32.xlu0 %v5744_v62, %s7055_s20  ;;  %v3714_v49 = vsel %vm58_vm1, %v3707_v61, 0 }
 0x151   :  { %6781 = vmatpush3.bf16.msra.mxu1 %v3462_v3  ;;  %6782 = vmatprep.mubr.msk.bf16.mxu1 %vm7014_vm0, %v7012_v15  ;;  %v7948_v13 = vpop.permute.xlu1 %3831 }
 0x152   :  { %6786 = vmatprep.subr.bf16.mxu1 %v7012_v15  ;;  %v7954_v17 = vpop.permute.xlu0 %3833  ;;  %v3837_v12 = vsel %vm3835_vm12, %v7939_v5, %v7948_v13 }
 0x153   :  { %v143_v21 = vpop.f32.mrb[0].mxu1  ;;  %5871 = vrot.lane.b32.xlu1 %v5862_v63, %s7056_s24  ;;  %v3838_v3 = vsel %vm3835_vm12, %v7948_v13, %v7954_v17 }
 0x154   :  { %v6622_v26 = vpop.f32.mrb[1].mxu1  ;;  %5873 = vrot.lane.b32.xlu0 %v5870_v8, %s7056_s24  ;;  %v3849_v17 = vsel %vm58_vm1, %v3838_v3, 0 }
 0x155   :  { %6426 = vmatmul.mubr.msk.bf16.vlgmr.msra.gmra.mrb[104].mxu0 %vm54_vm2, %v6424_v1  ;;  %v146_v28 = vpop.f32.mrb[2].mxu1  ;;  %v7969_v48 = vpop.permute.xlu1 %3956 }
 0x156   :  { %3465 = vmatpush1.bf16.msra.mxu0 %v3456_v20  ;;  %v6623_v31 = vpop.f32.mrb[3].mxu1  ;;  %3496 = vmatprep.mubr.bf16.mxu0 %v7015_v22  ;;  %v7976_v10 = vpop.permute.xlu0 %3958 }
 0x157   :  { %6433 = vmatprep.subr.msk.bf16.mxu0 %vm58_vm1, %v3579_v24  ;;  %5875 = vrot.lane.b32.xlu1 %v5869_v44, %s7056_s24  ;;  %v3836_v24 = vsel %vm3835_vm12, %v7935_v2, %v7939_v5  ;;  %v6440_v5 = vld [vmem:[%s8444_s1 + $0x78] sm:$0xf]  ;;  %v3965_v18 = vsel %vm3964_vm13, %v7969_v48, %v7976_v10  ;;  %vm5125_vm12 = vcmask 105472  }
 0x158   :  { %v102_v33 = vpop.f32.mrb[0].mxu0  ;;  %6783 = vmatmul.mubr.msk.bf16.vlgmr.msra.gmra.mrb[108].mxu1 %vm54_vm2, %v6428_v23  ;;  %5996 = vrot.lane.b32.xlu0 %v5987_v25, %s7057_s5  ;;  %v3843_v2 = vsel %vm58_vm1, %v3836_v24, 0  ;;  %v3972_v48 = vsel %vm58_vm1, %v3965_v18, 0 }
 0x159   :  { %v104_v36 = vpop.f32.mrb[1].mxu0  ;;  %6787 = vmatpush3.bf16.msra.mxu1 %v3591_v30  ;;  %6788 = vmatprep.mubr.msk.bf16.mxu1 %vm7014_vm0, %v7012_v15  ;;  %v7984_v37 = vpop.permute.xlu1 %3960 }
 0x15a   :  { %v106_v39 = vpop.f32.mrb[2].mxu0  ;;  %6792 = vmatprep.subr.bf16.mxu1 %v7012_v15  ;;  %v7990_v40 = vpop.permute.xlu0 %3962 }
 0x15b   :  { %v107_v16 = vpop.f32.mrb[3].mxu0  ;;  %v236_v41 = vpop.f32.mrb[4].mxu1  ;;  %5998 = vrot.lane.b32.xlu1 %v5995_v32, %s7057_s5  ;;  %v3967_v31 = vsel %vm3964_vm13, %v7984_v37, %v7990_v40 }
 0x15c   :  { %v237_v45 = vadd.f32 %v236_v41, %v143_v21  ;;  %v6628_v19 = vpop.f32.mrb[5].mxu1  ;;  %6000 = vrot.lane.b32.xlu0 %v5994_v11, %s7057_s5  ;;  %v3966_v11 = vsel %vm3964_vm13, %v7976_v10, %v7984_v37  ;;  %v3978_v38 = vsel %vm58_vm1, %v3967_v31, 0  ;;  %v6444_v10 = vld [vmem:[%s8444_s1 + $0x7c] sm:$0xf]  ;;  %vm5254_vm13 = vcmask 97280  }
 0x15d   :  { %6430 = vmatmul.mubr.msk.bf16.vlgmr.msra.gmra.mrb[108].mxu0 %vm54_vm2, %v6428_v23  ;;  %v239_v50 = vpop.f32.mrb[6].mxu1  ;;  %v8003_v52 = vpop.permute.xlu1 %4085 }
 0x15e   :  { %3594 = vmatpush1.bf16.msra.mxu0 %v3585_v35  ;;  %v6629_v54 = vpop.f32.mrb[7].mxu1  ;;  %3625 = vmatprep.mubr.bf16.mxu0 %v7015_v22  ;;  %v8007_v55 = vpop.permute.xlu0 %4087 }
 0x15f   :  { %6437 = vmatprep.subr.msk.bf16.mxu0 %vm58_vm1, %v3708_v46  ;;  %6121 = vrot.lane.b32.xlu1 %v6112_v9, %s7058_s7 }
 0x160   :  { %v195_v57 = vpop.f32.mrb[4].mxu0  ;;  %6789 = vmatmul.mubr.msk.bf16.vlgmr.msra.gmra.mrb[112].mxu1 %vm54_vm2, %v6432_v47  ;;  %6123 = vrot.lane.b32.xlu0 %v6120_v34, %s7058_s7 }
 0x161   :  { %v196_v58 = vadd.f32 %v195_v57, %v102_v33  ;;  %v197_v59 = vpop.f32.mrb[5].mxu0  ;;  %6793 = vmatpush3.bf16.msra.mxu1 %v3720_v53  ;;  %6794 = vmatprep.mubr.msk.bf16.mxu1 %vm7014_vm0, %v7012_v15  ;;  %v8014_v60 = vpop.permute.xlu1 %4089 }
 0x162   :  { %v198_v62 = vadd.f32 %v197_v59, %v104_v36  ;;  %v199_v63 = vpop.f32.mrb[6].mxu0  ;;  %6798 = vmatprep.subr.bf16.mxu1 %v7012_v15  ;;  %v8020_v7 = vpop.permute.xlu0 %4091  ;;  %v4095_v54 = vsel %vm4093_vm14, %v8007_v55, %v8014_v60 }
 0x163   :  { %v200_v0 = vpop.f32.mrb[7].mxu0  ;;  %v358_v1 = vpop.f32.mrb[8].mxu1  ;;  %6125 = vrot.lane.b32.xlu1 %v6119_v56, %s7058_s7 }
 0x164   :  { %v366_v6 = vadd.f32 %v358_v1, %v237_v45  ;;  %v6634_v8 = vpop.f32.mrb[9].mxu1  ;;  %v4094_v0 = vsel %vm4093_vm14, %v8003_v52, %v8007_v55  ;;  %v6448_v55 = vld [vmem:[%s8444_s1 + $0x80] sm:$0xf] }
 0x165   :  { %6434 = vmatmul.mubr.msk.bf16.vlgmr.msra.gmra.mrb[112].mxu0 %vm54_vm2, %v6432_v47  ;;  %v361_v14 = vpop.f32.mrb[10].mxu1  ;;  %v8033_v21 = vpop.permute.xlu1 %4214  ;;  %v4096_v47 = vsel %vm4093_vm14, %v8014_v60, %v8020_v7  ;;  %v4101_v52 = vsel %vm58_vm1, %v4094_v0, 0  ;;  %vm6127_vm14 = vcmask 965632  }
 0x166   :  { %3723 = vmatpush1.bf16.msra.mxu0 %v3714_v49  ;;  %v6635_v42 = vpop.f32.mrb[11].mxu1  ;;  %3754 = vmatprep.mubr.bf16.mxu0 %v7015_v22  ;;  %v8037_v44 = vpop.permute.xlu0 %4216 }
 0x167   :  { %6441 = vmatprep.subr.msk.bf16.mxu0 %vm58_vm1, %v3837_v12 }
 0x168   :  { %v317_v13 = vpop.f32.mrb[8].mxu0  ;;  %6795 = vmatmul.mubr.msk.bf16.vlgmr.msra.gmra.mrb[116].mxu1 %vm54_vm2, %v6436_v51 }
 0x169   :  { %v364_v25 = vadd.f32 %v317_v13, %v196_v58  ;;  %v319_v26 = vpop.f32.mrb[9].mxu0  ;;  %6799 = vmatpush3.bf16.msra.mxu1 %v3849_v17  ;;  %6800 = vmatprep.mubr.msk.bf16.mxu1 %vm7014_vm0, %v7012_v15  ;;  %v8043_v23 = vpop.permute.xlu1 %4218  ;;  %v4107_v58 = vsel %vm58_vm1, %v4096_v47, 0 }
 0x16a   :  { %v365_v27 = vadd.f32 %v319_v26, %v198_v62  ;;  %v321_v20 = vpop.f32.mrb[10].mxu0  ;;  %6804 = vmatprep.subr.bf16.mxu1 %v7012_v15  ;;  %v8049_v28 = vpop.permute.xlu0 %4220  ;;  %v4224_v17 = vsel %vm4222_vm15, %v8037_v44, %v8043_v23 }
 0x16b   :  { %v322_v29 = vpop.f32.mrb[11].mxu0  ;;  %v483_v30 = vpop.f32.mrb[12].mxu1  ;;  %v4225_v49 = vsel %vm4222_vm15, %v8043_v23, %v8049_v28 }
 0x16c   :  { %v491_v32 = vadd.f32 %v483_v30, %v366_v6  ;;  %v6640_v33 = vpop.f32.mrb[13].mxu1  ;;  %v4223_v29 = vsel %vm4222_vm15, %v8033_v21, %v8037_v44  ;;  %v6452_v44 = vld [vmem:[%s8444_s1 + $0x84] sm:$0xf] }
 0x16d   :  { %6438 = vmatmul.mubr.msk.bf16.vlgmr.msra.gmra.mrb[116].mxu0 %vm54_vm2, %v6436_v51  ;;  %v486_v9 = vpop.f32.mrb[14].mxu1  ;;  %v8062_v36 = vpop.permute.xlu1 %4343  ;;  %v4230_v21 = vsel %vm58_vm1, %v4223_v29, 0 }
 0x16e   :  { %3852 = vmatpush1.bf16.msra.mxu0 %v3843_v2  ;;  %v6641_v39 = vpop.f32.mrb[15].mxu1  ;;  %3883 = vmatprep.mubr.bf16.mxu0 %v7015_v22  ;;  %v8066_v40 = vpop.permute.xlu0 %4345 }
 0x16f   :  { %6445 = vmatprep.subr.msk.bf16.mxu0 %vm58_vm1, %v3966_v11 }
 0x170   :  { %v442_v37 = vpop.f32.mrb[12].mxu0  ;;  %6801 = vmatmul.mubr.msk.bf16.vlgmr.msra.gmra.mrb[120].mxu1 %vm54_vm2, %v6440_v5 }
 0x171   :  { %v489_v16 = vadd.f32 %v442_v37, %v364_v25  ;;  %v444_v41 = vpop.f32.mrb[13].mxu0  ;;  %6805 = vmatpush3.bf16.msra.mxu1 %v3978_v38  ;;  %6806 = vmatprep.mubr.msk.bf16.mxu1 %vm7014_vm0, %v7012_v15  ;;  %v8072_v43 = vpop.permute.xlu1 %4347  ;;  %v4236_v25 = vsel %vm58_vm1, %v4225_v49, 0 }
 0x172   :  { %v490_v45 = vadd.f32 %v444_v41, %v365_v27  ;;  %v446_v19 = vpop.f32.mrb[14].mxu0  ;;  %6810 = vmatprep.subr.bf16.mxu1 %v7012_v15  ;;  %v8078_v46 = vpop.permute.xlu0 %4349  ;;  %v4353_v38 = vsel %vm4351_vm3, %v8066_v40, %v8072_v43 }
 0x173   :  { %v447_v34 = vpop.f32.mrb[15].mxu0  ;;  %v608_v35 = vpop.f32.mrb[16].mxu1  ;;  %v4354_v2 = vsel %vm4351_vm3, %v8072_v43, %v8078_v46 }
 0x174   :  { %v616_v50 = vadd.f32 %v608_v35, %v491_v32  ;;  %v6646_v53 = vpop.f32.mrb[17].mxu1  ;;  %v4352_v34 = vsel %vm4351_vm3, %v8062_v36, %v8066_v40  ;;  %v6456_v36 = vld [vmem:[%s8444_s1 + $0x88] sm:$0xf] }
 0x175   :  { %6442 = vmatmul.mubr.msk.bf16.vlgmr.msra.gmra.mrb[120].mxu0 %vm54_vm2, %v6440_v5  ;;  %v611_v56 = vpop.f32.mrb[18].mxu1  ;;  %v8091_v57 = vpop.permute.xlu1 %4472 }
 0x176   :  { %3981 = vmatpush1.bf16.msra.mxu0 %v3972_v48  ;;  %v6647_v59 = vpop.f32.mrb[19].mxu1  ;;  %4012 = vmatprep.mubr.bf16.mxu0 %v7015_v22  ;;  %v8095_v61 = vpop.permute.xlu0 %4474 }
 0x177   :  { %6449 = vmatprep.subr.msk.bf16.mxu0 %vm58_vm1, %v4095_v54  ;;  %v4359_v59 = vsel %vm58_vm1, %v4352_v34, 0 }
 0x178   :  { %v567_v60 = vpop.f32.mrb[16].mxu0  ;;  %6807 = vmatmul.mubr.msk.bf16.vlgmr.msra.gmra.mrb[124].mxu1 %vm54_vm2, %v6444_v10 }
 0x179   :  { %v614_v62 = vadd.f32 %v567_v60, %v489_v16  ;;  %v569_v63 = vpop.f32.mrb[17].mxu0  ;;  %6811 = vmatpush3.bf16.msra.mxu1 %v4107_v58  ;;  %6812 = vmatprep.mubr.msk.bf16.mxu1 %vm7014_vm0, %v7012_v15  ;;  %v8101_v7 = vpop.permute.xlu1 %4476  ;;  %v4365_v16 = vsel %vm58_vm1, %v4354_v2, 0 }
 0x17a   :  { %v615_v1 = vadd.f32 %v569_v63, %v490_v45  ;;  %v571_v3 = vpop.f32.mrb[18].mxu0  ;;  %6816 = vmatprep.subr.bf16.mxu1 %v7012_v15  ;;  %v8107_v6 = vpop.permute.xlu0 %4478  ;;  %v4482_v58 = vsel %vm4480_vm4, %v8095_v61, %v8101_v7 }
 0x17b   :  { %v572_v8 = vpop.f32.mrb[19].mxu0  ;;  %v733_v12 = vpop.f32.mrb[20].mxu1  ;;  %v4483_v48 = vsel %vm4480_vm4, %v8101_v7, %v8107_v6  ;;  %v4481_v6 = vsel %vm4480_vm4, %v8091_v57, %v8095_v61  ;;  %v6460_v61 = vld [vmem:[%s8444_s1 + $0x8c] sm:$0xf] }
 0x17c   :  { %v741_v51 = vadd.f32 %v733_v12, %v616_v50  ;;  %v6652_v14 = vpop.f32.mrb[21].mxu1  ;;  %v4488_v57 = vsel %vm58_vm1, %v4481_v6, 0 }
 0x17d   :  { %6446 = vmatmul.mubr.msk.bf16.vlgmr.msra.gmra.mrb[124].mxu0 %vm54_vm2, %v6444_v10  ;;  %v736_v42 = vpop.f32.mrb[22].mxu1  ;;  %v8120_v13 = vpop.permute.xlu1 %4601 }
 0x17e   :  { %4110 = vmatpush1.bf16.msra.mxu0 %v4101_v52  ;;  %v6653_v26 = vpop.f32.mrb[23].mxu1  ;;  %4141 = vmatprep.mubr.bf16.mxu0 %v7015_v22  ;;  %v8124_v24 = vpop.permute.xlu0 %4603 }
 0x17f   :  { %6453 = vmatprep.subr.msk.bf16.mxu0 %vm58_vm1, %v4224_v17 }
 0x180   :  { %v692_v23 = vpop.f32.mrb[20].mxu0  ;;  %6813 = vmatmul.mubr.msk.bf16.vlgmr.msra.gmra.mrb[128].mxu1 %vm54_vm2, %v6448_v55 }
 0x181   :  { %v739_v27 = vadd.f32 %v692_v23, %v614_v62  ;;  %v694_v20 = vpop.f32.mrb[21].mxu0  ;;  %6817 = vmatpush3.bf16.msra.mxu1 %v4236_v25  ;;  %6818 = vmatprep.mubr.msk.bf16.mxu1 %vm7014_vm0, %v7012_v15  ;;  %v8130_v28 = vpop.permute.xlu1 %4605  ;;  %v4494_v62 = vsel %vm58_vm1, %v4483_v48, 0 }
 0x182   :  { %v740_v30 = vadd.f32 %v694_v20, %v615_v1  ;;  %v696_v31 = vpop.f32.mrb[22].mxu0  ;;  %6822 = vmatprep.subr.bf16.mxu1 %v7012_v15  ;;  %v8136_v32 = vpop.permute.xlu0 %4607  ;;  %v4611_v42 = vsel %vm4609_vm5, %v8124_v24, %v8130_v28 }
 0x183   :  { %v697_v33 = vpop.f32.mrb[23].mxu0  ;;  %v858_v11 = vpop.f32.mrb[24].mxu1  ;;  %v4612_v17 = vsel %vm4609_vm5, %v8130_v28, %v8136_v32  ;;  %v4610_v31 = vsel %vm4609_vm5, %v8120_v13, %v8124_v24  ;;  %v6464_v13 = vld [vmem:[%s8444_s1 + $0x90] sm:$0xf] }
 0x184   :  { %v866_v5 = vadd.f32 %v858_v11, %v741_v51  ;;  %v6658_v9 = vpop.f32.mrb[25].mxu1  ;;  %v4623_v23 = vsel %vm58_vm1, %v4612_v17, 0 }
 0x185   :  { %6450 = vmatmul.mubr.msk.bf16.vlgmr.msra.gmra.mrb[128].mxu0 %vm54_vm2, %v6448_v55  ;;  %v861_v39 = vpop.f32.mrb[26].mxu1  ;;  %v8149_v37 = vpop.permute.xlu1 %4730 }
 0x186   :  { %4239 = vmatpush1.bf16.msra.mxu0 %v4230_v21  ;;  %v6659_v41 = vpop.f32.mrb[27].mxu1  ;;  %4270 = vmatprep.mubr.bf16.mxu0 %v7015_v22  ;;  %v8153_v18 = vpop.permute.xlu0 %4732  ;;  %v4617_v39 = vsel %vm58_vm1, %v4610_v31, 0 }
 0x187   :  { %6457 = vmatprep.subr.msk.bf16.mxu0 %vm58_vm1, %v4353_v38 }
 0x188   :  { %v817_v43 = vpop.f32.mrb[24].mxu0  ;;  %6819 = vmatmul.mubr.msk.bf16.vlgmr.msra.gmra.mrb[132].mxu1 %vm54_vm2, %v6452_v44 }
 0x189   :  { %v864_v45 = vadd.f32 %v817_v43, %v739_v27  ;;  %v819_v19 = vpop.f32.mrb[25].mxu0  ;;  %6823 = vmatpush3.bf16.msra.mxu1 %v4365_v16  ;;  %6824 = vmatprep.mubr.msk.bf16.mxu1 %vm7014_vm0, %v7012_v15  ;;  %v8159_v46 = vpop.permute.xlu1 %4734 }
 0x18a   :  { %v865_v35 = vadd.f32 %v819_v19, %v740_v30  ;;  %v821_v47 = vpop.f32.mrb[26].mxu0  ;;  %6828 = vmatprep.subr.bf16.mxu1 %v7012_v15  ;;  %v4737_v50 = vpop.permute.xlu0 %4736 }
 0x18b   :  { %v822_v53 = vpop.f32.mrb[27].mxu0  ;;  %v983_v54 = vpop.f32.mrb[28].mxu1  ;;  %v4741_v9 = vsel %vm4738_vm9, %v8159_v46, %v4737_v50 }
 0x18c   :  { %v991_v10 = vadd.f32 %v983_v54, %v866_v5  ;;  %v6664_v56 = vpop.f32.mrb[29].mxu1  ;;  %v4752_v16 = vsel %vm58_vm1, %v4741_v9, 0 }
 0x18d   :  { %6454 = vmatmul.mubr.msk.bf16.vlgmr.msra.gmra.mrb[132].mxu0 %vm54_vm2, %v6452_v44  ;;  %v986_v40 = vpop.f32.mrb[30].mxu1  ;;  %v8176_v60 = vpop.permute.xlu1 %4859  ;;  %v4740_v44 = vsel %vm4738_vm9, %v8153_v18, %v8159_v46 }
 0x18e   :  { %4368 = vmatpush1.bf16.msra.mxu0 %v4359_v59  ;;  %v6665_v63 = vpop.f32.mrb[31].mxu1  ;;  %4399 = vmatprep.mubr.bf16.mxu0 %v7015_v22  ;;  %v8180_v0 = vpop.permute.xlu0 %4861 }
 0x18f   :  { %6461 = vmatprep.subr.msk.bf16.mxu0 %vm58_vm1, %v4482_v58  ;;  %v4868_v6 = vsel %vm4867_vm10, %v8176_v60, %v8180_v0  ;;  %v6472_v60 = vld [vmem:[%s8444_s1 + $0x98] sm:$0xf] }
 0x190   :  { %v942_v7 = vpop.f32.mrb[28].mxu0  ;;  %6825 = vmatmul.mubr.msk.bf16.vlgmr.msra.gmra.mrb[136].mxu1 %vm54_vm2, %v6456_v36 }
 0x191   :  { %v989_v1 = vadd.f32 %v942_v7, %v864_v45  ;;  %v944_v3 = vpop.f32.mrb[29].mxu0  ;;  %6829 = vmatpush3.bf16.msra.mxu1 %v4494_v62  ;;  %6830 = vmatprep.mubr.msk.bf16.mxu1 %vm7014_vm0, %v7012_v15  ;;  %v8190_v49 = vpop.permute.xlu1 %4863 }
 0x192   :  { %v990_v8 = vadd.f32 %v944_v3, %v865_v35  ;;  %v946_v12 = vpop.f32.mrb[30].mxu0  ;;  %6834 = vmatprep.subr.bf16.mxu1 %v7012_v15  ;;  %v4866_v25 = vpop.permute.xlu0 %4865  ;;  %v4739_v35 = vsel %vm4738_vm9, %v8149_v37, %v8153_v18  ;;  %v4869_v58 = vsel %vm4867_vm10, %v8180_v0, %v8190_v49  ;;  %v6468_v37 = vld [vmem:[%s8444_s1 + $0x94] sm:$0xf] }
 0x193   :  { %v947_v51 = vpop.f32.mrb[31].mxu0  ;;  %v1108_v14 = vpop.f32.mrb[32].mxu1  ;;  %v4870_v48 = vsel %vm4867_vm10, %v8190_v49, %v4866_v25 }
 0x194   :  { %v1116_v52 = vadd.f32 %v1108_v14, %v991_v10  ;;  %v6670_v55 = vpop.f32.mrb[33].mxu1  ;;  %v4881_v40 = vsel %vm58_vm1, %v4870_v48, 0 }
 0x195   :  { %6458 = vmatmul.mubr.msk.bf16.vlgmr.msra.gmra.mrb[136].mxu0 %vm54_vm2, %v6456_v36  ;;  %v1111_v26 = vpop.f32.mrb[34].mxu1  ;;  %v8207_v28 = vpop.permute.xlu1 %4988  ;;  %v4746_v36 = vsel %vm58_vm1, %v4739_v35, 0 }
 0x196   :  { %4497 = vmatpush1.bf16.msra.mxu0 %v4488_v57  ;;  %v6671_v27 = vpop.f32.mrb[35].mxu1  ;;  %4528 = vmatprep.mubr.bf16.mxu0 %v7015_v22  ;;  %v8215_v11 = vpop.permute.xlu0 %4990  ;;  %v4875_v57 = vsel %vm58_vm1, %v4868_v6, 0 }
 0x197   :  { %6465 = vmatprep.subr.msk.bf16.mxu0 %vm58_vm1, %v4611_v42 }
 0x198   :  { %v1067_v20 = vpop.f32.mrb[32].mxu0  ;;  %6831 = vmatmul.mubr.msk.bf16.vlgmr.msra.gmra.mrb[140].mxu1 %vm54_vm2, %v6460_v61 }
 0x199   :  { %v1114_v29 = vadd.f32 %v1067_v20, %v989_v1  ;;  %v1069_v30 = vpop.f32.mrb[33].mxu0  ;;  %6835 = vmatpush3.bf16.msra.mxu1 %v4623_v23  ;;  %6836 = vmatprep.mubr.msk.bf16.mxu1 %vm7014_vm0, %v7012_v15  ;;  %v4993_v43 = vpop.permute.xlu1 %4992 }
 0x19a   :  { %v1115_v32 = vadd.f32 %v1069_v30, %v990_v8  ;;  %v1071_v33 = vpop.f32.mrb[34].mxu0  ;;  %6840 = vmatprep.subr.bf16.mxu1 %v7012_v15  ;;  %v4995_v19 = vpop.permute.xlu0 %4994  ;;  %v4998_v42 = vsel %vm4996_vm11, %v8215_v11, %v4993_v43  ;;  %v4997_v30 = vsel %vm4996_vm11, %v8207_v28, %v8215_v11  ;;  %v6476_v28 = vld [vmem:[%s8444_s1 + $0x9c] sm:$0xf] }
 0x19b   :  { %v1072_v2 = vpop.f32.mrb[35].mxu0  ;;  %v1233_v5 = vpop.f32.mrb[36].mxu1  ;;  %v4999_v17 = vsel %vm4996_vm11, %v4993_v43, %v4995_v19 }
 0x19c   :  { %v1241_v38 = vadd.f32 %v1233_v5, %v1116_v52  ;;  %v6676_v21 = vpop.f32.mrb[37].mxu1 }
 0x19d   :  { %6462 = vmatmul.mubr.msk.bf16.vlgmr.msra.gmra.mrb[140].mxu0 %vm54_vm2, %v6460_v61  ;;  %v1236_v24 = vpop.f32.mrb[38].mxu1  ;;  %v8242_v59 = vpop.permute.xlu1 %5117  ;;  %v5010_v61 = vsel %vm58_vm1, %v4999_v17, 0 }
 0x19e   :  { %4626 = vmatpush1.bf16.msra.mxu0 %v4617_v39  ;;  %v6677_v41 = vpop.f32.mrb[39].mxu1  ;;  %4657 = vmatprep.mubr.bf16.mxu0 %v7015_v22  ;;  %v8251_v63 = vpop.permute.xlu0 %5119  ;;  %v5004_v39 = vsel %vm58_vm1, %v4997_v30, 0 }
 0x19f   :  { %6469 = vmatprep.subr.msk.bf16.mxu0 %vm58_vm1, %v4740_v44 }
 0x1a0   :  { %v1192_v45 = vpop.f32.mrb[36].mxu0  ;;  %6837 = vmatmul.mubr.msk.bf16.vlgmr.msra.gmra.mrb[144].mxu1 %vm54_vm2, %v6464_v13 }
 0x1a1   :  { %v1239_v46 = vadd.f32 %v1192_v45, %v1114_v29  ;;  %v1194_v34 = vpop.f32.mrb[37].mxu0  ;;  %6841 = vmatpush3.bf16.msra.mxu1 %v4752_v16  ;;  %6842 = vmatprep.mubr.msk.bf16.mxu1 %vm7014_vm0, %v7012_v15  ;;  %v5122_v49 = vpop.permute.xlu1 %5121 }
 0x1a2   :  { %v1240_v47 = vadd.f32 %v1194_v34, %v1115_v32  ;;  %v1196_v50 = vpop.f32.mrb[38].mxu0  ;;  %6846 = vmatprep.subr.bf16.mxu1 %v7012_v15  ;;  %v5124_v25 = vpop.permute.xlu0 %5123  ;;  %v5127_v44 = vsel %vm5125_vm12, %v8251_v63, %v5122_v49 }
 0x1a3   :  { %v1197_v53 = vpop.f32.mrb[39].mxu0  ;;  %v1358_v54 = vpop.f32.mrb[40].mxu1  ;;  %v5128_v9 = vsel %vm5125_vm12, %v5122_v49, %v5124_v25 }
 0x1a4   :  { %v1366_v10 = vadd.f32 %v1358_v54, %v1241_v38  ;;  %v6682_v56 = vpop.f32.mrb[41].mxu1 }
 0x1a5   :  { %6466 = vmatmul.mubr.msk.bf16.vlgmr.msra.gmra.mrb[144].mxu0 %vm54_vm2, %v6464_v13  ;;  %v1361_v18 = vpop.f32.mrb[42].mxu1  ;;  %v8273_v27 = vpop.permute.xlu1 %5246  ;;  %v5139_v13 = vsel %vm58_vm1, %v5128_v9, 0 }
 0x1a6   :  { %4755 = vmatpush1.bf16.msra.mxu0 %v4746_v36  ;;  %v6683_v62 = vpop.f32.mrb[43].mxu1  ;;  %4786 = vmatprep.mubr.bf16.mxu0 %v7015_v22  ;;  %v5249_v33 = vpop.permute.xlu0 %5248 }
 0x1a7   :  { %6473 = vmatprep.subr.msk.bf16.mxu0 %vm58_vm1, %v4869_v58 }
 0x1a8   :  { %v1317_v7 = vpop.f32.mrb[40].mxu0  ;;  %6843 = vmatmul.mubr.msk.bf16.vlgmr.msra.gmra.mrb[148].mxu1 %vm54_vm2, %v6468_v37 }
 0x1a9   :  { %v1364_v1 = vadd.f32 %v1317_v7, %v1239_v46  ;;  %v1319_v3 = vpop.f32.mrb[41].mxu0  ;;  %6847 = vmatpush3.bf16.msra.mxu1 %v4881_v40  ;;  %6848 = vmatprep.mubr.msk.bf16.mxu1 %vm7014_vm0, %v7012_v15  ;;  %v5251_v16 = vpop.permute.xlu1 %5250  ;;  %v5126_v46 = vsel %vm5125_vm12, %v8242_v59, %v8251_v63  ;;  %v6480_v59 = vld [vmem:[%s8444_s1 + $0xa0] sm:$0xf] }
 0x1aa   :  { %v1365_v8 = vadd.f32 %v1319_v3, %v1240_v47  ;;  %v1321_v12 = vpop.f32.mrb[42].mxu0  ;;  %6852 = vmatprep.subr.bf16.mxu1 %v7012_v15  ;;  %v5253_v43 = vpop.permute.xlu0 %5252  ;;  %v5256_v56 = vsel %vm5254_vm13, %v5249_v33, %v5251_v16  ;;  %v5133_v58 = vsel %vm58_vm1, %v5126_v46, 0  ;;  %v5255_v3 = vsel %vm5254_vm13, %v8273_v27, %v5249_v33 }
 0x1ab   :  { %v1322_v51 = vpop.f32.mrb[43].mxu0  ;;  %v1483_v14 = vpop.f32.mrb[44].mxu1  ;;  %v5257_v54 = vsel %vm5254_vm13, %v5251_v16, %v5253_v43 }
 0x1ac   :  { %v1491_v52 = vadd.f32 %v1483_v14, %v1366_v10  ;;  %v6688_v55 = vpop.f32.mrb[45].mxu1 }
 0x1ad   :  { %6470 = vmatmul.mubr.msk.bf16.vlgmr.msra.gmra.mrb[148].mxu0 %vm54_vm2, %v6468_v37  ;;  %v1486_v0 = vpop.f32.mrb[46].mxu1  ;;  %v5375_v47 = vpop.permute.xlu1 %5374  ;;  %v5268_v37 = vsel %vm58_vm1, %v5257_v54, 0  ;;  %v5262_v55 = vsel %vm58_vm1, %v5255_v3, 0 }
 0x1ae   :  { %4884 = vmatpush1.bf16.msra.mxu0 %v4875_v57  ;;  %v6689_v26 = vpop.f32.mrb[47].mxu1  ;;  %4915 = vmatprep.mubr.bf16.mxu0 %v7015_v22  ;;  %v5377_v40 = vpop.permute.xlu0 %5376 }
 0x1af   :  { %6477 = vmatprep.subr.msk.bf16.mxu0 %vm58_vm1, %v4998_v42  ;;  %v6484_v42 = vld [vmem:[%s8444_s1 + $0xa4] sm:$0xf] }
 0x1b0   :  { %v1442_v23 = vpop.f32.mrb[44].mxu0  ;;  %6849 = vmatmul.mubr.msk.bf16.vlgmr.msra.gmra.mrb[152].mxu1 %vm54_vm2, %v6472_v60 }
 0x1b1   :  { %v1489_v20 = vadd.f32 %v1442_v23, %v1364_v1  ;;  %v1444_v29 = vpop.f32.mrb[45].mxu0  ;;  %6853 = vmatpush3.bf16.msra.mxu1 %v5010_v61  ;;  %6854 = vmatprep.mubr.msk.bf16.mxu1 %vm7014_vm0, %v7012_v15  ;;  %v5379_v63 = vpop.permute.xlu1 %5378 }
 0x1b2   :  { %v1490_v31 = vadd.f32 %v1444_v29, %v1365_v8  ;;  %v1446_v32 = vpop.f32.mrb[46].mxu0  ;;  %6858 = vmatprep.subr.bf16.mxu1 %v7012_v15  ;;  %v5499_v12 = vpop.permute.xlu0 %5498  ;;  %v5392_v57 = vsel %vm58_vm1, %v5379_v63, 0 }
 0x1b3   :  { %v1447_v2 = vpop.f32.mrb[47].mxu0  ;;  %v1608_v5 = vpop.f32.mrb[48].mxu1 }
 0x1b4   :  { %v1616_v38 = vadd.f32 %v1608_v5, %v1491_v52  ;;  %v6694_v21 = vpop.f32.mrb[49].mxu1  ;;  %v5381_v52 = vsel %vm518_vm6, %v5377_v40, %v5379_v63 }
 0x1b5   :  { %6474 = vmatmul.mubr.msk.bf16.vlgmr.msra.gmra.mrb[152].mxu0 %vm54_vm2, %v6472_v60  ;;  %v1611_v11 = vpop.f32.mrb[50].mxu1  ;;  %v5501_v0 = vpop.permute.xlu1 %5500  ;;  %v6488_v21 = vld [vmem:[%s8444_s1 + $0xa8] sm:$0xf] }
 0x1b6   :  { %5013 = vmatpush1.bf16.msra.mxu0 %v5004_v39  ;;  %v6695_v24 = vpop.f32.mrb[51].mxu1  ;;  %5044 = vmatprep.mubr.bf16.mxu0 %v7015_v22  ;;  %v5503_v26 = vpop.permute.xlu0 %5502  ;;  %v5504_v43 = vsel %vm643_vm7, %v5499_v12, %v5501_v0 }
 0x1b7   :  { %6481 = vmatprep.subr.msk.bf16.mxu0 %vm58_vm1, %v5127_v44  ;;  %v5505_v9 = vsel %vm643_vm7, %v5501_v0, %v5503_v26  ;;  %v5516_v39 = vsel %vm58_vm1, %v5503_v26, 0  ;;  %v5510_v54 = vsel %vm58_vm1, %v5504_v43, 0  ;;  %vm5877_vm7 = vcmask 982016  }
 0x1b8   :  { %v1567_v41 = vpop.f32.mrb[48].mxu0  ;;  %6855 = vmatmul.mubr.msk.bf16.vlgmr.msra.gmra.mrb[156].mxu1 %vm54_vm2, %v6476_v28 }
 0x1b9   :  { %v1614_v45 = vadd.f32 %v1567_v41, %v1489_v20  ;;  %v1569_v19 = vpop.f32.mrb[49].mxu0  ;;  %6859 = vmatpush3.bf16.msra.mxu1 %v5139_v13  ;;  %6860 = vmatprep.mubr.msk.bf16.mxu1 %vm7014_vm0, %v7012_v15  ;;  %v5380_v20 = vsel %vm518_vm6, %v5375_v47, %v5377_v40  ;;  %vm5752_vm6 = vcmask 990208  }
 0x1ba   :  { %v1615_v34 = vadd.f32 %v1569_v19, %v1490_v31  ;;  %v1571_v35 = vpop.f32.mrb[50].mxu0  ;;  %6864 = vmatprep.subr.bf16.mxu1 %v7012_v15  ;;  %v5623_v31 = vpop.permute.xlu1 %5622 }
 0x1bb   :  { %v1572_v50 = vpop.f32.mrb[51].mxu0  ;;  %v1733_v53 = vpop.f32.mrb[52].mxu1 }
 0x1bc   :  { %v1741_v48 = vadd.f32 %v1733_v53, %v1616_v38  ;;  %v6700_v10 = vpop.f32.mrb[53].mxu1  ;;  %v5386_v38 = vsel %vm58_vm1, %v5380_v20, 0  ;;  %v5625_v11 = vpop.permute.xlu0 %5624 }
 0x1bd   :  { %6478 = vmatmul.mubr.msk.bf16.vlgmr.msra.gmra.mrb[156].mxu0 %vm54_vm2, %v6476_v28  ;;  %v1736_v36 = vpop.f32.mrb[54].mxu1 }
 0x1be   :  { %5142 = vmatpush1.bf16.msra.mxu0 %v5133_v58  ;;  %v6701_v18 = vpop.f32.mrb[55].mxu1  ;;  %5173 = vmatprep.mubr.bf16.mxu0 %v7015_v22  ;;  %v5627_v24 = vpop.permute.xlu1 %5626 }
 0x1bf   :  { %6485 = vmatprep.subr.msk.bf16.mxu0 %vm58_vm1, %v5256_v56  ;;  %v5629_v53 = vsel %vm768_vm8, %v5625_v11, %v5627_v24  ;;  %v5640_v56 = vsel %vm58_vm1, %v5627_v24, 0 }
 0x1c0   :  { %v1692_v62 = vpop.f32.mrb[52].mxu0  ;;  %6861 = vmatmul.mubr.msk.bf16.vlgmr.msra.gmra.mrb[160].mxu1 %vm54_vm2, %v6480_v59  ;;  %v5747_v46 = vpop.permute.xlu0 %5746 }
 0x1c1   :  { %v1739_v7 = vadd.f32 %v1692_v62, %v1614_v45  ;;  %v1694_v1 = vpop.f32.mrb[53].mxu0  ;;  %6865 = vmatpush3.bf16.msra.mxu1 %v5268_v37  ;;  %6866 = vmatprep.mubr.msk.bf16.mxu1 %vm7014_vm0, %v7012_v15  ;;  %v5628_v62 = vsel %vm768_vm8, %v5623_v31, %v5625_v11  ;;  %vm6002_vm8 = vcmask 973824  }
 0x1c2   :  { %v1740_v6 = vadd.f32 %v1694_v1, %v1615_v34  ;;  %v1696_v8 = vpop.f32.mrb[54].mxu0  ;;  %6870 = vmatprep.subr.bf16.mxu1 %v7012_v15 }
 0x1c3   :  { %v1697_v49 = vpop.f32.mrb[55].mxu0  ;;  %v1862_v51 = vpop.f32.mrb[56].mxu1 }
 0x1c4   :  { %v1870_v14 = vadd.f32 %v1862_v51, %v1741_v48  ;;  %v6706_v17 = vpop.f32.mrb[57].mxu1  ;;  %v6492_v48 = vld [vmem:[%s8444_s1 + $0xac] sm:$0xf]  ;;  %v5751_v37 = vpop.permute.xlu0 %5750  ;;  %v5634_v51 = vsel %vm58_vm1, %v5628_v62, 0 }
 0x1c5   :  { %6482 = vmatmul.mubr.msk.bf16.vlgmr.msra.gmra.mrb[160].mxu0 %vm54_vm2, %v6480_v59  ;;  %v1865_v25 = vpop.f32.mrb[58].mxu1  ;;  %v5749_v59 = vpop.permute.xlu1 %5748 }
 0x1c6   :  { %5271 = vmatpush1.bf16.msra.mxu0 %v5262_v55  ;;  %v6707_v60 = vpop.f32.mrb[59].mxu1  ;;  %5302 = vmatprep.mubr.bf16.mxu0 %v7015_v22  ;;  %v5754_v49 = vsel %vm5752_vm6, %v5749_v59, %v5751_v37 }
 0x1c7   :  { %6489 = vmatprep.subr.msk.bf16.mxu0 %vm58_vm1, %v5381_v52  ;;  %v5765_v52 = vsel %vm58_vm1, %v5751_v37, 0 }
 0x1c8   :  { %v1821_v61 = vpop.f32.mrb[56].mxu0  ;;  %6867 = vmatmul.mubr.msk.bf16.vlgmr.msra.gmra.mrb[164].mxu1 %vm54_vm2, %v6484_v42 }
 0x1c9   :  { %v1868_v23 = vadd.f32 %v1821_v61, %v1739_v7  ;;  %v1823_v27 = vpop.f32.mrb[57].mxu0  ;;  %6871 = vmatpush3.bf16.msra.mxu1 %v5392_v57  ;;  %6872 = vmatprep.mubr.msk.bf16.mxu1 %vm7014_vm0, %v7012_v15  ;;  %v5872_v1 = vpop.permute.xlu1 %5871  ;;  %v5753_v61 = vsel %vm5752_vm6, %v5747_v46, %v5749_v59 }
 0x1ca   :  { %v1869_v29 = vadd.f32 %v1823_v27, %v1740_v6  ;;  %v1825_v30 = vpop.f32.mrb[58].mxu0  ;;  %6876 = vmatprep.subr.bf16.mxu1 %v7012_v15 }
 0x1cb   :  { %v1826_v32 = vpop.f32.mrb[59].mxu0  ;;  %v1991_v33 = vpop.f32.mrb[60].mxu1 }
 0x1cc   :  { %v1999_v2 = vadd.f32 %v1991_v33, %v1870_v14  ;;  %v6712_v5 = vpop.f32.mrb[61].mxu1  ;;  %v6496_v14 = vld [vmem:[%s8444_s1 + $0xb0] sm:$0xf]  ;;  %v5759_v33 = vsel %vm58_vm1, %v5753_v61, 0 }
 0x1cd   :  { %6486 = vmatmul.mubr.msk.bf16.vlgmr.msra.gmra.mrb[164].mxu0 %vm54_vm2, %v6484_v42  ;;  %v1994_v44 = vpop.f32.mrb[62].mxu1  ;;  %v5874_v42 = vpop.permute.xlu0 %5873 }
 0x1ce   :  { %5395 = vmatpush1.bf16.msra.mxu0 %v5386_v38  ;;  %v6713_v28 = vpop.f32.mrb[63].mxu1  ;;  %5426 = vmatprep.mubr.bf16.mxu0 %v7015_v22  ;;  %v5876_v57 = vpop.permute.xlu1 %5875 }
 0x1cf   :  { %6493 = vmatprep.subr.msk.bf16.mxu0 %vm58_vm1, %v5505_v9  ;;  %v5879_v32 = vsel %vm5877_vm7, %v5874_v42, %v5876_v57  ;;  %v5890_v9 = vsel %vm58_vm1, %v5876_v57, 0 }
 0x1d0   :  { %v1950_v13 = vpop.f32.mrb[60].mxu0  ;;  %6873 = vmatmul.mubr.msk.bf16.vlgmr.msra.gmra.mrb[168].mxu1 %vm54_vm2, %v6488_v21 }
 0x1d1   :  { %v1997_v16 = vadd.f32 %v1950_v13, %v1868_v23  ;;  %v1952_v41 = vpop.f32.mrb[61].mxu0  ;;  %6877 = vmatpush3.bf16.msra.mxu1 %v5516_v39  ;;  %6878 = vmatprep.mubr.msk.bf16.mxu1 %vm7014_vm0, %v7012_v15  ;;  %v5997_v27 = vpop.permute.xlu0 %5996  ;;  %v5878_v13 = vsel %vm5877_vm7, %v5872_v1, %v5874_v42 }
 0x1d2   :  { %v1998_v45 = vadd.f32 %v1952_v41, %v1869_v29  ;;  %v1954_v19 = vpop.f32.mrb[62].mxu0  ;;  %6882 = vmatprep.subr.bf16.mxu1 %v7012_v15 }
 0x1d3   :  { %v1955_v34 = vpop.f32.mrb[63].mxu0  ;;  %v2120_v35 = vpop.f32.mrb[64].mxu1 }
 0x1d4   :  { %v2128_v47 = vadd.f32 %v2120_v35, %v1999_v2  ;;  %v6718_v50 = vpop.f32.mrb[65].mxu1  ;;  %v6500_v2 = vld [vmem:[%s8444_s1 + $0xb4] sm:$0xf]  ;;  %v5884_v35 = vsel %vm58_vm1, %v5878_v13, 0 }
 0x1d5   :  { %6490 = vmatmul.mubr.msk.bf16.vlgmr.msra.gmra.mrb[168].mxu0 %vm54_vm2, %v6488_v21  ;;  %v2123_v10 = vpop.f32.mrb[66].mxu1  ;;  %v5999_v21 = vpop.permute.xlu1 %5998 }
 0x1d6   :  { %5519 = vmatpush1.bf16.msra.mxu0 %v5510_v54  ;;  %v6719_v58 = vpop.f32.mrb[67].mxu1  ;;  %5550 = vmatprep.mubr.bf16.mxu0 %v7015_v22  ;;  %v6001_v11 = vpop.permute.xlu0 %6000  ;;  %v6003_v59 = vsel %vm6002_vm8, %v5997_v27, %v5999_v21 }
 0x1d7   :  { %6497 = vmatprep.subr.msk.bf16.mxu0 %vm58_vm1, %v5629_v53  ;;  %v6004_v34 = vsel %vm6002_vm8, %v5999_v21, %v6001_v11  ;;  %v6015_v53 = vsel %vm58_vm1, %v6001_v11, 0 }
 0x1d8   :  { %v2079_v36 = vpop.f32.mrb[64].mxu0  ;;  %6879 = vmatmul.mubr.msk.bf16.vlgmr.msra.gmra.mrb[172].mxu1 %vm54_vm2, %v6492_v48 }
 0x1d9   :  { %v2126_v18 = vadd.f32 %v2079_v36, %v1997_v16  ;;  %v2081_v40 = vpop.f32.mrb[65].mxu0  ;;  %6883 = vmatpush3.bf16.msra.mxu1 %v5640_v56  ;;  %6884 = vmatprep.mubr.msk.bf16.mxu1 %vm7014_vm0, %v7012_v15  ;;  %v6122_v41 = vpop.permute.xlu1 %6121 }
 0x1da   :  { %v2127_v63 = vadd.f32 %v2081_v40, %v1998_v45  ;;  %v2083_v7 = vpop.f32.mrb[66].mxu0  ;;  %6888 = vmatprep.subr.bf16.mxu1 %v7012_v15 }
 0x1db   :  { %v2084_v3 = vpop.f32.mrb[67].mxu0  ;;  %v2249_v6 = vpop.f32.mrb[68].mxu1 }
 0x1dc   :  { %v2257_v8 = vadd.f32 %v2249_v6, %v2128_v47  ;;  %v6724_v12 = vpop.f32.mrb[69].mxu1  ;;  %v6504_v47 = vld [vmem:[%s8444_s1 + $0xb8] sm:$0xf]  ;;  %v6009_v3 = vsel %vm58_vm1, %v6003_v59, 0  ;;  %v6508_v6 = vld [vmem:[%s8444_s1 + $0xbc] sm:$0xf] }
 0x1dd   :  { %6494 = vmatmul.mubr.msk.bf16.vlgmr.msra.gmra.mrb[172].mxu0 %vm54_vm2, %v6492_v48  ;;  %v2252_v17 = vpop.f32.mrb[70].mxu1  ;;  %v6126_v58 = vpop.permute.xlu1 %6125 }
 0x1de   :  { %5643 = vmatpush1.bf16.msra.mxu0 %v5634_v51  ;;  %v6725_v55 = vpop.f32.mrb[71].mxu1  ;;  %5674 = vmatprep.mubr.bf16.mxu0 %v7015_v22  ;;  %v6140_v12 = vsel %vm58_vm1, %v6126_v58, 0 }
 0x1df   :  { %6501 = vmatprep.subr.msk.bf16.mxu0 %vm58_vm1, %v5754_v49 }
 0x1e0   :  { %v2208_v25 = vpop.f32.mrb[68].mxu0  ;;  %6885 = vmatmul.mubr.msk.bf16.vlgmr.msra.gmra.mrb[176].mxu1 %vm54_vm2, %v6496_v14 }
 0x1e1   :  { %v2255_v60 = vadd.f32 %v2208_v25, %v2126_v18  ;;  %v2210_v0 = vpop.f32.mrb[69].mxu0  ;;  %6889 = vmatpush3.bf16.msra.mxu1 %v5765_v52  ;;  %6890 = vmatprep.mubr.msk.bf16.mxu1 %vm7014_vm0, %v7012_v15  ;;  %v6124_v18 = vpop.permute.xlu0 %6123 }
 0x1e2   :  { %v2256_v26 = vadd.f32 %v2210_v0, %v2127_v63  ;;  %v2212_v23 = vpop.f32.mrb[70].mxu0  ;;  %6894 = vmatprep.subr.bf16.mxu1 %v7012_v15  ;;  %v6129_v1 = vsel %vm6127_vm14, %v6124_v18, %v6126_v58  ;;  %v6128_v52 = vsel %vm6127_vm14, %v6122_v41, %v6124_v18 }
 0x1e3   :  { %v2213_v20 = vpop.f32.mrb[71].mxu0  ;;  %v2378_v29 = vpop.f32.mrb[72].mxu1  ;;  %v6134_v61 = vsel %vm58_vm1, %v6128_v52, 0 }
 0x1e4   :  { %v2386_v30 = vadd.f32 %v2378_v29, %v2257_v8  ;;  %v6730_v31 = vpop.f32.mrb[73].mxu1 }
 0x1e5   :  { %6498 = vmatmul.mubr.msk.bf16.vlgmr.msra.gmra.mrb[176].mxu0 %vm54_vm2, %v6496_v14  ;;  %v2381_v5 = vpop.f32.mrb[74].mxu1 }
 0x1e6   :  { %5768 = vmatpush1.bf16.msra.mxu0 %v5759_v33  ;;  %v6731_v38 = vpop.f32.mrb[75].mxu1  ;;  %5799 = vmatprep.mubr.bf16.mxu0 %v7015_v22 }
 0x1e7   :  { %6505 = vmatprep.subr.msk.bf16.mxu0 %vm58_vm1, %v5879_v32 }
 0x1e8   :  { %v2337_v44 = vpop.f32.mrb[72].mxu0  ;;  %6891 = vmatmul.mubr.msk.bf16.vlgmr.msra.gmra.mrb[180].mxu1 %vm54_vm2, %v6500_v2 }
 0x1e9   :  { %v2384_v39 = vadd.f32 %v2337_v44, %v2255_v60  ;;  %v2339_v28 = vpop.f32.mrb[73].mxu0  ;;  %6895 = vmatpush3.bf16.msra.mxu1 %v5890_v9  ;;  %6896 = vmatprep.mubr.msk.bf16.mxu1 %vm7014_vm0, %v7012_v15 }
 0x1ea   :  { %v2385_v24 = vadd.f32 %v2339_v28, %v2256_v26  ;;  %v2341_v16 = vpop.f32.mrb[74].mxu0  ;;  %6900 = vmatprep.subr.bf16.mxu1 %v7012_v15  ;;  %v6512_v26 = vld [vmem:[%s8444_s1 + $0xc0] sm:$0xf] }
 0x1eb   :  { %v2342_v43 = vpop.f32.mrb[75].mxu0  ;;  %v2507_v45 = vpop.f32.mrb[76].mxu1 }
 0x1ec   :  { %v2515_v19 = vadd.f32 %v2507_v45, %v2386_v30  ;;  %v6736_v46 = vpop.f32.mrb[77].mxu1 }
 0x1ed   :  { %6502 = vmatmul.mubr.msk.bf16.vlgmr.msra.gmra.mrb[180].mxu0 %vm54_vm2, %v6500_v2  ;;  %v2510_v50 = vpop.f32.mrb[78].mxu1 }
 0x1ee   :  { %5893 = vmatpush1.bf16.msra.mxu0 %v5884_v35  ;;  %v6737_v54 = vpop.f32.mrb[79].mxu1  ;;  %5924 = vmatprep.mubr.bf16.mxu0 %v7015_v22 }
 0x1ef   :  { %6509 = vmatprep.subr.msk.bf16.mxu0 %vm58_vm1, %v6004_v34 }
 0x1f0   :  { %v2466_v48 = vpop.f32.mrb[76].mxu0  ;;  %6897 = vmatmul.mubr.msk.bf16.vlgmr.msra.gmra.mrb[184].mxu1 %vm54_vm2, %v6504_v47 }
 0x1f1   :  { %v2513_v10 = vadd.f32 %v2466_v48, %v2384_v39  ;;  %v2468_v56 = vpop.f32.mrb[77].mxu0  ;;  %6901 = vmatpush3.bf16.msra.mxu1 %v6015_v53  ;;  %6902 = vmatprep.mubr.msk.bf16.mxu1 %vm7014_vm0, %v7012_v15 }
 0x1f2   :  { %v2514_v36 = vadd.f32 %v2468_v56, %v2385_v24  ;;  %v2470_v37 = vpop.f32.mrb[78].mxu0  ;;  %6906 = vmatprep.subr.bf16.mxu1 %v7012_v15 }
 0x1f3   :  { %v2471_v40 = vpop.f32.mrb[79].mxu0  ;;  %v2636_v62 = vpop.f32.mrb[80].mxu1 }
 0x1f4   :  { %v2644_v63 = vadd.f32 %v2636_v62, %v2515_v19  ;;  %v6742_v7 = vpop.f32.mrb[81].mxu1 }
 0x1f5   :  { %6506 = vmatmul.mubr.msk.bf16.vlgmr.msra.gmra.mrb[184].mxu0 %vm54_vm2, %v6504_v47  ;;  %v2639_v8 = vpop.f32.mrb[82].mxu1 }
 0x1f6   :  { %6018 = vmatpush1.bf16.msra.mxu0 %v6009_v3  ;;  %v6743_v49 = vpop.f32.mrb[83].mxu1  ;;  %6049 = vmatprep.mubr.bf16.mxu0 %v7015_v22 }
 0x1f7   :  { %6513 = vmatprep.subr.msk.bf16.mxu0 %vm58_vm1, %v6129_v1  ;;  %vm6305_vm1 = vcmask 781312  }
 0x1f8   :  { %v2595_v51 = vpop.f32.mrb[80].mxu0  ;;  %6903 = vmatmul.mubr.msk.bf16.vlgmr.msra.gmra.mrb[188].mxu1 %vm54_vm2, %v6508_v6 }
 0x1f9   :  { %v2642_v14 = vadd.f32 %v2595_v51, %v2513_v10  ;;  %v2597_v17 = vpop.f32.mrb[81].mxu0  ;;  %6907 = vmatpush3.bf16.msra.mxu1 %v6140_v12  ;;  %6908 = vmatprep.mubr.msk.bf16.mxu1 %vm7014_vm0, %v7012_v15  ;;  %vm22_vm0 = vcmask 785408  }
 0x1fa   :  { %v2643_v55 = vadd.f32 %v2597_v17, %v2514_v36  ;;  %v2599_v42 = vpop.f32.mrb[82].mxu0  ;;  %23 = vst.msk [vmem:[#allocation2 + $0x10] sm:$0xff] %vm22_vm0, %v7012_v15 }
 0x1fb   :  { %v2600_v25 = vpop.f32.mrb[83].mxu0  ;;  %v2765_v57 = vpop.f32.mrb[84].mxu1 }
 0x1fc   :  { %v2773_v60 = vadd.f32 %v2765_v57, %v2644_v63  ;;  %v6748_v0 = vpop.f32.mrb[85].mxu1 }
 0x1fd   :  { %6510 = vmatmul.mubr.msk.bf16.vlgmr.msra.gmra.mrb[188].mxu0 %vm54_vm2, %v6508_v6  ;;  %v2768_v23 = vpop.f32.mrb[86].mxu1 }
 0x1fe   :  { %6143 = vmatpush1.bf16.msra.mxu0 %v6134_v61  ;;  %v6749_v27 = vpop.f32.mrb[87].mxu1  ;;  %6174 = vmatprep.mubr.bf16.mxu0 %v7015_v22 }
 0x200   :  { %v2724_v20 = vpop.f32.mrb[84].mxu0  ;;  %6909 = vmatmul.mubr.msk.bf16.vlgmr.msra.gmra.mrb[192].mxu1 %vm54_vm2, %v6512_v26 }
 0x201   :  { %v2771_v29 = vadd.f32 %v2724_v20, %v2642_v14  ;;  %v2726_v30 = vpop.f32.mrb[85].mxu0 }
 0x202   :  { %v2772_v31 = vadd.f32 %v2726_v30, %v2643_v55  ;;  %v2728_v32 = vpop.f32.mrb[86].mxu0 }
 0x203   :  { %v2729_v33 = vpop.f32.mrb[87].mxu0  ;;  %v2894_v2 = vpop.f32.mrb[88].mxu1 }
 0x204   :  { %v2902_v5 = vadd.f32 %v2894_v2, %v2773_v60  ;;  %v6754_v9 = vpop.f32.mrb[89].mxu1 }
 0x205   :  { %6514 = vmatmul.mubr.msk.bf16.vlgmr.msra.gmra.mrb[192].mxu0 %vm54_vm2, %v6512_v26  ;;  %v2897_v38 = vpop.f32.mrb[90].mxu1 }
 0x206   :  { %v6755_v21 = vpop.f32.mrb[91].mxu1 }
 0x208   :  { %v2853_v44 = vpop.f32.mrb[88].mxu0 }
 0x209   :  { %v2900_v39 = vadd.f32 %v2853_v44, %v2771_v29  ;;  %v2855_v28 = vpop.f32.mrb[89].mxu0 }
 0x20a   :  { %v2901_v11 = vadd.f32 %v2855_v28, %v2772_v31  ;;  %v2857_v22 = vpop.f32.mrb[90].mxu0 }
 0x20b   :  { %v2858_v13 = vpop.f32.mrb[91].mxu0  ;;  %v3023_v24 = vpop.f32.mrb[92].mxu1 }
 0x20c   :  { %v3031_v16 = vadd.f32 %v3023_v24, %v2902_v5  ;;  %v6760_v41 = vpop.f32.mrb[93].mxu1 }
 0x20d   :  { %v3026_v43 = vpop.f32.mrb[94].mxu1 }
 0x20e   :  { %v6761_v45 = vpop.f32.mrb[95].mxu1 }
 0x210   :  { %v2982_v19 = vpop.f32.mrb[92].mxu0 }
 0x211   :  { %v3029_v46 = vadd.f32 %v2982_v19, %v2900_v39  ;;  %v2984_v34 = vpop.f32.mrb[93].mxu0 }
 0x212   :  { %v3030_v35 = vadd.f32 %v2984_v34, %v2901_v11  ;;  %v2986_v47 = vpop.f32.mrb[94].mxu0 }
 0x213   :  { %v2987_v50 = vpop.f32.mrb[95].mxu0  ;;  %v3152_v53 = vpop.f32.mrb[96].mxu1 }
 0x214   :  { %v3160_v54 = vadd.f32 %v3152_v53, %v3031_v16  ;;  %v6766_v48 = vpop.f32.mrb[97].mxu1 }
 0x215   :  { %v3155_v10 = vpop.f32.mrb[98].mxu1 }
 0x216   :  { %v6767_v56 = vpop.f32.mrb[99].mxu1 }
 0x218   :  { %v3111_v58 = vpop.f32.mrb[96].mxu0 }
 0x219   :  { %v3158_v59 = vadd.f32 %v3111_v58, %v3029_v46  ;;  %v3113_v36 = vpop.f32.mrb[97].mxu0 }
 0x21a   :  { %v3159_v37 = vadd.f32 %v3113_v36, %v3030_v35  ;;  %v3115_v18 = vpop.f32.mrb[98].mxu0 }
 0x21b   :  { %v3116_v40 = vpop.f32.mrb[99].mxu0  ;;  %v3281_v62 = vpop.f32.mrb[100].mxu1 }
 0x21c   :  { %v3289_v63 = vadd.f32 %v3281_v62, %v3160_v54  ;;  %v6772_v7 = vpop.f32.mrb[101].mxu1 }
 0x21d   :  { %v3284_v1 = vpop.f32.mrb[102].mxu1 }
 0x21e   :  { %v6773_v3 = vpop.f32.mrb[103].mxu1 }
 0x220   :  { %v3240_v6 = vpop.f32.mrb[100].mxu0 }
 0x221   :  { %v3287_v8 = vadd.f32 %v3240_v6, %v3158_v59  ;;  %v3242_v12 = vpop.f32.mrb[101].mxu0 }
 0x222   :  { %v3288_v49 = vadd.f32 %v3242_v12, %v3159_v37  ;;  %v3244_v51 = vpop.f32.mrb[102].mxu0 }
 0x223   :  { %v3245_v14 = vpop.f32.mrb[103].mxu0  ;;  %v3410_v17 = vpop.f32.mrb[104].mxu1 }
 0x224   :  { %v3418_v52 = vadd.f32 %v3410_v17, %v3289_v63  ;;  %v6778_v55 = vpop.f32.mrb[105].mxu1 }
 0x225   :  { %v3413_v42 = vpop.f32.mrb[106].mxu1 }
 0x226   :  { %v6779_v25 = vpop.f32.mrb[107].mxu1 }
 0x228   :  { %v3369_v57 = vpop.f32.mrb[104].mxu0 }
 0x229   :  { %v3416_v60 = vadd.f32 %v3369_v57, %v3287_v8  ;;  %v3371_v0 = vpop.f32.mrb[105].mxu0 }
 0x22a   :  { %v3417_v61 = vadd.f32 %v3371_v0, %v3288_v49  ;;  %v3373_v26 = vpop.f32.mrb[106].mxu0 }
 0x22b   :  { %v3374_v23 = vpop.f32.mrb[107].mxu0  ;;  %v3539_v27 = vpop.f32.mrb[108].mxu1 }
 0x22c   :  { %v3547_v20 = vadd.f32 %v3539_v27, %v3418_v52  ;;  %v6784_v29 = vpop.f32.mrb[109].mxu1 }
 0x22d   :  { %v3542_v30 = vpop.f32.mrb[110].mxu1 }
 0x22e   :  { %v6785_v31 = vpop.f32.mrb[111].mxu1 }
 0x230   :  { %v3498_v32 = vpop.f32.mrb[108].mxu0 }
 0x231   :  { %v3545_v33 = vadd.f32 %v3498_v32, %v3416_v60  ;;  %v3500_v2 = vpop.f32.mrb[109].mxu0 }
 0x232   :  { %v3546_v5 = vadd.f32 %v3500_v2, %v3417_v61  ;;  %v3502_v9 = vpop.f32.mrb[110].mxu0 }
 0x233   :  { %v3503_v38 = vpop.f32.mrb[111].mxu0  ;;  %v3668_v21 = vpop.f32.mrb[112].mxu1 }
 0x234   :  { %v3676_v44 = vadd.f32 %v3668_v21, %v3547_v20  ;;  %v6790_v39 = vpop.f32.mrb[113].mxu1 }
 0x235   :  { %v3671_v28 = vpop.f32.mrb[114].mxu1 }
 0x236   :  { %v6791_v11 = vpop.f32.mrb[115].mxu1 }
 0x238   :  { %v3627_v22 = vpop.f32.mrb[112].mxu0 }
 0x239   :  { %v3674_v13 = vadd.f32 %v3627_v22, %v3545_v33  ;;  %v3629_v24 = vpop.f32.mrb[113].mxu0 }
 0x23a   :  { %v3675_v16 = vadd.f32 %v3629_v24, %v3546_v5  ;;  %v3631_v41 = vpop.f32.mrb[114].mxu0 }
 0x23b   :  { %v3632_v43 = vpop.f32.mrb[115].mxu0  ;;  %v3797_v45 = vpop.f32.mrb[116].mxu1 }
 0x23c   :  { %v3805_v19 = vadd.f32 %v3797_v45, %v3676_v44  ;;  %v6796_v46 = vpop.f32.mrb[117].mxu1 }
 0x23d   :  { %v3800_v34 = vpop.f32.mrb[118].mxu1 }
 0x23e   :  { %v6797_v35 = vpop.f32.mrb[119].mxu1 }
 0x240   :  { %v3756_v47 = vpop.f32.mrb[116].mxu0 }
 0x241   :  { %v3803_v50 = vadd.f32 %v3756_v47, %v3674_v13  ;;  %v3758_v53 = vpop.f32.mrb[117].mxu0 }
 0x242   :  { %v3804_v54 = vadd.f32 %v3758_v53, %v3675_v16  ;;  %v3760_v48 = vpop.f32.mrb[118].mxu0 }
 0x243   :  { %v3761_v10 = vpop.f32.mrb[119].mxu0  ;;  %v3926_v56 = vpop.f32.mrb[120].mxu1 }
 0x244   :  { %v3934_v58 = vadd.f32 %v3926_v56, %v3805_v19  ;;  %v6802_v59 = vpop.f32.mrb[121].mxu1 }
 0x245   :  { %v3929_v36 = vpop.f32.mrb[122].mxu1 }
 0x246   :  { %v6803_v37 = vpop.f32.mrb[123].mxu1 }
 0x248   :  { %v3885_v18 = vpop.f32.mrb[120].mxu0 }
 0x249   :  { %v3932_v40 = vadd.f32 %v3885_v18, %v3803_v50  ;;  %v3887_v62 = vpop.f32.mrb[121].mxu0 }
 0x24a   :  { %v3933_v63 = vadd.f32 %v3887_v62, %v3804_v54  ;;  %v3889_v7 = vpop.f32.mrb[122].mxu0 }
 0x24b   :  { %v3890_v1 = vpop.f32.mrb[123].mxu0  ;;  %v4055_v3 = vpop.f32.mrb[124].mxu1 }
 0x24c   :  { %v4063_v6 = vadd.f32 %v4055_v3, %v3934_v58  ;;  %v6808_v8 = vpop.f32.mrb[125].mxu1 }
 0x24d   :  { %v4058_v12 = vpop.f32.mrb[126].mxu1 }
 0x24e   :  { %v6809_v49 = vpop.f32.mrb[127].mxu1 }
 0x250   :  { %v4014_v51 = vpop.f32.mrb[124].mxu0 }
 0x251   :  { %v4061_v14 = vadd.f32 %v4014_v51, %v3932_v40  ;;  %v4016_v17 = vpop.f32.mrb[125].mxu0 }
 0x252   :  { %v4062_v52 = vadd.f32 %v4016_v17, %v3933_v63  ;;  %v4018_v55 = vpop.f32.mrb[126].mxu0 }
 0x253   :  { %v4019_v42 = vpop.f32.mrb[127].mxu0  ;;  %v4184_v25 = vpop.f32.mrb[128].mxu1 }
 0x254   :  { %v4192_v57 = vadd.f32 %v4184_v25, %v4063_v6  ;;  %v6814_v60 = vpop.f32.mrb[129].mxu1 }
 0x255   :  { %v4187_v0 = vpop.f32.mrb[130].mxu1 }
 0x256   :  { %v6815_v61 = vpop.f32.mrb[131].mxu1 }
 0x258   :  { %v4143_v26 = vpop.f32.mrb[128].mxu0 }
 0x259   :  { %v4190_v23 = vadd.f32 %v4143_v26, %v4061_v14  ;;  %v4145_v27 = vpop.f32.mrb[129].mxu0 }
 0x25a   :  { %v4191_v20 = vadd.f32 %v4145_v27, %v4062_v52  ;;  %v4147_v29 = vpop.f32.mrb[130].mxu0 }
 0x25b   :  { %v4148_v30 = vpop.f32.mrb[131].mxu0  ;;  %v4313_v31 = vpop.f32.mrb[132].mxu1 }
 0x25c   :  { %v4321_v32 = vadd.f32 %v4313_v31, %v4192_v57  ;;  %v6820_v15 = vpop.f32.mrb[133].mxu1 }
 0x25d   :  { %v4316_v33 = vpop.f32.mrb[134].mxu1 }
 0x25e   :  { %v6821_v2 = vpop.f32.mrb[135].mxu1 }
 0x260   :  { %v4272_v5 = vpop.f32.mrb[132].mxu0 }
 0x261   :  { %v4319_v9 = vadd.f32 %v4272_v5, %v4190_v23  ;;  %v4274_v38 = vpop.f32.mrb[133].mxu0 }
 0x262   :  { %v4320_v21 = vadd.f32 %v4274_v38, %v4191_v20  ;;  %v4276_v44 = vpop.f32.mrb[134].mxu0 }
 0x263   :  { %v4277_v39 = vpop.f32.mrb[135].mxu0  ;;  %v4442_v28 = vpop.f32.mrb[136].mxu1 }
 0x264   :  { %v4450_v11 = vadd.f32 %v4442_v28, %v4321_v32  ;;  %v6826_v22 = vpop.f32.mrb[137].mxu1 }
 0x265   :  { %v4445_v13 = vpop.f32.mrb[138].mxu1 }
 0x266   :  { %v6827_v24 = vpop.f32.mrb[139].mxu1 }
 0x268   :  { %v4401_v16 = vpop.f32.mrb[136].mxu0 }
 0x269   :  { %v4448_v41 = vadd.f32 %v4401_v16, %v4319_v9  ;;  %v4403_v43 = vpop.f32.mrb[137].mxu0 }
 0x26a   :  { %v4449_v45 = vadd.f32 %v4403_v43, %v4320_v21  ;;  %v4405_v19 = vpop.f32.mrb[138].mxu0 }
 0x26b   :  { %v4406_v46 = vpop.f32.mrb[139].mxu0  ;;  %v4571_v34 = vpop.f32.mrb[140].mxu1 }
 0x26c   :  { %v4579_v35 = vadd.f32 %v4571_v34, %v4450_v11  ;;  %v6832_v47 = vpop.f32.mrb[141].mxu1 }
 0x26d   :  { %v4574_v50 = vpop.f32.mrb[142].mxu1 }
 0x26e   :  { %v6833_v53 = vpop.f32.mrb[143].mxu1 }
 0x270   :  { %v4530_v54 = vpop.f32.mrb[140].mxu0 }
 0x271   :  { %v4577_v48 = vadd.f32 %v4530_v54, %v4448_v41  ;;  %v4532_v10 = vpop.f32.mrb[141].mxu0 }
 0x272   :  { %v4578_v56 = vadd.f32 %v4532_v10, %v4449_v45  ;;  %v4534_v58 = vpop.f32.mrb[142].mxu0 }
 0x273   :  { %v4535_v59 = vpop.f32.mrb[143].mxu0  ;;  %v4700_v36 = vpop.f32.mrb[144].mxu1 }
 0x274   :  { %v4708_v37 = vadd.f32 %v4700_v36, %v4579_v35  ;;  %v6838_v18 = vpop.f32.mrb[145].mxu1 }
 0x275   :  { %v4703_v40 = vpop.f32.mrb[146].mxu1 }
 0x276   :  { %v6839_v62 = vpop.f32.mrb[147].mxu1 }
 0x278   :  { %v4659_v63 = vpop.f32.mrb[144].mxu0 }
 0x279   :  { %v4706_v7 = vadd.f32 %v4659_v63, %v4577_v48  ;;  %v4661_v1 = vpop.f32.mrb[145].mxu0 }
 0x27a   :  { %v4707_v3 = vadd.f32 %v4661_v1, %v4578_v56  ;;  %v4663_v6 = vpop.f32.mrb[146].mxu0 }
 0x27b   :  { %v4664_v8 = vpop.f32.mrb[147].mxu0  ;;  %v4829_v12 = vpop.f32.mrb[148].mxu1 }
 0x27c   :  { %v4837_v49 = vadd.f32 %v4829_v12, %v4708_v37  ;;  %v6844_v51 = vpop.f32.mrb[149].mxu1 }
 0x27d   :  { %v4832_v14 = vpop.f32.mrb[150].mxu1 }
 0x27e   :  { %v6845_v17 = vpop.f32.mrb[151].mxu1 }
 0x280   :  { %v4788_v52 = vpop.f32.mrb[148].mxu0 }
 0x281   :  { %v4835_v55 = vadd.f32 %v4788_v52, %v4706_v7  ;;  %v4790_v42 = vpop.f32.mrb[149].mxu0 }
 0x282   :  { %v4836_v25 = vadd.f32 %v4790_v42, %v4707_v3  ;;  %v4792_v57 = vpop.f32.mrb[150].mxu0 }
 0x283   :  { %v4793_v60 = vpop.f32.mrb[151].mxu0  ;;  %v4958_v0 = vpop.f32.mrb[152].mxu1 }
 0x284   :  { %v4966_v61 = vadd.f32 %v4958_v0, %v4837_v49  ;;  %v6850_v26 = vpop.f32.mrb[153].mxu1 }
 0x285   :  { %v4961_v23 = vpop.f32.mrb[154].mxu1 }
 0x286   :  { %v6851_v27 = vpop.f32.mrb[155].mxu1 }
 0x288   :  { %v4917_v20 = vpop.f32.mrb[152].mxu0 }
 0x289   :  { %v4964_v29 = vadd.f32 %v4917_v20, %v4835_v55  ;;  %v4919_v30 = vpop.f32.mrb[153].mxu0 }
 0x28a   :  { %v4965_v31 = vadd.f32 %v4919_v30, %v4836_v25  ;;  %v4921_v32 = vpop.f32.mrb[154].mxu0 }
 0x28b   :  { %v4922_v15 = vpop.f32.mrb[155].mxu0  ;;  %v5087_v33 = vpop.f32.mrb[156].mxu1 }
 0x28c   :  { %v5095_v2 = vadd.f32 %v5087_v33, %v4966_v61  ;;  %v6856_v5 = vpop.f32.mrb[157].mxu1 }
 0x28d   :  { %v5090_v9 = vpop.f32.mrb[158].mxu1 }
 0x28e   :  { %v6857_v38 = vpop.f32.mrb[159].mxu1 }
 0x290   :  { %v5046_v21 = vpop.f32.mrb[156].mxu0 }
 0x291   :  { %v5093_v44 = vadd.f32 %v5046_v21, %v4964_v29  ;;  %v5048_v39 = vpop.f32.mrb[157].mxu0 }
 0x292   :  { %v5094_v28 = vadd.f32 %v5048_v39, %v4965_v31  ;;  %v5050_v11 = vpop.f32.mrb[158].mxu0 }
 0x293   :  { %v5051_v22 = vpop.f32.mrb[159].mxu0  ;;  %v5216_v13 = vpop.f32.mrb[160].mxu1 }
 0x294   :  { %v5224_v24 = vadd.f32 %v5216_v13, %v5095_v2  ;;  %v6862_v16 = vpop.f32.mrb[161].mxu1 }
 0x295   :  { %v5219_v41 = vpop.f32.mrb[162].mxu1 }
 0x296   :  { %v6863_v43 = vpop.f32.mrb[163].mxu1 }
 0x298   :  { %v5175_v45 = vpop.f32.mrb[160].mxu0 }
 0x299   :  { %v5222_v19 = vadd.f32 %v5175_v45, %v5093_v44  ;;  %v5177_v46 = vpop.f32.mrb[161].mxu0 }
 0x29a   :  { %v5223_v34 = vadd.f32 %v5177_v46, %v5094_v28  ;;  %v5179_v35 = vpop.f32.mrb[162].mxu0 }
 0x29b   :  { %v5180_v47 = vpop.f32.mrb[163].mxu0  ;;  %v5345_v50 = vpop.f32.mrb[164].mxu1 }
 0x29c   :  { %v5353_v53 = vadd.f32 %v5345_v50, %v5224_v24  ;;  %v6868_v54 = vpop.f32.mrb[165].mxu1 }
 0x29d   :  { %v5348_v48 = vpop.f32.mrb[166].mxu1 }
 0x29e   :  { %v6869_v10 = vpop.f32.mrb[167].mxu1 }
 0x2a0   :  { %v5304_v56 = vpop.f32.mrb[164].mxu0 }
 0x2a1   :  { %v5351_v58 = vadd.f32 %v5304_v56, %v5222_v19  ;;  %v5306_v59 = vpop.f32.mrb[165].mxu0 }
 0x2a2   :  { %v5352_v36 = vadd.f32 %v5306_v59, %v5223_v34  ;;  %v5308_v37 = vpop.f32.mrb[166].mxu0 }
 0x2a3   :  { %v5309_v18 = vpop.f32.mrb[167].mxu0  ;;  %v5469_v40 = vpop.f32.mrb[168].mxu1 }
 0x2a4   :  { %v5477_v62 = vadd.f32 %v5469_v40, %v5353_v53  ;;  %v6874_v63 = vpop.f32.mrb[169].mxu1 }
 0x2a5   :  { %v5472_v7 = vpop.f32.mrb[170].mxu1 }
 0x2a6   :  { %v6875_v1 = vpop.f32.mrb[171].mxu1 }
 0x2a7   :  { %v6228_v1 = vld [vmem:[#allocation2 + $0x10] sm:$0xff] }
 0x2a8   :  { %v5428_v3 = vpop.f32.mrb[168].mxu0 }
 0x2a9   :  { %v5475_v6 = vadd.f32 %v5428_v3, %v5351_v58  ;;  %v5430_v8 = vpop.f32.mrb[169].mxu0 }
 0x2aa   :  { %v5476_v12 = vadd.f32 %v5430_v8, %v5352_v36  ;;  %v5432_v49 = vpop.f32.mrb[170].mxu0 }
 0x2ab   :  { %v5433_v51 = vpop.f32.mrb[171].mxu0  ;;  %v5593_v14 = vpop.f32.mrb[172].mxu1 }
 0x2ac   :  { %v5601_v17 = vadd.f32 %v5593_v14, %v5477_v62  ;;  %v6880_v52 = vpop.f32.mrb[173].mxu1  ;;  %v6242_v14 = vld [vmem:[%s8445_s2] sm:$0x7]  ;;  %s7059_s2 = smov [#allocation3]  }
 0x2ad   :  { %v5596_v55 = vpop.f32.mrb[174].mxu1  ;;  %s6313_s19 = sshll.u32 %s7059_s2, 4  ;;  %s6314_s19 = int_to_ptr.vmem [resolvable:$true] %s6313_s19 }
 0x2ae   :  { %v6881_v42 = vpop.f32.mrb[175].mxu1  ;;  %v6254_v55 = vsub.s32 2, %v7083_v4  ;;  %s6986_s20 = scalar_lea.vmem %s6314_s19, 192  ;;  %p6991_p1 = scmp.lt.s32.totalorder %s6314_s19, %s6314_s19 }
 0x2af   :  { %p6987_p0 = scmp.ne.s32.totalorder %s6314_s19, %s6986_s20  ;;  %p6992_p2 = scmp.lt.s32.totalorder %s6986_s20, %s6986_s20 }
 0x2b0   :  { %v5552_v25 = vpop.f32.mrb[172].mxu0 }
 0x2b1   :  { %v5599_v57 = vadd.f32 %v5552_v25, %v5475_v6  ;;  %v5554_v60 = vpop.f32.mrb[173].mxu0  ;;  %p6993_p3 = por %p6992_p2, %p6991_p1 }
 0x2b2   :  { %v5600_v0 = vadd.f32 %v5554_v60, %v5476_v12  ;;  %v5556_v61 = vpop.f32.mrb[174].mxu0  ;;  %v6246_v12 = vsub.s32 0, %v7083_v4 }
 0x2b3   :  { %v5557_v26 = vpop.f32.mrb[175].mxu0  ;;  %v5717_v23 = vpop.f32.mrb[176].mxu1  ;;  %p6994_p4 = pnand %p6993_p3, %p6987_p0 }
 0x2b4   :  { %v5725_v27 = vadd.f32 %v5717_v23, %v5601_v17  ;;  %v6886_v20 = vpop.f32.mrb[177].mxu1  ;;  %v6250_v17 = vsub.s32 1, %v7083_v4  ;;  %v6255_v23 = vrot.slane %v6242_v14, %v6254_v55 }
 0x2b5   :  { %v5720_v29 = vpop.f32.mrb[178].mxu1 }
 0x2b6   :  { %v6887_v30 = vpop.f32.mrb[179].mxu1  ;;  %v6251_v61 = vrot.slane %v6242_v14, %v6250_v17 }
 0x2b8   :  { %v5676_v31 = vpop.f32.mrb[176].mxu0 }
 0x2b9   :  { %v5723_v32 = vadd.f32 %v5676_v31, %v5599_v57  ;;  %v5678_v15 = vpop.f32.mrb[177].mxu0  ;;  %v6247_v57 = vrot.slane %v6242_v14, %v6246_v12 }
 0x2ba   :  { %v5724_v33 = vadd.f32 %v5678_v15, %v5600_v0  ;;  %v5680_v2 = vpop.f32.mrb[178].mxu0 }
 0x2bb   :  { %v5681_v5 = vpop.f32.mrb[179].mxu0  ;;  %v5842_v9 = vpop.f32.mrb[180].mxu1 }
 0x2bc   :  { %v5850_v38 = vadd.f32 %v5842_v9, %v5725_v27  ;;  %v6892_v21 = vpop.f32.mrb[181].mxu1 }
 0x2bd   :  { %v5845_v44 = vpop.f32.mrb[182].mxu1 }
 0x2be   :  { %v6893_v39 = vpop.f32.mrb[183].mxu1 }
 0x2c0   :  { %v5801_v28 = vpop.f32.mrb[180].mxu0 }
 0x2c1   :  { %v5848_v11 = vadd.f32 %v5801_v28, %v5723_v32  ;;  %v5803_v22 = vpop.f32.mrb[181].mxu0 }
 0x2c2   :  { %v5849_v13 = vadd.f32 %v5803_v22, %v5724_v33  ;;  %v5805_v24 = vpop.f32.mrb[182].mxu0 }
 0x2c3   :  { %v5806_v16 = vpop.f32.mrb[183].mxu0  ;;  %v5967_v41 = vpop.f32.mrb[184].mxu1 }
 0x2c4   :  { %v5975_v43 = vadd.f32 %v5967_v41, %v5850_v38  ;;  %v6898_v45 = vpop.f32.mrb[185].mxu1 }
 0x2c5   :  { %v5970_v19 = vpop.f32.mrb[186].mxu1 }
 0x2c6   :  { %v6899_v46 = vpop.f32.mrb[187].mxu1 }
 0x2c8   :  { %v5926_v34 = vpop.f32.mrb[184].mxu0 }
 0x2c9   :  { %v5973_v35 = vadd.f32 %v5926_v34, %v5848_v11  ;;  %v5928_v47 = vpop.f32.mrb[185].mxu0 }
 0x2ca   :  { %v5974_v50 = vadd.f32 %v5928_v47, %v5849_v13  ;;  %v5930_v53 = vpop.f32.mrb[186].mxu0 }
 0x2cb   :  { %v5931_v54 = vpop.f32.mrb[187].mxu0  ;;  %v6092_v48 = vpop.f32.mrb[188].mxu1 }
 0x2cc   :  { %v6100_v10 = vadd.f32 %v6092_v48, %v5975_v43  ;;  %v6904_v56 = vpop.f32.mrb[189].mxu1 }
 0x2cd   :  { %v6095_v58 = vpop.f32.mrb[190].mxu1 }
 0x2ce   :  { %v6905_v59 = vpop.f32.mrb[191].mxu1 }
 0x2d0   :  { %v6051_v36 = vpop.f32.mrb[188].mxu0 }
 0x2d1   :  { %v6098_v37 = vadd.f32 %v6051_v36, %v5973_v35  ;;  %v6053_v18 = vpop.f32.mrb[189].mxu0 }
 0x2d2   :  { %v6099_v40 = vadd.f32 %v6053_v18, %v5974_v50  ;;  %v6055_v62 = vpop.f32.mrb[190].mxu0 }
 0x2d3   :  { %v6056_v63 = vpop.f32.mrb[191].mxu0  ;;  %v6217_v7 = vpop.f32.mrb[192].mxu1 }
 0x2d4   :  { %v6225_v3 = vadd.f32 %v6217_v7, %v6100_v10  ;;  %v6910_v6 = vpop.f32.mrb[193].mxu1 }
 0x2d5   :  { %v6220_v8 = vpop.f32.mrb[194].mxu1 }
 0x2d6   :  { %v6231_v49 = vadd.f32 %v6228_v1, %v6225_v3  ;;  %v6911_v51 = vpop.f32.mrb[195].mxu1 }
 0x2d8   :  { %6235 = vst.msk [vmem:[#allocation2 + $0x10] sm:$0xff] %vm22_vm0, %v6231_v49  ;;  %v6176_v52 = vpop.f32.mrb[192].mxu0 }
 0x2d9   :  { %v6223_v42 = vadd.f32 %v6176_v52, %v6098_v37  ;;  %v6178_v25 = vpop.f32.mrb[193].mxu0 }
 0x2da   :  { %v6224_v60 = vadd.f32 %v6178_v25, %v6099_v40  ;;  %v6180_v0 = vpop.f32.mrb[194].mxu0 }
 0x2db   :  { %v6181_v26 = vpop.f32.mrb[195].mxu0  ;;  %v6259_v27 = vmul.f32 %v6247_v57, %v6223_v42 }
 0x2dc   :  { %v6260_v20 = vmul.f32 %v6251_v61, %v6224_v60 }
 0x2dd   :  { %v6268_v30 = vmul.f32 %v6259_v27, %v6223_v42 }
 0x2de   :  { %v6262_v32 = vadd.f32 %v6260_v20, %v6259_v27  ;;  %v6269_v15 = vmul.f32 %v6260_v20, %v6224_v60 }
 0x2df   :  { %v6241_v29 = vld [vmem:[#allocation2 + $0x10] sm:$0xff] }
 0x2e0   :  { %v6261_v31 = vmul.f32 %v6255_v23, %v6241_v29  ;;  %v6271_v5 = vadd.f32 %v6269_v15, %v6268_v30 }
 0x2e2   :  { %v6263_v33 = vsel %vm22_vm0, %v6261_v31, 0.0  ;;  %v6270_v2 = vmul.f32 %v6261_v31, %v6241_v29 }
 0x2e3   :  { %v6264_v4 = vadd.f32 %v6263_v33, %v6262_v32 }
 0x2e4   :  { %v6272_v9 = vsel %vm22_vm0, %v6270_v2, 0.0 }
 0x2e5   :  { %6265 = vadd.xlane.f32.xlu0 %v6264_v4  ;;  %v6273_v38 = vadd.f32 %v6272_v9, %v6271_v5 }
 0x2e7   :  { %6274 = vadd.xlane.f32.xlu1 %v6273_v38 }
 0x372   :  { %v6266_v21 = vpop.xlane.xlu0 %6265 }
 0x373   :  { %v6267_v44 = vmul.f32 0.00390625, %v6266_v21 }
 0x374   :  { %v6275_v39 = vpop.xlane.xlu1 %6274 }
 0x375   :  { %v6276_v28 = vmul.f32 0.00390625, %v6275_v39  ;;  %v6277_v11 = vmul.f32 %v6267_v44, %v6267_v44  ;;  %v6280_v16 = vsub.f32 %v6223_v42, %v6267_v44  ;;  %v6281_v41 = vsub.f32 %v6224_v60, %v6267_v44 }
 0x376   :  { %v6282_v43 = vsub.f32 %v6241_v29, %v6267_v44 }
 0x377   :  { %v6278_v22 = vsub.f32 %v6276_v28, %v6277_v11 }
 0x379   :  { %v6279_v13 = vmax.f32 %v6278_v22, 0.0 }
 0x37b   :  { %v6283_v24 = vadd.f32 1e-05, %v6279_v13 }
 0x37d   :  { %6984 = vrsqrt.f32 %v6283_v24 }
 0x387   :  { %v6985_v45 = vpop.eup %6984 }
 0x388   :  { %v6285_v19 = vmul.f32 %v6985_v45, %v6280_v16  ;;  %v6286_v46 = vmul.f32 %v6985_v45, %v6281_v41  ;;  %v6287_v34 = vmul.f32 %v6985_v45, %v6282_v43 }
 0x38a   :  { %v6288_v35 = vmax.f32 %v6285_v19, 0.0  ;;  %v6289_v47 = vmax.f32 %v6286_v46, 0.0  ;;  %v6290_v50 = vmax.f32 %v6287_v34, 0.0 }
 0x38c   :  { %v6518_v53 = vpack.c.bf16 %v6289_v47, %v6288_v35  ;;  %v6519_v54 = vpack.c.bf16 %v6290_v50, %v6290_v50 }
 0x38e   :  { %6304 = vst [vmem:[#allocation3] sm:$0xff] %v6518_v53  ;;  %6306 = vst.msk [vmem:[#allocation3 + $0x8] sm:$0xf] %vm6305_vm1, %v6519_v54 }
 0x38f   :  { %6997 = shalt.err (!%p6994_p4)
}
 0x390   :  { %s6998_s4 = scalar_lea.hbm %s8446_s3, 192 }
 0x391   :  { %p6999_p5 = scmp.ne.s32.totalorder %s8446_s3, %s6998_s4  ;;  %p7002_p6 = scmp.lt.u32.totalorder %s6998_s4, %s8446_s3 }
 0x393   :  { %p7004_p7 = pnand %p7002_p6, %p6999_p5 }
 0x395   :  { %7007 = shalt.err (!%p7004_p7)
}
 0x396   :  { %6316 = dma.vmem_to_hbm [thread:$0]  %s6314_s19, 192, %s8446_s3, [#allocation4]  }
 0x397   :  { %7008 = dma.done.wait [#allocation4], 192  }
 0x398   :  { %7009 = vsyncadd [#allocation4], 4294967104 }
 0x399   :  { %6320 = vsyncpa [#allocation4], 1 }

</bundles_post_ra>
